<compile_context>
chip_gen: v7x
topology: tpu7x:2x2x1
jax: 0.10.0
libtpu: 0.0.40
codegen_flags: <defaults>
</compile_context>

<pallas_src>
import functools
import math

import jax
import jax.numpy as jnp
from jax.experimental import pallas as pl
from jax.experimental.pallas import tpu as pltpu

_LN_EPS = 1e-5


def _round_up(n, m):
    return ((n + m - 1) // m) * m


def _cdiv(a, b):
    return -(-a // b)


# ----------------------------------------------------------------------------
# Generation-aware knobs
# ----------------------------------------------------------------------------
def _device_kind():
    try:
        return jax.devices()[0].device_kind.lower()
    except Exception:
        return ""


def _elementwise_dtype():
    """bf16 basis/silu math on chips with bf16 VPU/EUP (v6e/v7x); f32 on v5e
    and older (no bf16 VPU/EUP)."""
    kind = _device_kind()
    if any(tag in kind for tag in ("v6", "v7", "7x")):
        return jnp.bfloat16
    return jnp.float32


def _physical_vmem_bytes():
    try:
        info = pltpu.get_tpu_info()
        v = getattr(info, "vmem_capacity_bytes", None)
        if v:
            return int(v)
    except Exception:
        pass
    return 64 * 1024 * 1024  # conservative fallback (v7x-sized VMEM)


def _pick_batch_tile(batch):
    """Largest power-of-two tile in [16, 256] that keeps >= 2 grid steps when
    the batch allows it (MXU M-occupancy vs. megacore/pipelining trade-off)."""
    tile = 256
    while tile > 16 and _cdiv(max(batch, 1), tile) < 2:
        tile //= 2
    return tile


@functools.lru_cache(maxsize=1)
def _single_buffer_supported():
    """Trace-time capability probe: can grid-invariant params be single-
    buffered via pipeline_mode=pl.Buffered(1)?  Compiles a tiny 2-step probe
    kernel once instead of retry-compiling the full fused network."""
    if not hasattr(pl, "Buffered"):
        return False
    try:
        spec = pl.BlockSpec((8, 128), lambda i: (0, 0),
                            pipeline_mode=pl.Buffered(1))
    except TypeError:
        return False

    def _probe(x_ref, o_ref):
        o_ref[...] = x_ref[...] + 1.0

    try:
        f = pl.pallas_call(
            _probe,
            out_shape=jax.ShapeDtypeStruct((8, 128), jnp.float32),
            grid=(2,),
            in_specs=[spec],
            out_specs=pl.BlockSpec((8, 128), lambda i: (0, 0)))
        jax.jit(f).lower(jnp.zeros((8, 128), jnp.float32)).compile()
        return True
    except Exception:
        return False


# ----------------------------------------------------------------------------
# Fused Pallas kernel: all FastKAN layers for one batch tile.
# ----------------------------------------------------------------------------
def _fastkan_fused_kernel(*refs, layer_dims, grid_vals, inv_h, ng,
                          compute_dtype):
    num_layers = len(layer_dims)
    x_ref = refs[0]
    o_ref = refs[1 + 4 * num_layers]
    slab_ref = refs[2 + 4 * num_layers]          # (bt, max_k) bf16 scratch

    x = x_ref[...]                               # (bt, d_in_pad0) f32

    for l in range(num_layers):                  # static unroll over layers
        gamma_ref, beta_ref, w_ref, b_ref = refs[1 + 4 * l: 5 + 4 * l]
        d_in, d_in_pad, d_out, d_out_pad = layer_dims[l]

        # --- LayerNorm over the real d_in features (f32). Padded x lanes are
        # exactly 0 and gamma/beta are zero-padded, so no mask is needed;
        # var = E[x^2] - mean^2 is computed over the real features only.
        inv_d = 1.0 / d_in
        mean = jnp.sum(x, axis=-1, keepdims=True) * inv_d
        var = jnp.sum(x * x, axis=-1, keepdims=True) * inv_d - mean * mean
        ln = ((x - mean) * jax.lax.rsqrt(var + _LN_EPS) * gamma_ref[...]
              + beta_ref[...])

        # --- RBF basis blocks (g-major) + silu(x) block -> bf16 slab --------
        # Elementwise math in compute_dtype (bf16 on v6e/v7x, f32 on v5e).
        ln_c = ln.astype(compute_dtype)
        x_c = x.astype(compute_dtype)
        for g in range(ng):
            dist = (ln_c - grid_vals[g]) * inv_h
            slab_ref[:, g * d_in_pad:(g + 1) * d_in_pad] = (
                jnp.exp(-(dist * dist)).astype(jnp.bfloat16))
        slab_ref[:, ng * d_in_pad:(ng + 1) * d_in_pad] = (
            (x_c * jax.nn.sigmoid(x_c)).astype(jnp.bfloat16))
        # TODO(synk): the uniform-grid factorization exp(-(u-i)^2) =
        # exp(-u^2)*exp(2u)^i*exp(-i^2) would cut EUP exps ~ng/2x, but its
        # exp(2u)^i intermediates overflow f32 for |ln| >~ 1.6 at these grid
        # settings, so the direct (safe) form is kept.

        # --- one wide-K bf16 MXU matmul: spline + base fused, f32 accum -----
        k = (ng + 1) * d_in_pad
        x = jnp.dot(slab_ref[:, :k], w_ref[...],
                    preferred_element_type=jnp.float32) + b_ref[...]

    o_ref[...] = x.astype(o_ref.dtype)


# ----------------------------------------------------------------------------
# pallas_call construction
# ----------------------------------------------------------------------------
def _param_block_spec(shape, single_buffer):
    """Grid-invariant (constant index_map) parameter spec; single-buffered
    when supported so weights are not double-buffered in VMEM."""
    idx = lambda i: (0, 0)
    if single_buffer:
        return pl.BlockSpec(shape, idx, pipeline_mode=pl.Buffered(1))
    return pl.BlockSpec(shape, idx)


def _build_fastkan_call(packed_params, grid_vals, h, *, batch_tile, b_padded,
                        single_buffer_weights, compute_dtype):
    ng = len(grid_vals)
    d_in0_pad = packed_params[0]["dims"][1]
    d_out_last_pad = packed_params[-1]["dims"][3]
    max_k = max((ng + 1) * p["dims"][1] for p in packed_params)
    layer_dims = tuple(p["dims"] for p in packed_params)

    kernel = functools.partial(
        _fastkan_fused_kernel,
        layer_dims=layer_dims,
        grid_vals=tuple(float(v) for v in grid_vals),
        inv_h=float(1.0 / h),
        ng=ng,
        compute_dtype=compute_dtype)

    in_specs = [pl.BlockSpec((batch_tile, d_in0_pad), lambda i: (i, 0))]
    flat_params = []
    for p in packed_params:
        for name in ("gamma", "beta", "w", "b"):
            arr = p[name]
            in_specs.append(_param_block_spec(arr.shape, single_buffer_weights))
            flat_params.append(arr)

    # --- VMEM budget: sized from the actual resident footprint --------------
    param_bytes = 0
    for p in packed_params:
        param_bytes += p["w"].size * p["w"].dtype.itemsize
        param_bytes += (p["b"].size + p["gamma"].size + p["beta"].size) * 4
    param_buf = 1 if single_buffer_weights else 2
    resident = (2 * batch_tile * d_in0_pad * 4            # x tile (2 buffers)
                + 2 * batch_tile * d_out_last_pad * 4     # out tile (2 buffers)
                + batch_tile * max_k * 2                  # bf16 slab scratch
                + param_buf * param_bytes)                # resident weights
    physical = _physical_vmem_bytes()
    vmem_limit = min(int(physical * 0.85),
                     max(int(1.25 * resident) + (8 << 20), 32 << 20))
    # TODO(synk): if `resident` exceeds the generation budget (wide layers on
    # v7x's 64 MiB VMEM), fall back to per-layer kernels with a D_out grid
    # axis and streamed weight K/N blocks instead of full-network fusion.

    # --- cost estimate: free scheduling hint for XLA around the call --------
    flops = 0
    transcendentals = 0
    for (d_in, d_in_pad, d_out, d_out_pad) in layer_dims:
        flops += 2 * b_padded * (ng + 1) * d_in_pad * d_out_pad
        transcendentals += (ng + 2) * b_padded * d_in_pad   # ng exps + silu
    bytes_accessed = (b_padded * d_in0_pad * 4
                      + b_padded * d_out_last_pad * 4
                      + param_bytes)
    cost = pl.CostEstimate(flops=int(flops),
                           transcendentals=int(transcendentals),
                           bytes_accessed=int(bytes_accessed))

    call = pl.pallas_call(
        kernel,
        out_shape=jax.ShapeDtypeStruct((b_padded, d_out_last_pad), jnp.float32),
        grid_spec=pltpu.PrefetchScalarGridSpec(
            num_scalar_prefetch=0,
            grid=(b_padded // batch_tile,),
            in_specs=in_specs,
            out_specs=pl.BlockSpec((batch_tile, d_out_last_pad),
                                   lambda i: (i, 0)),
            scratch_shapes=[pltpu.VMEM((batch_tile, max_k), jnp.bfloat16)]),
        compiler_params=pltpu.CompilerParams(
            dimension_semantics=("parallel",),
            vmem_limit_bytes=vmem_limit),
        cost_estimate=cost,
    )
    return call, flat_params


def fastkan_forward(x, packed_params, grid_vals, h, *, batch_tile=None):
    """Full FastKAN forward.  x: (B, D_in) f32 -> (B, D_out_last) f32."""
    B, d_in0 = x.shape
    d_in0_actual, d_in0_pad, _, _ = packed_params[0]["dims"]
    assert d_in0 == d_in0_actual
    d_out_last = packed_params[-1]["dims"][2]

    if batch_tile is None:
        batch_tile = _pick_batch_tile(B)
    assert batch_tile % 16 == 0, "batch_tile must be a multiple of 16 (bf16 packing)"

    b_padded = _round_up(B, batch_tile)
    x_pad = jnp.pad(x.astype(jnp.float32),
                    ((0, b_padded - B), (0, d_in0_pad - d_in0)))

    call, flat_params = _build_fastkan_call(
        packed_params, grid_vals, h,
        batch_tile=batch_tile, b_padded=b_padded,
        single_buffer_weights=_single_buffer_supported(),
        compute_dtype=_elementwise_dtype())
    out = call(x_pad, *flat_params)
    return out[:B, :d_out_last]


# ----------------------------------------------------------------------------
# Parameter construction (torch-layout raw params) and kernel packing
# ----------------------------------------------------------------------------
def init_fastkan_raw_params(key, layers_hidden, num_grids, spline_scale=0.1):
    """Raw params in the torch layout (for the reference and for packing)."""
    params = []
    for d_in, d_out in zip(layers_hidden[:-1], layers_hidden[1:]):
        key, k_sp, k_bw, k_bb = jax.random.split(key, 4)
        # SplineLinear: trunc_normal(std=init_scale), torch shape (out, in*ng)
        w_sp = spline_scale * jax.random.truncated_normal(
            k_sp, -2.0, 2.0, (d_out, d_in * num_grids), dtype=jnp.float32)
        # base nn.Linear: kaiming-uniform-ish bounds
        bound = 1.0 / math.sqrt(d_in)
        w_base = jax.random.uniform(k_bw, (d_out, d_in), jnp.float32,
                                    -bound, bound)
        b_base = jax.random.uniform(k_bb, (d_out,), jnp.float32,
                                    -bound, bound)
        params.append(dict(
            w_spline=w_sp, w_base=w_base, b_base=b_base,
            gamma=jnp.ones((d_in,), jnp.float32),     # LayerNorm defaults
            beta=jnp.zeros((d_in,), jnp.float32)))
    return params


def pack_fastkan_params(raw_params, num_grids):
    """Pad to 128-lane multiples, flatten spline weight g-major, fuse the base
    weight as an extra K block, and cast the combined weight to bf16."""
    packed = []
    for p in raw_params:
        d_out, d_in_ng = p["w_spline"].shape
        d_in = d_in_ng // num_grids
        d_in_pad = _round_up(d_in, 128)
        d_out_pad = _round_up(d_out, 128)

        # torch col index is d*ng + g  ->  (o, d, g) -> (g, d, o) -> pad ->
        # rows g*d_in_pad + d of the flattened (ng*d_in_pad, d_out_pad) block.
        w_sp = p["w_spline"].reshape(d_out, d_in, num_grids)
        w_sp = jnp.transpose(w_sp, (2, 1, 0))
        w_sp = jnp.pad(w_sp, ((0, 0), (0, d_in_pad - d_in),
                              (0, d_out_pad - d_out)))
        w_sp = w_sp.reshape(num_grids * d_in_pad, d_out_pad)

        # base weight (out, in) -> (in, out), padded; appended as last K block
        w_b = jnp.pad(jnp.transpose(p["w_base"]),
                      ((0, d_in_pad - d_in), (0, d_out_pad - d_out)))

        w = jnp.concatenate([w_sp, w_b], axis=0).astype(jnp.bfloat16)
        b = jnp.pad(p["b_base"], (0, d_out_pad - d_out)
                    ).reshape(1, d_out_pad).astype(jnp.float32)
        gamma = jnp.pad(p["gamma"], (0, d_in_pad - d_in)).reshape(1, d_in_pad)
        beta = jnp.pad(p["beta"], (0, d_in_pad - d_in)).reshape(1, d_in_pad)

        packed.append(dict(w=w, b=b, gamma=gamma, beta=beta,
                           dims=(d_in, d_in_pad, d_out, d_out_pad)))
    return packed


# ----------------------------------------------------------------------------
# Pure-JAX reference (mirrors the PyTorch forward; matmul operands quantized
# to bf16 and elementwise math in compute_dtype, exactly like the kernel).
# ----------------------------------------------------------------------------
def fastkan_reference(x, raw_params, grid_vals, h, *,
                      compute_dtype=jnp.float32):
    grid = jnp.asarray(grid_vals, jnp.float32)
    inv_h = jnp.asarray(1.0 / h, compute_dtype)

    def q(a):  # bf16 round-trip (kernel feeds the MXU bf16 operands)
        return a.astype(jnp.bfloat16).astype(jnp.float32)

    for p in raw_params:
        mean = jnp.mean(x, -1, keepdims=True)
        var = jnp.mean((x - mean) ** 2, -1, keepdims=True)
        ln = (x - mean) / jnp.sqrt(var + _LN_EPS) * p["gamma"] + p["beta"]
        ln_c = ln.astype(compute_dtype)
        x_c = x.astype(compute_dtype)
        dist = (ln_c[..., None] - grid.astype(compute_dtype)) * inv_h
        basis = jnp.exp(-(dist * dist)).astype(jnp.float32)     # (B, d_in, ng)
        flat = basis.reshape(x.shape[0], -1)                    # col = d*ng+g
        silu = (x_c * jax.nn.sigmoid(x_c)).astype(jnp.float32)
        x = (q(flat) @ q(p["w_spline"]).T
             + q(silu) @ q(p["w_base"]).T
             + p["b_base"])
    return x


if __name__ == "__main__":
    # Small FastKAN: layers_hidden = [32, 64, 16], num_grids = 8.
    layers_hidden = [32, 64, 16]
    grid_min, grid_max, num_grids = -2.0, 2.0, 8
    h = (grid_max - grid_min) / (num_grids - 1)
    grid_vals = [grid_min + i * h for i in range(num_grids)]

    key = jax.random.PRNGKey(0)
    key, kx = jax.random.split(key)
    B = 256                          # auto-picked batch_tile=128 -> 2 grid steps
    x = jax.random.normal(kx, (B, layers_hidden[0]), dtype=jnp.float32)

    raw_params = init_fastkan_raw_params(key, layers_hidden, num_grids)
    packed_params = pack_fastkan_params(raw_params, num_grids)

    out = fastkan_forward(x, packed_params, grid_vals, h)
    out = jax.block_until_ready(out)

    ref = fastkan_reference(x, raw_params, grid_vals, h,
                            compute_dtype=_elementwise_dtype())
    assert out.shape == (B, layers_hidden[-1])
    max_err = float(jnp.max(jnp.abs(out - ref)))
    # Tolerance covers Mosaic-vs-XLA exp/sigmoid rounding differences in the
    # (deliberate) bf16 elementwise / bf16-MXU-operand configuration.
    assert jnp.allclose(out, ref, atol=3e-2, rtol=3e-2), (
        f"max abs err {max_err}")
    print("KERNEL_OK")
</pallas_src>

<mosaic_0001>
module attributes {stable_mosaic.version = 11 : i64} {
  func.func @_fastkan_fused_kernel(%arg0: i32, %arg1: memref<128x128xf32, #tpu.memory_space<vmem>>, %arg2: memref<1x128xf32, #tpu.memory_space<vmem>>, %arg3: memref<1x128xf32, #tpu.memory_space<vmem>>, %arg4: memref<1152x128xbf16, #tpu.memory_space<vmem>>, %arg5: memref<1x128xf32, #tpu.memory_space<vmem>>, %arg6: memref<1x128xf32, #tpu.memory_space<vmem>>, %arg7: memref<1x128xf32, #tpu.memory_space<vmem>>, %arg8: memref<1152x128xbf16, #tpu.memory_space<vmem>>, %arg9: memref<1x128xf32, #tpu.memory_space<vmem>>, %arg10: memref<128x128xf32, #tpu.memory_space<vmem>>, %arg11: memref<128x1152xbf16, #tpu.memory_space<vmem>>) attributes {dimension_semantics = [#tpu.dimension_semantics<parallel>], iteration_bounds = array<i64: 2>, scalar_prefetch = 0 : i64, scratch_operands = 1 : i64, tpu.core_type = #tpu.core_type<tc>, window_params = [{transform_indices = @transform_0, window_bounds = array<i64: 128, 128>}, {pipeline_mode = #tpu.pipeline_mode<synchronous>, transform_indices = @transform_1, window_bounds = array<i64: 1, 128>}, {pipeline_mode = #tpu.pipeline_mode<synchronous>, transform_indices = @transform_2, window_bounds = array<i64: 1, 128>}, {pipeline_mode = #tpu.pipeline_mode<synchronous>, transform_indices = @transform_3, window_bounds = array<i64: 1152, 128>}, {pipeline_mode = #tpu.pipeline_mode<synchronous>, transform_indices = @transform_4, window_bounds = array<i64: 1, 128>}, {pipeline_mode = #tpu.pipeline_mode<synchronous>, transform_indices = @transform_5, window_bounds = array<i64: 1, 128>}, {pipeline_mode = #tpu.pipeline_mode<synchronous>, transform_indices = @transform_6, window_bounds = array<i64: 1, 128>}, {pipeline_mode = #tpu.pipeline_mode<synchronous>, transform_indices = @transform_7, window_bounds = array<i64: 1152, 128>}, {pipeline_mode = #tpu.pipeline_mode<synchronous>, transform_indices = @transform_8, window_bounds = array<i64: 1, 128>}, {transform_indices = @transform_9, window_bounds = array<i64: 128, 128>}]} {
    %c0 = arith.constant 0 : index
    %c0_0 = arith.constant 0 : index
    %0 = vector.load %arg1[%c0, %c0_0] : memref<128x128xf32, #tpu.memory_space<vmem>>, vector<128x128xf32>
    %cst = arith.constant dense<0.000000e+00> : vector<128xf32>
    %1 = vector.multi_reduction <add>, %0, %cst [1] : vector<128x128xf32> to vector<128xf32>
    %2 = vector.shape_cast %1 : vector<128xf32> to vector<128x1xf32>
    %cst_1 = arith.constant 3.125000e-02 : f32
    %3 = vector.broadcast %cst_1 : f32 to vector<128x1xf32>
    %4 = arith.mulf %2, %3 : vector<128x1xf32>
    %5 = arith.mulf %0, %0 : vector<128x128xf32>
    %cst_2 = arith.constant dense<0.000000e+00> : vector<128xf32>
    %6 = vector.multi_reduction <add>, %5, %cst_2 [1] : vector<128x128xf32> to vector<128xf32>
    %7 = vector.shape_cast %6 : vector<128xf32> to vector<128x1xf32>
    %cst_3 = arith.constant 3.125000e-02 : f32
    %8 = vector.broadcast %cst_3 : f32 to vector<128x1xf32>
    %9 = arith.mulf %7, %8 : vector<128x1xf32>
    %10 = arith.mulf %4, %4 : vector<128x1xf32>
    %11 = arith.subf %9, %10 : vector<128x1xf32>
    %12 = vector.broadcast %4 : vector<128x1xf32> to vector<128x128xf32>
    %13 = arith.subf %0, %12 : vector<128x128xf32>
    %cst_4 = arith.constant 9.99999974E-6 : f32
    %14 = vector.broadcast %cst_4 : f32 to vector<128x1xf32>
    %15 = arith.addf %11, %14 : vector<128x1xf32>
    %16 = math.rsqrt %15 : vector<128x1xf32>
    %17 = vector.broadcast %16 : vector<128x1xf32> to vector<128x128xf32>
    %18 = arith.mulf %13, %17 : vector<128x128xf32>
    %c0_5 = arith.constant 0 : index
    %c0_6 = arith.constant 0 : index
    %19 = vector.load %arg2[%c0_5, %c0_6] : memref<1x128xf32, #tpu.memory_space<vmem>>, vector<1x128xf32>
    %20 = vector.broadcast %19 : vector<1x128xf32> to vector<128x128xf32>
    %21 = arith.mulf %18, %20 : vector<128x128xf32>
    %c0_7 = arith.constant 0 : index
    %c0_8 = arith.constant 0 : index
    %22 = vector.load %arg3[%c0_7, %c0_8] : memref<1x128xf32, #tpu.memory_space<vmem>>, vector<1x128xf32>
    %23 = vector.broadcast %22 : vector<1x128xf32> to vector<128x128xf32>
    %24 = arith.addf %21, %23 : vector<128x128xf32>
    %cst_9 = arith.constant -2.000000e+00 : f32
    %25 = vector.broadcast %cst_9 : f32 to vector<128x128xf32>
    %26 = arith.subf %24, %25 : vector<128x128xf32>
    %cst_10 = arith.constant 1.750000e+00 : f32
    %27 = vector.broadcast %cst_10 : f32 to vector<128x128xf32>
    %28 = arith.mulf %26, %27 : vector<128x128xf32>
    %29 = arith.mulf %28, %28 : vector<128x128xf32>
    %cst_11 = arith.constant 0.000000e+00 : f32
    %30 = vector.broadcast %cst_11 : f32 to vector<128x128xf32>
    %31 = arith.subf %30, %29 : vector<128x128xf32>
    %32 = math.exp %31 : vector<128x128xf32>
    %33 = arith.truncf %32 : vector<128x128xf32> to vector<128x128xbf16>
    %c0_12 = arith.constant 0 : index
    %c0_13 = arith.constant 0 : index
    %34 = vector.load %arg11[%c0_12, %c0_13] : memref<128x1152xbf16, #tpu.memory_space<vmem>>, vector<128x128xbf16>
    tpu.vector_store %arg11[%c0_12, %c0_13], %33 {strides = array<i32>} : memref<128x1152xbf16, #tpu.memory_space<vmem>>, vector<128x128xbf16>,
    %cst_14 = arith.constant -1.42857146 : f32
    %35 = vector.broadcast %cst_14 : f32 to vector<128x128xf32>
    %36 = arith.subf %24, %35 : vector<128x128xf32>
    %cst_15 = arith.constant 1.750000e+00 : f32
    %37 = vector.broadcast %cst_15 : f32 to vector<128x128xf32>
    %38 = arith.mulf %36, %37 : vector<128x128xf32>
    %39 = arith.mulf %38, %38 : vector<128x128xf32>
    %cst_16 = arith.constant 0.000000e+00 : f32
    %40 = vector.broadcast %cst_16 : f32 to vector<128x128xf32>
    %41 = arith.subf %40, %39 : vector<128x128xf32>
    %42 = math.exp %41 : vector<128x128xf32>
    %43 = arith.truncf %42 : vector<128x128xf32> to vector<128x128xbf16>
    %c0_17 = arith.constant 0 : index
    %c128 = arith.constant 128 : index
    %44 = vector.load %arg11[%c0_17, %c128] : memref<128x1152xbf16, #tpu.memory_space<vmem>>, vector<128x128xbf16>
    tpu.vector_store %arg11[%c0_17, %c128], %43 {strides = array<i32>} : memref<128x1152xbf16, #tpu.memory_space<vmem>>, vector<128x128xbf16>,
    %cst_18 = arith.constant -0.857142865 : f32
    %45 = vector.broadcast %cst_18 : f32 to vector<128x128xf32>
    %46 = arith.subf %24, %45 : vector<128x128xf32>
    %cst_19 = arith.constant 1.750000e+00 : f32
    %47 = vector.broadcast %cst_19 : f32 to vector<128x128xf32>
    %48 = arith.mulf %46, %47 : vector<128x128xf32>
    %49 = arith.mulf %48, %48 : vector<128x128xf32>
    %cst_20 = arith.constant 0.000000e+00 : f32
    %50 = vector.broadcast %cst_20 : f32 to vector<128x128xf32>
    %51 = arith.subf %50, %49 : vector<128x128xf32>
    %52 = math.exp %51 : vector<128x128xf32>
    %53 = arith.truncf %52 : vector<128x128xf32> to vector<128x128xbf16>
    %c0_21 = arith.constant 0 : index
    %c256 = arith.constant 256 : index
    %54 = vector.load %arg11[%c0_21, %c256] : memref<128x1152xbf16, #tpu.memory_space<vmem>>, vector<128x128xbf16>
    tpu.vector_store %arg11[%c0_21, %c256], %53 {strides = array<i32>} : memref<128x1152xbf16, #tpu.memory_space<vmem>>, vector<128x128xbf16>,
    %cst_22 = arith.constant -0.285714298 : f32
    %55 = vector.broadcast %cst_22 : f32 to vector<128x128xf32>
    %56 = arith.subf %24, %55 : vector<128x128xf32>
    %cst_23 = arith.constant 1.750000e+00 : f32
    %57 = vector.broadcast %cst_23 : f32 to vector<128x128xf32>
    %58 = arith.mulf %56, %57 : vector<128x128xf32>
    %59 = arith.mulf %58, %58 : vector<128x128xf32>
    %cst_24 = arith.constant 0.000000e+00 : f32
    %60 = vector.broadcast %cst_24 : f32 to vector<128x128xf32>
    %61 = arith.subf %60, %59 : vector<128x128xf32>
    %62 = math.exp %61 : vector<128x128xf32>
    %63 = arith.truncf %62 : vector<128x128xf32> to vector<128x128xbf16>
    %c0_25 = arith.constant 0 : index
    %c384 = arith.constant 384 : index
    %64 = vector.load %arg11[%c0_25, %c384] : memref<128x1152xbf16, #tpu.memory_space<vmem>>, vector<128x128xbf16>
    tpu.vector_store %arg11[%c0_25, %c384], %63 {strides = array<i32>} : memref<128x1152xbf16, #tpu.memory_space<vmem>>, vector<128x128xbf16>,
    %cst_26 = arith.constant 0.285714298 : f32
    %65 = vector.broadcast %cst_26 : f32 to vector<128x128xf32>
    %66 = arith.subf %24, %65 : vector<128x128xf32>
    %cst_27 = arith.constant 1.750000e+00 : f32
    %67 = vector.broadcast %cst_27 : f32 to vector<128x128xf32>
    %68 = arith.mulf %66, %67 : vector<128x128xf32>
    %69 = arith.mulf %68, %68 : vector<128x128xf32>
    %cst_28 = arith.constant 0.000000e+00 : f32
    %70 = vector.broadcast %cst_28 : f32 to vector<128x128xf32>
    %71 = arith.subf %70, %69 : vector<128x128xf32>
    %72 = math.exp %71 : vector<128x128xf32>
    %73 = arith.truncf %72 : vector<128x128xf32> to vector<128x128xbf16>
    %c0_29 = arith.constant 0 : index
    %c512 = arith.constant 512 : index
    %74 = vector.load %arg11[%c0_29, %c512] : memref<128x1152xbf16, #tpu.memory_space<vmem>>, vector<128x128xbf16>
    tpu.vector_store %arg11[%c0_29, %c512], %73 {strides = array<i32>} : memref<128x1152xbf16, #tpu.memory_space<vmem>>, vector<128x128xbf16>,
    %cst_30 = arith.constant 0.857142865 : f32
    %75 = vector.broadcast %cst_30 : f32 to vector<128x128xf32>
    %76 = arith.subf %24, %75 : vector<128x128xf32>
    %cst_31 = arith.constant 1.750000e+00 : f32
    %77 = vector.broadcast %cst_31 : f32 to vector<128x128xf32>
    %78 = arith.mulf %76, %77 : vector<128x128xf32>
    %79 = arith.mulf %78, %78 : vector<128x128xf32>
    %cst_32 = arith.constant 0.000000e+00 : f32
    %80 = vector.broadcast %cst_32 : f32 to vector<128x128xf32>
    %81 = arith.subf %80, %79 : vector<128x128xf32>
    %82 = math.exp %81 : vector<128x128xf32>
    %83 = arith.truncf %82 : vector<128x128xf32> to vector<128x128xbf16>
    %c0_33 = arith.constant 0 : index
    %c640 = arith.constant 640 : index
    %84 = vector.load %arg11[%c0_33, %c640] : memref<128x1152xbf16, #tpu.memory_space<vmem>>, vector<128x128xbf16>
    tpu.vector_store %arg11[%c0_33, %c640], %83 {strides = array<i32>} : memref<128x1152xbf16, #tpu.memory_space<vmem>>, vector<128x128xbf16>,
    %cst_34 = arith.constant 1.42857146 : f32
    %85 = vector.broadcast %cst_34 : f32 to vector<128x128xf32>
    %86 = arith.subf %24, %85 : vector<128x128xf32>
    %cst_35 = arith.constant 1.750000e+00 : f32
    %87 = vector.broadcast %cst_35 : f32 to vector<128x128xf32>
    %88 = arith.mulf %86, %87 : vector<128x128xf32>
    %89 = arith.mulf %88, %88 : vector<128x128xf32>
    %cst_36 = arith.constant 0.000000e+00 : f32
    %90 = vector.broadcast %cst_36 : f32 to vector<128x128xf32>
    %91 = arith.subf %90, %89 : vector<128x128xf32>
    %92 = math.exp %91 : vector<128x128xf32>
    %93 = arith.truncf %92 : vector<128x128xf32> to vector<128x128xbf16>
    %c0_37 = arith.constant 0 : index
    %c768 = arith.constant 768 : index
    %94 = vector.load %arg11[%c0_37, %c768] : memref<128x1152xbf16, #tpu.memory_space<vmem>>, vector<128x128xbf16>
    tpu.vector_store %arg11[%c0_37, %c768], %93 {strides = array<i32>} : memref<128x1152xbf16, #tpu.memory_space<vmem>>, vector<128x128xbf16>,
    %cst_38 = arith.constant 2.000000e+00 : f32
    %95 = vector.broadcast %cst_38 : f32 to vector<128x128xf32>
    %96 = arith.subf %24, %95 : vector<128x128xf32>
    %cst_39 = arith.constant 1.750000e+00 : f32
    %97 = vector.broadcast %cst_39 : f32 to vector<128x128xf32>
    %98 = arith.mulf %96, %97 : vector<128x128xf32>
    %99 = arith.mulf %98, %98 : vector<128x128xf32>
    %cst_40 = arith.constant 0.000000e+00 : f32
    %100 = vector.broadcast %cst_40 : f32 to vector<128x128xf32>
    %101 = arith.subf %100, %99 : vector<128x128xf32>
    %102 = math.exp %101 : vector<128x128xf32>
    %103 = arith.truncf %102 : vector<128x128xf32> to vector<128x128xbf16>
    %c0_41 = arith.constant 0 : index
    %c896 = arith.constant 896 : index
    %104 = vector.load %arg11[%c0_41, %c896] : memref<128x1152xbf16, #tpu.memory_space<vmem>>, vector<128x128xbf16>
    tpu.vector_store %arg11[%c0_41, %c896], %103 {strides = array<i32>} : memref<128x1152xbf16, #tpu.memory_space<vmem>>, vector<128x128xbf16>,
    %105 = arith.negf %0 : vector<128x128xf32>
    %106 = math.exp %105 : vector<128x128xf32>
    %cst_42 = arith.constant 1.000000e+00 : f32
    %107 = vector.broadcast %cst_42 : f32 to vector<128x128xf32>
    %108 = arith.addf %107, %106 : vector<128x128xf32>
    %109 = arith.divf %107, %108 : vector<128x128xf32>
    %110 = arith.mulf %0, %109 : vector<128x128xf32>
    %111 = arith.truncf %110 : vector<128x128xf32> to vector<128x128xbf16>
    %c0_43 = arith.constant 0 : index
    %c1024 = arith.constant 1024 : index
    %112 = vector.load %arg11[%c0_43, %c1024] : memref<128x1152xbf16, #tpu.memory_space<vmem>>, vector<128x128xbf16>
    tpu.vector_store %arg11[%c0_43, %c1024], %111 {strides = array<i32>} : memref<128x1152xbf16, #tpu.memory_space<vmem>>, vector<128x128xbf16>,
    %c0_44 = arith.constant 0 : index
    %c0_45 = arith.constant 0 : index
    %113 = vector.load %arg11[%c0_44, %c0_45] : memref<128x1152xbf16, #tpu.memory_space<vmem>>, vector<128x1152xbf16>
    %c0_46 = arith.constant 0 : index
    %c0_47 = arith.constant 0 : index
    %114 = vector.load %arg4[%c0_46, %c0_47] : memref<1152x128xbf16, #tpu.memory_space<vmem>>, vector<1152x128xbf16>
    %cst_48 = arith.constant dense<0.000000e+00> : vector<128x128xf32>
    %115 = tpu.matmul %113, %114, %cst_48 {dimension_numbers = #tpu.dot_dimension_numbers<[1], [0], [0], [1], [0, 0, 1, 1], [], []>} : vector<128x1152xbf16>, vector<1152x128xbf16>, vector<128x128xf32> -> vector<128x128xf32>
    %c0_49 = arith.constant 0 : index
    %c0_50 = arith.constant 0 : index
    %116 = vector.load %arg5[%c0_49, %c0_50] : memref<1x128xf32, #tpu.memory_space<vmem>>, vector<1x128xf32>
    %117 = vector.broadcast %116 : vector<1x128xf32> to vector<128x128xf32>
    %118 = arith.addf %115, %117 : vector<128x128xf32>
    %cst_51 = arith.constant dense<0.000000e+00> : vector<128xf32>
    %119 = vector.multi_reduction <add>, %118, %cst_51 [1] : vector<128x128xf32> to vector<128xf32>
    %120 = vector.shape_cast %119 : vector<128xf32> to vector<128x1xf32>
    %cst_52 = arith.constant 1.562500e-02 : f32
    %121 = vector.broadcast %cst_52 : f32 to vector<128x1xf32>
    %122 = arith.mulf %120, %121 : vector<128x1xf32>
    %123 = arith.mulf %118, %118 : vector<128x128xf32>
    %cst_53 = arith.constant dense<0.000000e+00> : vector<128xf32>
    %124 = vector.multi_reduction <add>, %123, %cst_53 [1] : vector<128x128xf32> to vector<128xf32>
    %125 = vector.shape_cast %124 : vector<128xf32> to vector<128x1xf32>
    %cst_54 = arith.constant 1.562500e-02 : f32
    %126 = vector.broadcast %cst_54 : f32 to vector<128x1xf32>
    %127 = arith.mulf %125, %126 : vector<128x1xf32>
    %128 = arith.mulf %122, %122 : vector<128x1xf32>
    %129 = arith.subf %127, %128 : vector<128x1xf32>
    %130 = vector.broadcast %122 : vector<128x1xf32> to vector<128x128xf32>
    %131 = arith.subf %118, %130 : vector<128x128xf32>
    %cst_55 = arith.constant 9.99999974E-6 : f32
    %132 = vector.broadcast %cst_55 : f32 to vector<128x1xf32>
    %133 = arith.addf %129, %132 : vector<128x1xf32>
    %134 = math.rsqrt %133 : vector<128x1xf32>
    %135 = vector.broadcast %134 : vector<128x1xf32> to vector<128x128xf32>
    %136 = arith.mulf %131, %135 : vector<128x128xf32>
    %c0_56 = arith.constant 0 : index
    %c0_57 = arith.constant 0 : index
    %137 = vector.load %arg6[%c0_56, %c0_57] : memref<1x128xf32, #tpu.memory_space<vmem>>, vector<1x128xf32>
    %138 = vector.broadcast %137 : vector<1x128xf32> to vector<128x128xf32>
    %139 = arith.mulf %136, %138 : vector<128x128xf32>
    %c0_58 = arith.constant 0 : index
    %c0_59 = arith.constant 0 : index
    %140 = vector.load %arg7[%c0_58, %c0_59] : memref<1x128xf32, #tpu.memory_space<vmem>>, vector<1x128xf32>
    %141 = vector.broadcast %140 : vector<1x128xf32> to vector<128x128xf32>
    %142 = arith.addf %139, %141 : vector<128x128xf32>
    %cst_60 = arith.constant -2.000000e+00 : f32
    %143 = vector.broadcast %cst_60 : f32 to vector<128x128xf32>
    %144 = arith.subf %142, %143 : vector<128x128xf32>
    %cst_61 = arith.constant 1.750000e+00 : f32
    %145 = vector.broadcast %cst_61 : f32 to vector<128x128xf32>
    %146 = arith.mulf %144, %145 : vector<128x128xf32>
    %147 = arith.mulf %146, %146 : vector<128x128xf32>
    %cst_62 = arith.constant 0.000000e+00 : f32
    %148 = vector.broadcast %cst_62 : f32 to vector<128x128xf32>
    %149 = arith.subf %148, %147 : vector<128x128xf32>
    %150 = math.exp %149 : vector<128x128xf32>
    %151 = arith.truncf %150 : vector<128x128xf32> to vector<128x128xbf16>
    %c0_63 = arith.constant 0 : index
    %c0_64 = arith.constant 0 : index
    %152 = vector.load %arg11[%c0_63, %c0_64] : memref<128x1152xbf16, #tpu.memory_space<vmem>>, vector<128x128xbf16>
    tpu.vector_store %arg11[%c0_63, %c0_64], %151 {strides = array<i32>} : memref<128x1152xbf16, #tpu.memory_space<vmem>>, vector<128x128xbf16>,
    %cst_65 = arith.constant -1.42857146 : f32
    %153 = vector.broadcast %cst_65 : f32 to vector<128x128xf32>
    %154 = arith.subf %142, %153 : vector<128x128xf32>
    %cst_66 = arith.constant 1.750000e+00 : f32
    %155 = vector.broadcast %cst_66 : f32 to vector<128x128xf32>
    %156 = arith.mulf %154, %155 : vector<128x128xf32>
    %157 = arith.mulf %156, %156 : vector<128x128xf32>
    %cst_67 = arith.constant 0.000000e+00 : f32
    %158 = vector.broadcast %cst_67 : f32 to vector<128x128xf32>
    %159 = arith.subf %158, %157 : vector<128x128xf32>
    %160 = math.exp %159 : vector<128x128xf32>
    %161 = arith.truncf %160 : vector<128x128xf32> to vector<128x128xbf16>
    %c0_68 = arith.constant 0 : index
    %c128_69 = arith.constant 128 : index
    %162 = vector.load %arg11[%c0_68, %c128_69] : memref<128x1152xbf16, #tpu.memory_space<vmem>>, vector<128x128xbf16>
    tpu.vector_store %arg11[%c0_68, %c128_69], %161 {strides = array<i32>} : memref<128x1152xbf16, #tpu.memory_space<vmem>>, vector<128x128xbf16>,
    %cst_70 = arith.constant -0.857142865 : f32
    %163 = vector.broadcast %cst_70 : f32 to vector<128x128xf32>
    %164 = arith.subf %142, %163 : vector<128x128xf32>
    %cst_71 = arith.constant 1.750000e+00 : f32
    %165 = vector.broadcast %cst_71 : f32 to vector<128x128xf32>
    %166 = arith.mulf %164, %165 : vector<128x128xf32>
    %167 = arith.mulf %166, %166 : vector<128x128xf32>
    %cst_72 = arith.constant 0.000000e+00 : f32
    %168 = vector.broadcast %cst_72 : f32 to vector<128x128xf32>
    %169 = arith.subf %168, %167 : vector<128x128xf32>
    %170 = math.exp %169 : vector<128x128xf32>
    %171 = arith.truncf %170 : vector<128x128xf32> to vector<128x128xbf16>
    %c0_73 = arith.constant 0 : index
    %c256_74 = arith.constant 256 : index
    %172 = vector.load %arg11[%c0_73, %c256_74] : memref<128x1152xbf16, #tpu.memory_space<vmem>>, vector<128x128xbf16>
    tpu.vector_store %arg11[%c0_73, %c256_74], %171 {strides = array<i32>} : memref<128x1152xbf16, #tpu.memory_space<vmem>>, vector<128x128xbf16>,
    %cst_75 = arith.constant -0.285714298 : f32
    %173 = vector.broadcast %cst_75 : f32 to vector<128x128xf32>
    %174 = arith.subf %142, %173 : vector<128x128xf32>
    %cst_76 = arith.constant 1.750000e+00 : f32
    %175 = vector.broadcast %cst_76 : f32 to vector<128x128xf32>
    %176 = arith.mulf %174, %175 : vector<128x128xf32>
    %177 = arith.mulf %176, %176 : vector<128x128xf32>
    %cst_77 = arith.constant 0.000000e+00 : f32
    %178 = vector.broadcast %cst_77 : f32 to vector<128x128xf32>
    %179 = arith.subf %178, %177 : vector<128x128xf32>
    %180 = math.exp %179 : vector<128x128xf32>
    %181 = arith.truncf %180 : vector<128x128xf32> to vector<128x128xbf16>
    %c0_78 = arith.constant 0 : index
    %c384_79 = arith.constant 384 : index
    %182 = vector.load %arg11[%c0_78, %c384_79] : memref<128x1152xbf16, #tpu.memory_space<vmem>>, vector<128x128xbf16>
    tpu.vector_store %arg11[%c0_78, %c384_79], %181 {strides = array<i32>} : memref<128x1152xbf16, #tpu.memory_space<vmem>>, vector<128x128xbf16>,
    %cst_80 = arith.constant 0.285714298 : f32
    %183 = vector.broadcast %cst_80 : f32 to vector<128x128xf32>
    %184 = arith.subf %142, %183 : vector<128x128xf32>
    %cst_81 = arith.constant 1.750000e+00 : f32
    %185 = vector.broadcast %cst_81 : f32 to vector<128x128xf32>
    %186 = arith.mulf %184, %185 : vector<128x128xf32>
    %187 = arith.mulf %186, %186 : vector<128x128xf32>
    %cst_82 = arith.constant 0.000000e+00 : f32
    %188 = vector.broadcast %cst_82 : f32 to vector<128x128xf32>
    %189 = arith.subf %188, %187 : vector<128x128xf32>
    %190 = math.exp %189 : vector<128x128xf32>
    %191 = arith.truncf %190 : vector<128x128xf32> to vector<128x128xbf16>
    %c0_83 = arith.constant 0 : index
    %c512_84 = arith.constant 512 : index
    %192 = vector.load %arg11[%c0_83, %c512_84] : memref<128x1152xbf16, #tpu.memory_space<vmem>>, vector<128x128xbf16>
    tpu.vector_store %arg11[%c0_83, %c512_84], %191 {strides = array<i32>} : memref<128x1152xbf16, #tpu.memory_space<vmem>>, vector<128x128xbf16>,
    %cst_85 = arith.constant 0.857142865 : f32
    %193 = vector.broadcast %cst_85 : f32 to vector<128x128xf32>
    %194 = arith.subf %142, %193 : vector<128x128xf32>
    %cst_86 = arith.constant 1.750000e+00 : f32
    %195 = vector.broadcast %cst_86 : f32 to vector<128x128xf32>
    %196 = arith.mulf %194, %195 : vector<128x128xf32>
    %197 = arith.mulf %196, %196 : vector<128x128xf32>
    %cst_87 = arith.constant 0.000000e+00 : f32
    %198 = vector.broadcast %cst_87 : f32 to vector<128x128xf32>
    %199 = arith.subf %198, %197 : vector<128x128xf32>
    %200 = math.exp %199 : vector<128x128xf32>
    %201 = arith.truncf %200 : vector<128x128xf32> to vector<128x128xbf16>
    %c0_88 = arith.constant 0 : index
    %c640_89 = arith.constant 640 : index
    %202 = vector.load %arg11[%c0_88, %c640_89] : memref<128x1152xbf16, #tpu.memory_space<vmem>>, vector<128x128xbf16>
    tpu.vector_store %arg11[%c0_88, %c640_89], %201 {strides = array<i32>} : memref<128x1152xbf16, #tpu.memory_space<vmem>>, vector<128x128xbf16>,
    %cst_90 = arith.constant 1.42857146 : f32
    %203 = vector.broadcast %cst_90 : f32 to vector<128x128xf32>
    %204 = arith.subf %142, %203 : vector<128x128xf32>
    %cst_91 = arith.constant 1.750000e+00 : f32
    %205 = vector.broadcast %cst_91 : f32 to vector<128x128xf32>
    %206 = arith.mulf %204, %205 : vector<128x128xf32>
    %207 = arith.mulf %206, %206 : vector<128x128xf32>
    %cst_92 = arith.constant 0.000000e+00 : f32
    %208 = vector.broadcast %cst_92 : f32 to vector<128x128xf32>
    %209 = arith.subf %208, %207 : vector<128x128xf32>
    %210 = math.exp %209 : vector<128x128xf32>
    %211 = arith.truncf %210 : vector<128x128xf32> to vector<128x128xbf16>
    %c0_93 = arith.constant 0 : index
    %c768_94 = arith.constant 768 : index
    %212 = vector.load %arg11[%c0_93, %c768_94] : memref<128x1152xbf16, #tpu.memory_space<vmem>>, vector<128x128xbf16>
    tpu.vector_store %arg11[%c0_93, %c768_94], %211 {strides = array<i32>} : memref<128x1152xbf16, #tpu.memory_space<vmem>>, vector<128x128xbf16>,
    %cst_95 = arith.constant 2.000000e+00 : f32
    %213 = vector.broadcast %cst_95 : f32 to vector<128x128xf32>
    %214 = arith.subf %142, %213 : vector<128x128xf32>
    %cst_96 = arith.constant 1.750000e+00 : f32
    %215 = vector.broadcast %cst_96 : f32 to vector<128x128xf32>
    %216 = arith.mulf %214, %215 : vector<128x128xf32>
    %217 = arith.mulf %216, %216 : vector<128x128xf32>
    %cst_97 = arith.constant 0.000000e+00 : f32
    %218 = vector.broadcast %cst_97 : f32 to vector<128x128xf32>
    %219 = arith.subf %218, %217 : vector<128x128xf32>
    %220 = math.exp %219 : vector<128x128xf32>
    %221 = arith.truncf %220 : vector<128x128xf32> to vector<128x128xbf16>
    %c0_98 = arith.constant 0 : index
    %c896_99 = arith.constant 896 : index
    %222 = vector.load %arg11[%c0_98, %c896_99] : memref<128x1152xbf16, #tpu.memory_space<vmem>>, vector<128x128xbf16>
    tpu.vector_store %arg11[%c0_98, %c896_99], %221 {strides = array<i32>} : memref<128x1152xbf16, #tpu.memory_space<vmem>>, vector<128x128xbf16>,
    %223 = arith.negf %118 : vector<128x128xf32>
    %224 = math.exp %223 : vector<128x128xf32>
    %cst_100 = arith.constant 1.000000e+00 : f32
    %225 = vector.broadcast %cst_100 : f32 to vector<128x128xf32>
    %226 = arith.addf %225, %224 : vector<128x128xf32>
    %227 = arith.divf %225, %226 : vector<128x128xf32>
    %228 = arith.mulf %118, %227 : vector<128x128xf32>
    %229 = arith.truncf %228 : vector<128x128xf32> to vector<128x128xbf16>
    %c0_101 = arith.constant 0 : index
    %c1024_102 = arith.constant 1024 : index
    %230 = vector.load %arg11[%c0_101, %c1024_102] : memref<128x1152xbf16, #tpu.memory_space<vmem>>, vector<128x128xbf16>
    tpu.vector_store %arg11[%c0_101, %c1024_102], %229 {strides = array<i32>} : memref<128x1152xbf16, #tpu.memory_space<vmem>>, vector<128x128xbf16>,
    %c0_103 = arith.constant 0 : index
    %c0_104 = arith.constant 0 : index
    %231 = vector.load %arg11[%c0_103, %c0_104] : memref<128x1152xbf16, #tpu.memory_space<vmem>>, vector<128x1152xbf16>
    %c0_105 = arith.constant 0 : index
    %c0_106 = arith.constant 0 : index
    %232 = vector.load %arg8[%c0_105, %c0_106] : memref<1152x128xbf16, #tpu.memory_space<vmem>>, vector<1152x128xbf16>
    %cst_107 = arith.constant dense<0.000000e+00> : vector<128x128xf32>
    %233 = tpu.matmul %231, %232, %cst_107 {dimension_numbers = #tpu.dot_dimension_numbers<[1], [0], [0], [1], [0, 0, 1, 1], [], []>} : vector<128x1152xbf16>, vector<1152x128xbf16>, vector<128x128xf32> -> vector<128x128xf32>
    %c0_108 = arith.constant 0 : index
    %c0_109 = arith.constant 0 : index
    %234 = vector.load %arg9[%c0_108, %c0_109] : memref<1x128xf32, #tpu.memory_space<vmem>>, vector<1x128xf32>
    %235 = vector.broadcast %234 : vector<1x128xf32> to vector<128x128xf32>
    %236 = arith.addf %233, %235 : vector<128x128xf32>
    %c0_110 = arith.constant 0 : index
    %c0_111 = arith.constant 0 : index
    %237 = vector.load %arg10[%c0_110, %c0_111] : memref<128x128xf32, #tpu.memory_space<vmem>>, vector<128x128xf32>
    tpu.vector_store %arg10[%c0_110, %c0_111], %236 {strides = array<i32>} : memref<128x128xf32, #tpu.memory_space<vmem>>, vector<128x128xf32>,
    return
  }
  func.func @transform_0(%arg0: i32) -> (i32, i32) {
    %c0_i32 = arith.constant 0 : i32
    %c0_i32_0 = arith.constant 0 : i32
    return %arg0, %c0_i32 : i32, i32
  }
  func.func @transform_1(%arg0: i32) -> (i32, i32) {
    %c0_i32 = arith.constant 0 : i32
    %c0_i32_0 = arith.constant 0 : i32
    %c0_i32_1 = arith.constant 0 : i32
    return %c0_i32, %c0_i32_0 : i32, i32
  }
  func.func @transform_2(%arg0: i32) -> (i32, i32) {
    %c0_i32 = arith.constant 0 : i32
    %c0_i32_0 = arith.constant 0 : i32
    %c0_i32_1 = arith.constant 0 : i32
    return %c0_i32, %c0_i32_0 : i32, i32
  }
  func.func @transform_3(%arg0: i32) -> (i32, i32) {
    %c0_i32 = arith.constant 0 : i32
    %c0_i32_0 = arith.constant 0 : i32
    %c0_i32_1 = arith.constant 0 : i32
    return %c0_i32, %c0_i32_0 : i32, i32
  }
  func.func @transform_4(%arg0: i32) -> (i32, i32) {
    %c0_i32 = arith.constant 0 : i32
    %c0_i32_0 = arith.constant 0 : i32
    %c0_i32_1 = arith.constant 0 : i32
    return %c0_i32, %c0_i32_0 : i32, i32
  }
  func.func @transform_5(%arg0: i32) -> (i32, i32) {
    %c0_i32 = arith.constant 0 : i32
    %c0_i32_0 = arith.constant 0 : i32
    %c0_i32_1 = arith.constant 0 : i32
    return %c0_i32, %c0_i32_0 : i32, i32
  }
  func.func @transform_6(%arg0: i32) -> (i32, i32) {
    %c0_i32 = arith.constant 0 : i32
    %c0_i32_0 = arith.constant 0 : i32
    %c0_i32_1 = arith.constant 0 : i32
    return %c0_i32, %c0_i32_0 : i32, i32
  }
  func.func @transform_7(%arg0: i32) -> (i32, i32) {
    %c0_i32 = arith.constant 0 : i32
    %c0_i32_0 = arith.constant 0 : i32
    %c0_i32_1 = arith.constant 0 : i32
    return %c0_i32, %c0_i32_0 : i32, i32
  }
  func.func @transform_8(%arg0: i32) -> (i32, i32) {
    %c0_i32 = arith.constant 0 : i32
    %c0_i32_0 = arith.constant 0 : i32
    %c0_i32_1 = arith.constant 0 : i32
    return %c0_i32, %c0_i32_0 : i32, i32
  }
  func.func @transform_9(%arg0: i32) -> (i32, i32) {
    %c0_i32 = arith.constant 0 : i32
    %c0_i32_0 = arith.constant 0 : i32
    return %arg0, %c0_i32 : i32, i32
  }
}

</mosaic_0001>

<bundles_post_ra>
// kernel: tpu_custom_call.1
= control target key start
LH: loop header
LB: loop body
LE: loop exit
PB: predicated region body
PF: predicated region fallthrough
CT: control target
= control target key end

     0   :  { %14 = vsyncpa [#allocation4], 0  ;;  %s9081_s0 = inlined_call_operand.hbm [shape: f32[256,128], index: 0, kind: input, shape index: {}]   ;;  %s9082_s1 = inlined_call_operand.vmem [shape: f32[1,128], index: 1, kind: input, shape index: {}]   ;;  %s9083_s2 = inlined_call_operand.vmem [shape: f32[1,128], index: 2, kind: input, shape index: {}]   ;;  %s9084_s3 = inlined_call_operand.hbm [shape: bf16[1152,128], index: 3, kind: input, shape index: {}]   ;;  %s9085_s4 = inlined_call_operand.vmem [shape: f32[1,128], index: 4, kind: input, shape index: {}]   ;;  %s9086_s5 = inlined_call_operand.vmem [shape: f32[1,128], index: 5, kind: input, shape index: {}]   ;;  %s9087_s6 = inlined_call_operand.vmem [shape: f32[1,128], index: 6, kind: input, shape index: {}]   ;;  %s9088_s7 = inlined_call_operand.hbm [shape: bf16[1152,128], index: 7, kind: input, shape index: {}]   ;;  %s9089_s8 = inlined_call_operand.vmem [shape: f32[1,128], index: 8, kind: input, shape index: {}]   ;;  %s9090_s9 = inlined_call_operand.hbm [shape: f32[256,128], index: 9, kind: output, shape index: {}]  }
   0x1   :  { %16 = vsyncpa [#allocation4 + $0x1], 0 }
   0x2   :  { %17 = vsyncpa [#allocation7], 0 }
   0x3   :  { %18 = vsyncpa [#allocation5], 0 }
   0x4   :  { %20 = vsyncpa [#allocation5 + $0x1], 0  ;;  %s7585_s30 = smov 0   ;;  %s7587_s10 = smov 0  }
   0x5   :  { %s7589_s11 = smov 0   ;;  %s7591_s12 = smov 0  }
   0x6 LB: > { %s7606_s13 = sadd.s32 4294967295, %s7523_s12   ;;  %s5357_s14 = sadd.s32 4294967294, %s7523_s12   ;;  %s7523_s12 = sphi %s7591_s12, %s9157_s12   ;;  %s7519_s11 = sphi %s7589_s11, %s9156_s11   ;;  %s7515_s10 = sphi %s7587_s10, %s9155_s10   ;;  %s7511_s30 = sphi %s7585_s30, %s9154_s30  }
   0x7   : > { %p46_p0 = scmp.ne.s32.totalorder %s7515_s10, %s7511_s30  ;;  %p9091_p1 = scmp.eq.s32.totalorder %s7606_s13, 0 }
   0x8   : > { %p244_p3 = scmp.eq.s32.totalorder %s5357_s14, 1  ;;  %p5358_p5 = scmp.ge.s32.totalorder %s7523_s12, 1 }
   0x9   : > { %p7615_p4 = por %p9091_p1, %p46_p0  ;;  %p251_p7 = scmp.lt.s32.totalorder %s7523_s12, 3 }
   0xa   : > { %p7620_p6 = por %p244_p3, %p46_p0  ;;  %s7525_s18 = smov [#allocation6]  }
   0xb   : > { %s9104_s15 = scalar_select %p7615_p4, 1, 0 }
   0xc   : > { %s9105_s16 = scalar_select %p7620_p6, 1, 0 }
   0xd   : > { %p7625_p8 = pnand %p5358_p5, %p251_p7  ;;  %s269_s19 = sshll.u32 %s7525_s18, 4  ;;  %s7629_s19 = int_to_ptr.vmem [resolvable:$true] %s269_s19 }
   0xe   : > { %9106 = sst [smem:[#allocation13_spill]] %s9105_s16  ;;  %s7526_s21 = smov [#allocation8]  }
   0xf   : > { %p6435_p9 = pneg %p7625_p8  ;;  %s291_s22 = sshll.u32 %s7526_s21, 4  ;;  %s7640_s22 = int_to_ptr.vmem [resolvable:$true] %s291_s22 }
  0x10   : > { %s7367_s25 = scalar_lea.hbm %s9084_s3, 9216 }
  0x11   : > { %p7636_p11 = pnand %p6435_p9, %p9091_p1  ;;  %p7368_p12 = scmp.ne.s32.totalorder %s9084_s3, %s7367_s25 }
  0x12   : > { %p7374_p5 = scmp.lt.u32.totalorder %s7367_s25, %s9084_s3 }
  0x13   : > { %p7369_p13 = pneg %p7636_p11 }
  0x15   : > { %p7370_p0 = pnand %p7369_p13, %p7368_p12 }
  0x17   : > { %p7371_p3 = pneg %p7370_p0 }
  0x19   : > { %p7376_p7 = pnand %p7374_p5, %p7371_p3 }
  0x1b   : > { %7379 = shalt.err (!%p7376_p7)
}
  0x1c   : > { %s7380_s14 = scalar_lea.vmem %s7629_s19, 9216  ;;  %p7388_p2 = scmp.lt.s32.totalorder %s7629_s19, %s7629_s19 }
  0x1d   : > { %p7381_p9 = scmp.ne.s32.totalorder %s7629_s19, %s7380_s14  ;;  %p7389_p12 = scmp.lt.s32.totalorder %s7380_s14, %s7380_s14 }
  0x1f   : > { %p7383_p10 = pnand %p7381_p9, %p7369_p13  ;;  %p7390_p0 = por %p7389_p12, %p7388_p2 }
  0x21   : > { %p7384_p1 = pneg %p7383_p10 }
  0x23   : > { %p7391_p6 = pnand %p7390_p0, %p7384_p1 }
  0x25   : > { %7394 = shalt.err (!%p7391_p6)
}
  0x26   : > { %s7527_s18 = smov 64   ;;  %s7528_s21 = smov 4  }
  0x27   : > { %6438 = dma.hbm_to_vmem [thread:$0]  (!%p7636_p11), %s9084_s3, 9216, %s7629_s19, [#allocation7], %s7527_s18, %s7527_s18, %s7528_s21  }
  0x28   : > { %s7395_s27 = scalar_lea.hbm %s9088_s7, 9216 }
  0x29   : > { %p7396_p2 = scmp.ne.s32.totalorder %s9088_s7, %s7395_s27  ;;  %p7402_p10 = scmp.lt.u32.totalorder %s7395_s27, %s9088_s7 }
  0x2b   : > { %p7398_p1 = pnand %p7396_p2, %p7369_p13 }
  0x2d   : > { %p7399_p6 = pneg %p7398_p1 }
  0x2f   : > { %p7404_p3 = pnand %p7402_p10, %p7399_p6 }
  0x31   : > { %7407 = shalt.err (!%p7404_p3)
}
  0x32   : > { %s7408_s19 = scalar_lea.vmem %s7640_s22, 9216  ;;  %p7416_p12 = scmp.lt.s32.totalorder %s7640_s22, %s7640_s22 }
  0x33   : > { %p7409_p5 = scmp.ne.s32.totalorder %s7640_s22, %s7408_s19  ;;  %p7417_p0 = scmp.lt.s32.totalorder %s7408_s19, %s7408_s19 }
  0x35   : > { %p7411_p7 = pnand %p7409_p5, %p7369_p13  ;;  %p7418_p2 = por %p7417_p0, %p7416_p12 }
  0x37   : > { %p7412_p9 = pneg %p7411_p7 }
  0x39   : > { %p7419_p1 = pnand %p7418_p2, %p7412_p9 }
  0x3b   : > { %7422 = shalt.err (!%p7419_p1)
}
  0x3c   : > { %6441 = dma.hbm_to_vmem [thread:$0]  (!%p7636_p11), %s9088_s7, 9216, %s7640_s22, [#allocation7], %s7527_s18, %s7527_s18, %s7528_s21  }
  0x3d   : > { %s7695_s24 = sadd.s32 1, %s7523_s12   ;;  %s33_s20 = sadd.s32 1, %s7519_s11 }
  0x3e   : > { %s30_s25 = ssub.s32 %s7523_s12, %s7695_s24  ;;  %p40_p13 = scmp.ne.s32.totalorder %s7519_s11, %s7515_s10 }
  0x3f   : > { %p31_p6 = scmp.eq.s32.totalorder %s30_s25, 0  ;;  %p41_p10 = scmp.eq.s32.totalorder %s7523_s12, 0 }
  0x40   : > { %p9109_p3 = scmp.eq.s32.totalorder %s7606_s13, 1  ;;  %p6452_p7 = scmp.lt.s32.totalorder %s7523_s12, 2 }
  0x41   : > { %s7711_s27 = scalar_select %p31_p6, %s7519_s11, %s33_s20  }
  0x42   : > { %p7705_p5 = por %p9109_p3, %p40_p13  ;;  %p42_p9 = por %p41_p10, %p40_p13 }
  0x43   : > { %s308_s28 = sand.u32 1, %s7519_s11   ;;  %s5813_s22 = sshll.u32 %s7523_s12, 11 }
  0x44   : > { %s9110_s26 = scalar_select %p7705_p5, 1, 0 }
  0x45   : > { %s5362_s29 = sshll.u32 %s308_s28, 7  ;;  %s7718_s14 = scalar_lea.hbm %s9081_s0, %s5813_s22 }
  0x46   : > { %s312_s19 = scalar_lea.vmem [#allocation3], %s5362_s29  ;;  %p7722_p11 = pnand %p6452_p7, %p42_p9 }
  0x47   : > { %s319_s16 = sshll.u32 %s312_s19, 4  ;;  %s7726_s20 = scalar_lea.sflag [#allocation4], %s308_s28  ;;  %s7720_s16 = int_to_ptr.vmem [resolvable:$true] %s319_s16 }
  0x48   : > { %s7423_s25 = scalar_lea.hbm %s7718_s14, 2048  ;;  %p7425_p0 = pneg %p7722_p11 }
  0x49   : > { %p7424_p12 = scmp.ne.s32.totalorder %s7718_s14, %s7423_s25  ;;  %s7428_s18 = scalar_lea.hbm %s9081_s0, 4096 }
  0x4a   : > { %p7429_p13 = scmp.lt.u32.totalorder %s7718_s14, %s9081_s0  ;;  %p7430_p6 = scmp.lt.u32.totalorder %s7428_s18, %s7423_s25 }
  0x4b   : > { %p7426_p2 = pnand %p7425_p0, %p7424_p12  ;;  %p7432_p3 = scmp.lt.u32.totalorder %s7423_s25, %s7718_s14 }
  0x4c   : > { %p7431_p10 = por %p7430_p6, %p7429_p13 }
  0x4d   : > { %p7427_p1 = pneg %p7426_p2 }
  0x4e   : > { %p7433_p7 = por %p7432_p3, %p7431_p10 }
  0x50   : > { %p7434_p9 = pnand %p7433_p7, %p7427_p1 }
  0x52   : > { %7437 = shalt.err (!%p7434_p9)
}
  0x53   : > { %s7438_s28 = scalar_lea.vmem %s7720_s16, 2048  ;;  %s7529_s29 = smov [#allocation3]  }
  0x54   : > { %p7439_p12 = scmp.ne.s32.totalorder %s7720_s16, %s7438_s28  ;;  %s7443_s22 = sshll.u32 %s7529_s29, 4  ;;  %s7444_s22 = int_to_ptr.vmem [resolvable:$false] %s7443_s22 }
  0x55   : > { %s7445_s21 = scalar_lea.vmem %s7444_s22, 4096  ;;  %p7446_p4 = scmp.lt.s32.totalorder %s7720_s16, %s7444_s22 }
  0x56   : > { %p7441_p2 = pnand %p7439_p12, %p7425_p0  ;;  %p7447_p13 = scmp.lt.s32.totalorder %s7445_s21, %s7438_s28 }
  0x58   : > { %p7442_p5 = pneg %p7441_p2  ;;  %p7448_p6 = por %p7447_p13, %p7446_p4 }
  0x5a   : > { %p7449_p10 = pnand %p7448_p6, %p7442_p5 }
  0x5c   : > { %7452 = shalt.err (!%p7449_p10)
}
  0x5d   : > { %s7530_s25 = smov 128   ;;  %s7531_s18 = smov 8  }
  0x5e   : > { %6445 = dma.hbm_to_vmem [thread:$0]  (!%p7722_p11), %s7718_s14, 2048, %s7720_s16, %s7726_s20, %s7530_s25, %s7530_s25, %s7531_s18  }
  0x5f   : > { %331 = sbr.rel (%p7625_p8) target bundleno = 1431 (0x597), region = 56 }
  0x66   : > { %s7757_s19 = sand.u32 1, %s7515_s10   ;;  %p9112_p4 = scmp.ne.s32.totalorder %s9104_s15, 0 }
  0x67   : > { %s5366_s28 = sshll.u32 %s7757_s19, 7  ;;  %s334_s29 = scalar_lea.sflag [#allocation4], %s7757_s19 }
  0x68   : > { %s7763_s22 = scalar_lea.vmem [#allocation3], %s5366_s28 }
  0x69   : > { %7498 = dma.done.wait (%p9112_p4), %s334_s29, 2048  }
  0x6a   : > { %7500 = vsyncadd (%p9112_p4), %s334_s29, 4294965248  ;;  %p9113_p5 = scmp.eq.s32.totalorder %s7606_s13, 0 }
  0x6c   : > { %7502 = dma.done.wait (%p9113_p5), [#allocation7], 18432   ;;  %p9114_p8 = pmov %p9113_p5 }
  0x6d   : > { %v7774_v0 = vld [vmem:[%s7763_s22] sm:$0xff]  ;;  %v7777_v1 = vld [vmem:[%s7763_s22 + $0x8] sm:$0xff]  ;;  %v7786_v4 = vld [vmem:[%s7763_s22 + $0x10] sm:$0xff]  ;;  %s9002_s17 = scalar_lea.vmem [#allocation9], %s5366_s28  ;;  %s5814_s28 = sshll.u32 %s7606_s13, 11 }
  0x6e   : > { %7504 = vsyncadd (%p9114_p8), [#allocation7], 4294948864  ;;  %399 = vadd.xlane.f32.xlu0 %v7774_v0  ;;  %v447_v2 = vmul.f32 %v7774_v0, %v7774_v0  ;;  %v448_v3 = vmul.f32 %v7777_v1, %v7777_v1  ;;  %v7789_v5 = vld [vmem:[%s7763_s22 + $0x18] sm:$0xff]  ;;  %v449_v6 = vmul.f32 %v7786_v4, %v7786_v4  ;;  %v7798_v8 = vld [vmem:[%s7763_s22 + $0x20] sm:$0xff]  ;;  %s5265_s14 = sshll.u32 %s9002_s17, 4  ;;  %s9031_s20 = scalar_lea.hbm %s9090_s9, %s5814_s28  ;;  %s9033_s14 = int_to_ptr.vmem [resolvable:$true] %s5265_s14 }
  0x6f   : > { %v450_v7 = vmul.f32 %v7789_v5, %v7789_v5  ;;  %v7801_v9 = vld [vmem:[%s7763_s22 + $0x28] sm:$0xff]  ;;  %v451_v10 = vmul.f32 %v7798_v8, %v7798_v8  ;;  %v7810_v12 = vld [vmem:[%s7763_s22 + $0x30] sm:$0xff]  ;;  %v7813_v13 = vld [vmem:[%s7763_s22 + $0x38] sm:$0xff]  ;;  %s5252_s13 = scalar_lea.sflag [#allocation5], %s7757_s19  ;;  %s7453_s21 = scalar_lea.vmem %s9033_s14, 2048 }
  0x70   : > { %463 = vadd.xlane.f32.xlu1 %v447_v2  ;;  %v452_v11 = vmul.f32 %v7801_v9, %v7801_v9  ;;  %v453_v14 = vmul.f32 %v7810_v12, %v7810_v12  ;;  %v454_v15 = vmul.f32 %v7813_v13, %v7813_v13  ;;  %v7822_v16 = vld [vmem:[%s7763_s22 + $0x40] sm:$0xff]  ;;  %v7825_v17 = vld [vmem:[%s7763_s22 + $0x48] sm:$0xff]  ;;  %v7834_v22 = vld [vmem:[%s7763_s22 + $0x50] sm:$0xff]  ;;  %p7454_p11 = scmp.ne.s32.totalorder %s9033_s14, %s7453_s21  ;;  %p9150_p0 = scmp.ne.s32.totalorder %s9110_s26, 0 }
  0x71   : > { %v455_v18 = vmul.f32 %v7822_v16, %v7822_v16  ;;  %v456_v19 = vmul.f32 %v7825_v17, %v7825_v17  ;;  %v6496_v20 = vld [vmem:[#allocation6 + $0x40] sm:$0xff]   ;;  %v7837_v25 = vld [vmem:[%s7763_s22 + $0x58] sm:$0xff]  ;;  %v6500_v26 = vld [vmem:[#allocation6 + $0x48] sm:$0xff]   ;;  %v457_v30 = vmul.f32 %v7834_v22, %v7834_v22  ;;  %s7532_s25 = smov [#allocation9]  }
  0x72   : > { %401 = vadd.xlane.f32.xlu0 %v7777_v1  ;;  %v6498_v21 = vld [vmem:[#allocation6 + $0xc0] sm:$0xff]   ;;  %5815 = vmatprep.subr.bf16.mxu0 %v6496_v20  ;;  %v6502_v27 = vld [vmem:[#allocation6 + $0xc8] sm:$0xff]   ;;  %v458_v31 = vmul.f32 %v7837_v25, %v7837_v25  ;;  %v6504_v32 = vld [vmem:[#allocation6 + $0x50] sm:$0xff]   ;;  %p7455_p1 = pnand %p7454_p11, %p9150_p0  ;;  %s7457_s18 = sshll.u32 %s7532_s25, 4  ;;  %s7458_s18 = int_to_ptr.vmem [resolvable:$false] %s7457_s18 }
  0x73   : > { %v6497_v23 = vld [vmem:[#allocation6] sm:$0xff]   ;;  %5879 = vmatprep.subr.bf16.mxu1 %v6498_v21  ;;  %v6501_v28 = vld [vmem:[#allocation6 + $0x8] sm:$0xff]   ;;  %v6506_v33 = vld [vmem:[#allocation6 + $0xd0] sm:$0xff]   ;;  %s7459_s29 = scalar_lea.vmem %s7458_s18, 4096  ;;  %p7460_p7 = scmp.lt.s32.totalorder %s9033_s14, %s7458_s18 }
  0x74   : > { %465 = vadd.xlane.f32.xlu1 %v448_v3  ;;  %v6499_v24 = vld [vmem:[#allocation6 + $0x80] sm:$0xff]   ;;  %5816 = vmatpush3.bf16.msra.mxu0 %v6497_v23  ;;  %v6503_v29 = vld [vmem:[#allocation6 + $0x88] sm:$0xff]   ;;  %v6505_v35 = vld [vmem:[#allocation6 + $0x10] sm:$0xff]   ;;  %v5500_v3 = vmul.f32 -1.442695, %v7774_v0  ;;  %p7456_p3 = pneg %p7455_p1  ;;  %p7461_p9 = scmp.lt.s32.totalorder %s7459_s29, %s7453_s21 }
  0x75   : > { %5880 = vmatpush3.bf16.msra.mxu1 %v6499_v24  ;;  %5817 = vmatprep.subr.bf16.mxu0 %v6500_v26  ;;  %v7846_v34 = vld [vmem:[%s7763_s22 + $0x60] sm:$0xff]  ;;  %v6507_v36 = vld [vmem:[#allocation6 + $0x90] sm:$0xff]   ;;  %v7849_v37 = vld [vmem:[%s7763_s22 + $0x68] sm:$0xff]  ;;  %v5506_v23 = vmul.f32 -1.442695, %v7810_v12 }
  0x76   : > { %403 = vadd.xlane.f32.xlu0 %v7786_v4  ;;  %5881 = vmatprep.subr.bf16.mxu1 %v6502_v27  ;;  %v6508_v38 = vld [vmem:[#allocation6 + $0x58] sm:$0xff]   ;;  %v459_v42 = vmul.f32 %v7846_v34, %v7846_v34  ;;  %v460_v43 = vmul.f32 %v7849_v37, %v7849_v37  ;;  %v6512_v44 = vld [vmem:[#allocation6 + $0x60] sm:$0xff]   ;;  %v397_v46 = vld [vmem:[%s7763_s22 + $0x70] sm:$0xff]  ;;  %6640 = vpow2.f32 %v5500_v3  ;;  %p7462_p12 = por %p7461_p9, %p7460_p7 }
  0x77   : > { %v6510_v39 = vld [vmem:[#allocation6 + $0xd8] sm:$0xff]   ;;  %v6514_v45 = vld [vmem:[#allocation6 + $0xe0] sm:$0xff]   ;;  %v6516_v50 = vld [vmem:[#allocation6 + $0x68] sm:$0xff]   ;;  %v461_v54 = vmul.f32 %v397_v46, %v397_v46 }
  0x78   : > { %405 = vadd.xlane.f32.xlu1 %v7789_v5  ;;  %5818 = vmatpush3.bf16.msra.mxu0 %v6501_v28  ;;  %v6509_v40 = vld [vmem:[#allocation6 + $0x18] sm:$0xff]   ;;  %v6513_v47 = vld [vmem:[#allocation6 + $0x20] sm:$0xff]   ;;  %v6518_v51 = vld [vmem:[#allocation6 + $0xe8] sm:$0xff]   ;;  %v5507_v28 = vmul.f32 -1.442695, %v7813_v13  ;;  %p7463_p2 = pnand %p7462_p12, %p7456_p3 }
  0x79   : > { %5882 = vmatpush3.bf16.msra.mxu1 %v6503_v29  ;;  %5819 = vmatprep.subr.bf16.mxu0 %v6504_v32  ;;  %v6511_v41 = vld [vmem:[#allocation6 + $0x98] sm:$0xff]   ;;  %v6515_v48 = vld [vmem:[#allocation6 + $0xa0] sm:$0xff]   ;;  %v6517_v52 = vld [vmem:[#allocation6 + $0x28] sm:$0xff]   ;;  %v5508_v29 = vmul.f32 -1.442695, %v7822_v16 }
  0x7a   : > { %467 = vadd.xlane.f32.xlu0 %v449_v6  ;;  %5883 = vmatprep.subr.bf16.mxu1 %v6506_v33  ;;  %v398_v49 = vld [vmem:[%s7763_s22 + $0x78] sm:$0xff]  ;;  %v6519_v53 = vld [vmem:[#allocation6 + $0xa8] sm:$0xff]   ;;  %v6520_v56 = vld [vmem:[#allocation6 + $0x70] sm:$0xff]   ;;  %v5501_v6 = vmul.f32 -1.442695, %v7777_v1 }
  0x7b   : > { %v462_v55 = vmul.f32 %v398_v49, %v398_v49  ;;  %v6522_v57 = vld [vmem:[#allocation6 + $0xf0] sm:$0xff]   ;;  %v6524_v60 = vld [vmem:[#allocation6 + $0x78] sm:$0xff]   ;;  %v6528_v2 = vld [vmem:[#allocation6 + $0x140] sm:$0xff]  }
  0x7c   : > { %469 = vadd.xlane.f32.xlu1 %v450_v7  ;;  %5820 = vmatpush3.bf16.msra.mxu0 %v6505_v35  ;;  %v6521_v58 = vld [vmem:[#allocation6 + $0x30] sm:$0xff]   ;;  %v6526_v61 = vld [vmem:[#allocation6 + $0xf8] sm:$0xff]   ;;  %v5502_v7 = vmul.f32 -1.442695, %v7786_v4  ;;  %6642 = vpow2.f32 %v5501_v6  ;;  %v6538_v35 = vld [vmem:[#allocation6 + $0x1c0] sm:$0xff]  }
  0x7d   : > { %5884 = vmatpush3.bf16.msra.mxu1 %v6507_v36  ;;  %5821 = vmatprep.subr.bf16.mxu0 %v6508_v38  ;;  %v6523_v59 = vld [vmem:[#allocation6 + $0xb0] sm:$0xff]   ;;  %v6525_v62 = vld [vmem:[#allocation6 + $0x38] sm:$0xff]   ;;  %v5509_v36 = vmul.f32 -1.442695, %v7825_v17 }
  0x7e   : > { %407 = vadd.xlane.f32.xlu0 %v7798_v8  ;;  %5885 = vmatprep.subr.bf16.mxu1 %v6510_v39  ;;  %v6527_v63 = vld [vmem:[#allocation6 + $0xb8] sm:$0xff]   ;;  %6644 = vpow2.f32 %v5502_v7 }
  0x80   : > { %409 = vadd.xlane.f32.xlu1 %v7801_v9  ;;  %5822 = vmatpush3.bf16.msra.mxu0 %v6509_v40 }
  0x81   : > { %5886 = vmatpush3.bf16.msra.mxu1 %v6511_v41  ;;  %5823 = vmatprep.subr.bf16.mxu0 %v6512_v44  ;;  %v6641_v41 = vpop.eup %6640 }
  0x82   : > { %471 = vadd.xlane.f32.xlu0 %v451_v10  ;;  %5887 = vmatprep.subr.bf16.mxu1 %v6514_v45 }
  0x84   : > { %473 = vadd.xlane.f32.xlu1 %v452_v11  ;;  %5824 = vmatpush3.bf16.msra.mxu0 %v6513_v47  ;;  %v5503_v11 = vmul.f32 -1.442695, %v7789_v5 }
  0x85   : > { %5888 = vmatpush3.bf16.msra.mxu1 %v6515_v48  ;;  %5825 = vmatprep.subr.bf16.mxu0 %v6516_v50  ;;  %v5512_v48 = vmul.f32 -1.442695, %v7846_v34 }
  0x86   : > { %411 = vadd.xlane.f32.xlu0 %v7810_v12  ;;  %5889 = vmatprep.subr.bf16.mxu1 %v6518_v51  ;;  %6646 = vpow2.f32 %v5503_v11  ;;  %v6643_v45 = vpop.eup %6642  ;;  %v1597_v51 = vadd.f32 1.0, %v6641_v41 }
  0x88   : > { %413 = vadd.xlane.f32.xlu1 %v7813_v13  ;;  %5826 = vmatpush3.bf16.msra.mxu0 %v6517_v52  ;;  %v6645_v50 = vpop.eup %6644 }
  0x89   : > { %5890 = vmatpush3.bf16.msra.mxu1 %v6519_v53  ;;  %5827 = vmatprep.subr.bf16.mxu0 %v6520_v56 }
  0x8a   : > { %475 = vadd.xlane.f32.xlu0 %v453_v14  ;;  %5891 = vmatprep.subr.bf16.mxu1 %v6522_v57 }
  0x8c   : > { %477 = vadd.xlane.f32.xlu1 %v454_v15  ;;  %5828 = vmatpush3.bf16.msra.mxu0 %v6521_v58  ;;  %v5504_v15 = vmul.f32 -1.442695, %v7798_v8  ;;  %v1599_v58 = vadd.f32 1.0, %v6645_v50 }
  0x8d   : > { %5892 = vmatpush3.bf16.msra.mxu1 %v6523_v59  ;;  %5829 = vmatprep.subr.bf16.mxu0 %v6524_v60 }
  0x8e   : > { %415 = vadd.xlane.f32.xlu0 %v7822_v16  ;;  %5893 = vmatprep.subr.bf16.mxu1 %v6526_v61  ;;  %6648 = vpow2.f32 %v5504_v15 }
  0x90   : > { %417 = vadd.xlane.f32.xlu1 %v7825_v17  ;;  %5830 = vmatpush3.bf16.msra.mxu0 %v6525_v62  ;;  %v6647_v53 = vpop.eup %6646 }
  0x91   : > { %5894 = vmatpush3.bf16.msra.mxu1 %v6527_v63  ;;  %5943 = vmatprep.subr.bf16.mxu0 %v6528_v2  ;;  %v1600_v2 = vadd.f32 1.0, %v6647_v53 }
  0x92   : > { %479 = vadd.xlane.f32.xlu0 %v455_v18  ;;  %6007 = vmatprep.subr.bf16.mxu1 %v6538_v35 }
  0x94   : > { %481 = vadd.xlane.f32.xlu1 %v456_v19  ;;  %v5505_v19 = vmul.f32 -1.442695, %v7801_v9 }
  0x96   : > { %419 = vadd.xlane.f32.xlu0 %v7834_v22  ;;  %6650 = vpow2.f32 %v5505_v19 }
  0x97   : > { %6652 = vpow2.f32 %v5506_v23  ;;  %v7915_v23 = vld [vmem:[%s9083_s2] ss:$0 sm:$0xff] }
  0x98   : > { %421 = vadd.xlane.f32.xlu1 %v7837_v25  ;;  %v6649_v57 = vpop.eup %6648 }
  0x9a   : > { %483 = vadd.xlane.f32.xlu0 %v457_v30 }
  0x9c   : > { %485 = vadd.xlane.f32.xlu1 %v458_v31 }
  0x9e   : > { %423 = vadd.xlane.f32.xlu0 %v7846_v34 }
  0xa0   : > { %425 = vadd.xlane.f32.xlu1 %v7849_v37  ;;  %v7888_v34 = vpop.eup %6650 }
  0xa1   : > { %v7892_v63 = vpop.eup %6652 }
  0xa2   : > { %487 = vadd.xlane.f32.xlu0 %v459_v42  ;;  %v5510_v42 = vmul.f32 -1.442695, %v7834_v22  ;;  %v1598_v22 = vadd.f32 1.0, %v6643_v45 }
  0xa4   : > { %489 = vadd.xlane.f32.xlu1 %v460_v43  ;;  %v5511_v43 = vmul.f32 -1.442695, %v7837_v25 }
  0xa6   : > { %427 = vadd.xlane.f32.xlu0 %v397_v46 }
  0xa8   : > { %429 = vadd.xlane.f32.xlu1 %v398_v49 }
  0xaa   : > { %491 = vadd.xlane.f32.xlu0 %v461_v54 }
  0xac   : > { %493 = vadd.xlane.f32.xlu1 %v462_v55 }
  0xfb   : > { %v400_v10 = vpop.xlane.xlu0 %399 }
  0xfc   : > { %v7863_v14 = vmul.f32 0.03125, %v400_v10  ;;  %v7899_v10 = vld [vmem:[%s9082_s1] ss:$0 sm:$0xff] }
  0xfd   : > { %v464_v18 = vpop.xlane.xlu1 %463 }
  0xfe   : > { %v511_v20 = vmul.f32 %v7863_v14, %v7863_v14  ;;  %v495_v21 = vmul.f32 0.03125, %v464_v18  ;;  %v543_v3 = vsub.f32 %v7774_v0, %v7863_v14  ;;  %v7910_v14 = vmul.f32 -1.442695, %v7849_v37 }
  0xff   : > { %v402_v24 = vpop.xlane.xlu0 %401 }
 0x100   : > { %v527_v26 = vsub.f32 %v495_v21, %v511_v20  ;;  %v7870_v27 = vmul.f32 0.03125, %v402_v24 }
 0x101   : > { %v466_v30 = vpop.xlane.xlu1 %465 }
 0x102   : > { %v559_v31 = vadd.f32 1e-05, %v527_v26  ;;  %v512_v32 = vmul.f32 %v7870_v27, %v7870_v27  ;;  %v496_v33 = vmul.f32 0.03125, %v466_v30  ;;  %v544_v30 = vsub.f32 %v7777_v1, %v7870_v27 }
 0x103   : > { %v404_v38 = vpop.xlane.xlu0 %403 }
 0x104   : > { %6654 = vrsqrt.f32 %v559_v31  ;;  %v528_v39 = vsub.f32 %v496_v33, %v512_v32  ;;  %v7877_v40 = vmul.f32 0.03125, %v404_v38 }
 0x105   : > { %6656 = vpow2.f32 %v5507_v28  ;;  %v406_v44 = vpop.xlane.xlu1 %405  ;;  %v7919_v28 = vadd.f32 1.0, %v6649_v57 }
 0x106   : > { %6658 = vpow2.f32 %v5508_v29  ;;  %v560_v46 = vadd.f32 1e-05, %v528_v39  ;;  %v513_v47 = vmul.f32 %v7877_v40, %v7877_v40  ;;  %v7883_v17 = vmul.f32 0.03125, %v406_v44 }
 0x107   : > { %6660 = vpow2.f32 %v5509_v36  ;;  %v468_v49 = vpop.xlane.xlu0 %467  ;;  %v545_v32 = vsub.f32 %v7786_v4, %v7877_v40 }
 0x108   : > { %6662 = vrsqrt.f32 %v560_v46  ;;  %v497_v52 = vmul.f32 0.03125, %v468_v49  ;;  %v514_v54 = vmul.f32 %v7883_v17, %v7883_v17 }
 0x109   : > { %6664 = vpow2.f32 %v5510_v42  ;;  %v470_v25 = vpop.xlane.xlu1 %469  ;;  %v546_v42 = vsub.f32 %v7789_v5, %v7883_v17 }
 0x10a   : > { %6666 = vpow2.f32 %v5511_v43  ;;  %v529_v55 = vsub.f32 %v497_v52, %v513_v47  ;;  %v498_v56 = vmul.f32 0.03125, %v470_v25 }
 0x10b   : > { %6668 = vpow2.f32 %v5512_v48  ;;  %v408_v59 = vpop.xlane.xlu0 %407 }
 0x10c   : > { %6670 = vrcp.f32 %v1597_v51  ;;  %v561_v60 = vadd.f32 1e-05, %v529_v55  ;;  %v530_v61 = vsub.f32 %v498_v56, %v514_v54  ;;  %v7890_v62 = vmul.f32 0.03125, %v408_v59 }
 0x10d   : > { %6672 = vrcp.f32 %v1598_v22  ;;  %v410_v6 = vpop.xlane.xlu1 %409 }
 0x10e   : > { %v6655_v7 = vpop.eup %6654  ;;  %6674 = vrsqrt.f32 %v561_v60  ;;  %v562_v11 = vadd.f32 1e-05, %v530_v61  ;;  %v515_v15 = vmul.f32 %v7890_v62, %v7890_v62  ;;  %v7905_v20 = vmul.f32 0.03125, %v410_v6 }
 0x10f   : > { %v7903_v18 = vpop.eup %6656  ;;  %6676 = vrcp.f32 %v1599_v58  ;;  %v591_v19 = vmul.f32 %v6655_v7, %v543_v3  ;;  %v472_v21 = vpop.xlane.xlu0 %471  ;;  %v547_v1 = vsub.f32 %v7798_v8, %v7890_v62 }
 0x110   : > { %v7907_v0 = vpop.eup %6658  ;;  %6678 = vrsqrt.f32 %v562_v11  ;;  %v499_v24 = vmul.f32 0.03125, %v472_v21  ;;  %v516_v33 = vmul.f32 %v7905_v20, %v7905_v20  ;;  %v548_v4 = vsub.f32 %v7801_v9, %v7905_v20 }
 0x111   : > { %v7917_v26 = vpop.eup %6660  ;;  %6680 = vrcp.f32 %v1600_v2  ;;  %v614_v29 = vmul.f32 %v7899_v10, %v591_v19  ;;  %v474_v31 = vpop.xlane.xlu1 %473 }
 0x112   : > { %v6663_v37 = vpop.eup %6662  ;;  %v531_v35 = vsub.f32 %v499_v24, %v515_v15  ;;  %v500_v36 = vmul.f32 0.03125, %v474_v31 }
 0x113   : > { %v7928_v38 = vpop.eup %6664  ;;  %v7931_v39 = vadd.f32 %v7915_v23, %v614_v29  ;;  %v592_v41 = vmul.f32 %v6663_v37, %v544_v30  ;;  %v412_v27 = vpop.xlane.xlu0 %411 }
 0x114   : > { %v7937_v43 = vpop.eup %6666  ;;  %v563_v40 = vadd.f32 1e-05, %v531_v35  ;;  %v532_v44 = vsub.f32 %v500_v36, %v516_v33  ;;  %v7941_v45 = vmul.f32 0.03125, %v412_v27 }
 0x115   : > { %v7943_v46 = vpop.eup %6668  ;;  %v615_v47 = vmul.f32 %v7899_v10, %v592_v41  ;;  %v414_v48 = vpop.xlane.xlu1 %413  ;;  %v5388_v5 = vadd.f32 1.4285715, %v7931_v39  ;;  %v5420_v17 = vadd.f32 0.2857143, %v7931_v39  ;;  %v5372_v49 = vadd.f32 2.0, %v7931_v39 }
 0x116   : > { %v7949_v50 = vpop.eup %6670  ;;  %6682 = vrsqrt.f32 %v563_v40  ;;  %v564_v51 = vadd.f32 1e-05, %v532_v44  ;;  %v517_v52 = vmul.f32 %v7941_v45, %v7941_v45  ;;  %v549_v22 = vsub.f32 %v7810_v12, %v7941_v45 }
 0x117   : > { %v7955_v25 = vpop.eup %6672  ;;  %v7958_v53 = vadd.f32 %v7915_v23, %v615_v47  ;;  %v7960_v54 = vmul.f32 0.03125, %v414_v48  ;;  %v476_v55 = vpop.xlane.xlu0 %475  ;;  %v781_v56 = vmul.f32 1.75, %v5388_v5  ;;  %v1005_v57 = vmul.f32 1.75, %v5420_v17 }
 0x118   : > { %v6675_v58 = vpop.eup %6674  ;;  %6684 = vrsqrt.f32 %v564_v51  ;;  %v501_v59 = vmul.f32 0.03125, %v476_v55  ;;  %v7962_v60 = vmul.f32 1.75, %v5372_v49  ;;  %v7965_v61 = vadd.f32 0.85714287, %v7931_v39 }
 0x119   : > { %v7967_v2 = vpop.eup %6676  ;;  %v593_v3 = vmul.f32 %v6675_v58, %v545_v32  ;;  %v518_v6 = vmul.f32 %v7960_v54, %v7960_v54  ;;  %v550_v7 = vsub.f32 %v7813_v13, %v7960_v54  ;;  %v478_v11 = vpop.xlane.xlu1 %477  ;;  %v5389_v15 = vadd.f32 1.4285715, %v7958_v53 }
 0x11a   : > { %v6679_v19 = vpop.eup %6678  ;;  %v533_v21 = vsub.f32 %v501_v59, %v517_v52  ;;  %v502_v24 = vmul.f32 0.03125, %v478_v11  ;;  %v797_v29 = vmul.f32 %v781_v56, %v781_v56  ;;  %v5421_v30 = vadd.f32 0.2857143, %v7958_v53 }
 0x11b   : > { %v7975_v31 = vpop.eup %6680  ;;  %v616_v37 = vmul.f32 %v7899_v10, %v593_v3  ;;  %v594_v32 = vmul.f32 %v6679_v19, %v546_v42  ;;  %v416_v33 = vpop.xlane.xlu0 %415  ;;  %v782_v35 = vmul.f32 1.75, %v5389_v15  ;;  %v1021_v36 = vmul.f32 %v1005_v57, %v1005_v57 }
 0x11c   : > { %v565_v41 = vadd.f32 1e-05, %v533_v21  ;;  %v534_v27 = vsub.f32 %v502_v24, %v518_v6  ;;  %v7978_v40 = vmul.f32 0.03125, %v416_v33  ;;  %v813_v44 = vsub.f32 0.0, %v797_v29  ;;  %v7999_v24 = vld [vmem:[%s7763_s22 + $0x48] sm:$0xff] }
 0x11d   : > { %v7981_v47 = vadd.f32 %v7915_v23, %v616_v37  ;;  %v617_v48 = vmul.f32 %v7899_v10, %v594_v32  ;;  %v418_v5 = vpop.xlane.xlu1 %417  ;;  %v798_v17 = vmul.f32 %v782_v35, %v782_v35  ;;  %v1006_v49 = vmul.f32 1.75, %v5421_v30 }
 0x11e   : > { %6686 = vrsqrt.f32 %v565_v41  ;;  %v566_v51 = vadd.f32 1e-05, %v534_v27  ;;  %v519_v42 = vmul.f32 %v7978_v40, %v7978_v40  ;;  %v551_v52 = vsub.f32 %v7822_v16, %v7978_v40 }
 0x11f   : > { %v7989_v55 = vadd.f32 %v7915_v23, %v617_v48  ;;  %v7991_v56 = vmul.f32 0.03125, %v418_v5  ;;  %v480_v57 = vpop.xlane.xlu0 %479  ;;  %v814_v58 = vsub.f32 0.0, %v798_v17  ;;  %v829_v59 = vmul.f32 1.442695, %v813_v44 }
 0x120   : > { %v6683_v3 = vpop.eup %6682  ;;  %6688 = vrsqrt.f32 %v566_v51  ;;  %v503_v6 = vmul.f32 0.03125, %v480_v57  ;;  %v1022_v11 = vmul.f32 %v1006_v49, %v1006_v49  ;;  %v1037_v15 = vsub.f32 0.0, %v1021_v36 }
 0x121   : > { %v595_v19 = vmul.f32 %v6683_v3, %v547_v1  ;;  %v520_v21 = vmul.f32 %v7991_v56, %v7991_v56  ;;  %v552_v29 = vsub.f32 %v7999_v24, %v7991_v56  ;;  %v482_v30 = vpop.xlane.xlu1 %481  ;;  %6690 = vpow2.f32 %v829_v59 }
 0x122   : > { %v6685_v37 = vpop.eup %6684  ;;  %v535_v32 = vsub.f32 %v503_v6, %v519_v42  ;;  %v504_v33 = vmul.f32 0.03125, %v482_v30  ;;  %v831_v35 = vmul.f32 1.442695, %v814_v58  ;;  %v1038_v41 = vsub.f32 0.0, %v1022_v11 }
 0x123   : > { %v618_v36 = vmul.f32 %v7899_v10, %v595_v19  ;;  %v596_v8 = vmul.f32 %v6685_v37, %v548_v4  ;;  %v420_v62 = vpop.xlane.xlu0 %419  ;;  %v1053_v1 = vmul.f32 1.442695, %v1037_v15  ;;  %v5373_v27 = vadd.f32 2.0, %v7958_v53  ;;  %v8017_v4 = vld [vmem:[%s7763_s22 + $0x50] sm:$0xff] }
 0x124   : > { %v567_v44 = vadd.f32 1e-05, %v535_v32  ;;  %v536_v48 = vsub.f32 %v504_v33, %v520_v21  ;;  %v8008_v5 = vmul.f32 0.03125, %v420_v62  ;;  %6692 = vpow2.f32 %v831_v35  ;;  %v8035_v32 = vld [vmem:[%s7763_s22 + $0x58] sm:$0xff] }
 0x125   : > { %v8011_v17 = vadd.f32 %v7915_v23, %v618_v36  ;;  %v619_v49 = vmul.f32 %v7899_v10, %v596_v8  ;;  %v422_v51 = vpop.xlane.xlu1 %421  ;;  %6694 = vpow2.f32 %v1053_v1  ;;  %v1055_v42 = vmul.f32 1.442695, %v1038_v41 }
 0x126   : > { %6696 = vrsqrt.f32 %v567_v44  ;;  %v568_v9 = vadd.f32 1e-05, %v536_v48  ;;  %v521_v20 = vmul.f32 %v8008_v5, %v8008_v5  ;;  %v553_v57 = vsub.f32 %v8017_v4, %v8008_v5  ;;  %v6529_v5 = vld [vmem:[#allocation6 + $0x100] sm:$0xff]  }
 0x127   : > { %v8022_v58 = vadd.f32 %v7915_v23, %v619_v49  ;;  %v8024_v59 = vmul.f32 0.03125, %v422_v51  ;;  %v484_v3 = vpop.xlane.xlu0 %483  ;;  %6698 = vpow2.f32 %v1055_v42  ;;  %v670_v6 = vmul.f32 1.75, %v5373_v27 }
 0x128   : > { %v6687_v11 = vpop.eup %6686  ;;  %6700 = vrsqrt.f32 %v568_v9  ;;  %v505_v15 = vmul.f32 0.03125, %v484_v3  ;;  %v685_v19 = vmul.f32 %v7962_v60, %v7962_v60  ;;  %v5405_v21 = vadd.f32 0.85714287, %v7958_v53 }
 0x129   : > { %v597_v30 = vmul.f32 %v6687_v11, %v549_v22  ;;  %v522_v37 = vmul.f32 %v8024_v59, %v8024_v59  ;;  %v554_v33 = vsub.f32 %v8035_v32, %v8024_v59  ;;  %v486_v35 = vpop.xlane.xlu1 %485  ;;  %v686_v41 = vmul.f32 %v670_v6, %v670_v6 }
 0x12a   : > { %v6689_v36 = vpop.eup %6688  ;;  %v537_v8 = vsub.f32 %v505_v15, %v521_v20  ;;  %v506_v62 = vmul.f32 0.03125, %v486_v35  ;;  %v701_v60 = vsub.f32 0.0, %v685_v19  ;;  %v893_v1 = vmul.f32 1.75, %v7965_v61 }
 0x12b   : > { %v6691_v27 = vpop.eup %6690  ;;  %v620_v12 = vmul.f32 %v7899_v10, %v597_v30  ;;  %v598_v45 = vmul.f32 %v6689_v36, %v550_v7  ;;  %v424_v22 = vpop.xlane.xlu0 %423  ;;  %v702_v44 = vsub.f32 0.0, %v686_v41  ;;  %v894_v48 = vmul.f32 1.75, %v5405_v21  ;;  %v8053_v7 = vld [vmem:[%s7763_s22 + $0x60] sm:$0xff] }
 0x12c   : > { %v569_v49 = vadd.f32 1e-05, %v537_v8  ;;  %v538_v51 = vsub.f32 %v506_v62, %v522_v37  ;;  %v8044_v42 = vmul.f32 0.03125, %v424_v22  ;;  %v717_v9 = vmul.f32 1.442695, %v701_v60  ;;  %v8068_v22 = vld [vmem:[%s7763_s22 + $0x68] sm:$0xff] }
 0x12d   : > { %v8047_v20 = vadd.f32 %v7915_v23, %v620_v12  ;;  %v621_v61 = vmul.f32 %v7899_v10, %v598_v45  ;;  %v426_v3 = vpop.xlane.xlu1 %425  ;;  %v719_v6 = vmul.f32 1.442695, %v702_v44  ;;  %v909_v11 = vmul.f32 %v893_v1, %v893_v1 }
 0x12e   : > { %v6693_v15 = vpop.eup %6692  ;;  %6702 = vrsqrt.f32 %v569_v49  ;;  %v570_v13 = vadd.f32 1e-05, %v538_v51  ;;  %v523_v54 = vmul.f32 %v8044_v42, %v8044_v42  ;;  %v555_v19 = vsub.f32 %v8053_v7, %v8044_v42  ;;  %v6533_v42 = vld [vmem:[#allocation6 + $0x110] sm:$0xff]  }
 0x12f   : > { %v6695_v21 = vpop.eup %6694  ;;  %v8058_v30 = vadd.f32 %v7915_v23, %v621_v61  ;;  %v8060_v37 = vmul.f32 0.03125, %v426_v3  ;;  %v488_v35 = vpop.xlane.xlu0 %487  ;;  %v861_v41 = vpack.c.bf16 %v6693_v15, %v6691_v27  ;;  %6704 = vpow2.f32 %v717_v9 }
 0x130   : > { %v6697_v36 = vpop.eup %6696  ;;  %6706 = vrsqrt.f32 %v570_v13  ;;  %v507_v8 = vmul.f32 0.03125, %v488_v35  ;;  %v910_v62 = vmul.f32 %v894_v48, %v894_v48  ;;  %v925_v60 = vsub.f32 0.0, %v909_v11 }
 0x131   : > { %v6699_v1 = vpop.eup %6698  ;;  %v599_v12 = vmul.f32 %v6697_v36, %v551_v52  ;;  %v524_v45 = vmul.f32 %v8060_v37, %v8060_v37  ;;  %v556_v44 = vsub.f32 %v8068_v22, %v8060_v37  ;;  %2364 = vmatprep.mubr.bf16.mxu0 %v861_v41  ;;  %6708 = vpow2.f32 %v719_v6  ;;  %v490_v27 = vpop.xlane.xlu1 %489  ;;  %v8087_v41 = vld [vmem:[%s7763_s22 + $0x70] sm:$0xff] }
 0x132   : > { %v6701_v49 = vpop.eup %6700  ;;  %v539_v51 = vsub.f32 %v507_v8, %v523_v54  ;;  %v1085_v48 = vpack.c.bf16 %v6699_v1, %v6695_v21  ;;  %v926_v9 = vsub.f32 0.0, %v910_v62  ;;  %v941_v61 = vmul.f32 1.442695, %v925_v60  ;;  %v6544_v22 = vld [vmem:[#allocation6 + $0x1d0] sm:$0xff]  }
 0x133   : > { %v622_v3 = vmul.f32 %v7899_v10, %v599_v12  ;;  %v600_v16 = vmul.f32 %v6701_v49, %v552_v29  ;;  %v508_v40 = vmul.f32 0.03125, %v490_v27  ;;  %v428_v52 = vpop.xlane.xlu0 %427  ;;  %v5390_v11 = vadd.f32 1.4285715, %v7981_v47  ;;  %v8101_v49 = vld [vmem:[%s7763_s22 + $0x78] sm:$0xff] }
 0x134   : > { %v571_v15 = vadd.f32 1e-05, %v539_v51  ;;  %2461 = vmatprep.mubr.bf16.mxu1 %v1085_v48  ;;  %6710 = vpow2.f32 %v941_v61  ;;  %v943_v6 = vmul.f32 1.442695, %v926_v9  ;;  %v8077_v13 = vmul.f32 0.03125, %v428_v52 }
 0x135   : > { %v8080_v54 = vadd.f32 %v7915_v23, %v622_v3  ;;  %v623_v21 = vmul.f32 %v7899_v10, %v600_v16  ;;  %v540_v35 = vsub.f32 %v508_v40, %v524_v45  ;;  %v430_v56 = vpop.xlane.xlu1 %429  ;;  %v5391_v24 = vadd.f32 1.4285715, %v7989_v55 }
 0x136   : > { %6712 = vrsqrt.f32 %v571_v15  ;;  %v525_v29 = vmul.f32 %v8077_v13, %v8077_v13  ;;  %v8091_v8 = vmul.f32 0.03125, %v430_v56  ;;  %v783_v12 = vmul.f32 1.75, %v5390_v11 }
 0x137   : > { %v8094_v62 = vadd.f32 %v7915_v23, %v623_v21  ;;  %6714 = vpow2.f32 %v943_v6  ;;  %v572_v60 = vadd.f32 1e-05, %v540_v35  ;;  %v492_v1 = vpop.xlane.xlu0 %491  ;;  %v784_v9 = vmul.f32 1.75, %v5391_v24 }
 0x138   : > { %v6703_v45 = vpop.eup %6702  ;;  %v8098_v27 = vmul.f32 %v8091_v8, %v8091_v8  ;;  %v509_v48 = vmul.f32 0.03125, %v492_v1  ;;  %v799_v16 = vmul.f32 %v783_v12, %v783_v12  ;;  %v5422_v40 = vadd.f32 0.2857143, %v7981_v47 }
 0x139   : > { %v6705_v61 = vpop.eup %6704  ;;  %v601_v3 = vmul.f32 %v6703_v45, %v553_v57  ;;  %6716 = vrsqrt.f32 %v572_v60  ;;  %v800_v15 = vmul.f32 %v784_v9, %v784_v9  ;;  %v5423_v6 = vadd.f32 0.2857143, %v7989_v55 }
 0x13a   : > { %v6707_v52 = vpop.eup %6706  ;;  %v541_v11 = vsub.f32 %v509_v48, %v525_v29  ;;  %v5374_v21 = vadd.f32 2.0, %v7981_v47  ;;  %v815_v4 = vsub.f32 0.0, %v799_v16  ;;  %v1007_v57 = vmul.f32 1.75, %v5422_v40  ;;  %v6530_v29 = vld [vmem:[#allocation6 + $0x148] sm:$0xff]  }
 0x13b   : > { %v6709_v35 = vpop.eup %6708  ;;  %v624_v56 = vmul.f32 %v7899_v10, %v601_v3  ;;  %v602_v24 = vmul.f32 %v6707_v52, %v554_v33  ;;  %v816_v12 = vsub.f32 0.0, %v800_v15  ;;  %v1008_v45 = vmul.f32 1.75, %v5423_v6  ;;  %v6531_v52 = vld [vmem:[#allocation6 + $0x108] sm:$0xff]  }
 0x13c   : > { %v749_v60 = vpack.c.bf16 %v6709_v35, %v6705_v61  ;;  %v573_v1 = vadd.f32 1e-05, %v541_v11  ;;  %v833_v51 = vmul.f32 1.442695, %v815_v4  ;;  %v1023_v36 = vmul.f32 %v1007_v57, %v1007_v57 }
 0x13d   : > { %v8116_v48 = vadd.f32 %v7915_v23, %v624_v56  ;;  %v625_v9 = vmul.f32 %v7899_v10, %v602_v24  ;;  %v835_v59 = vmul.f32 1.442695, %v816_v12  ;;  %v1024_v32 = vmul.f32 %v1008_v45, %v1008_v45  ;;  %v6532_v56 = vld [vmem:[#allocation6 + $0x150] sm:$0xff]   ;;  %v494_v45 = vpop.xlane.xlu1 %493 }
 0x13e   : > { %v6711_v3 = vpop.eup %6710  ;;  %2365 = vmatmul.mubr.bf16.vlgmr.msra.gmra.mrb[0].mxu0 %v749_v60  ;;  %6718 = vrsqrt.f32 %v573_v1  ;;  %v5375_v33 = vadd.f32 2.0, %v7989_v55  ;;  %v1039_v16 = vsub.f32 0.0, %v1023_v36  ;;  %v671_v40 = vmul.f32 1.75, %v5374_v21  ;;  %v6539_v36 = vld [vmem:[#allocation6 + $0x180] sm:$0xff]  }
 0x13f   : > { %v8121_v61 = vadd.f32 %v7915_v23, %v625_v9  ;;  %5944 = vmatpush3.bf16.msra.mxu0 %v6529_v5  ;;  %6720 = vpow2.f32 %v833_v51  ;;  %v1040_v15 = vsub.f32 0.0, %v1024_v32  ;;  %v5406_v35 = vadd.f32 0.85714287, %v7981_v47 }
 0x140   : > { %v6713_v11 = vpop.eup %6712  ;;  %6722 = vpow2.f32 %v835_v59  ;;  %5945 = vmatprep.subr.bf16.mxu0 %v6530_v29  ;;  %v672_v6 = vmul.f32 1.75, %v5375_v33  ;;  %v1057_v57 = vmul.f32 1.442695, %v1039_v16  ;;  %v687_v60 = vmul.f32 %v671_v40, %v671_v40  ;;  %v6540_v29 = vld [vmem:[#allocation6 + $0x1c8] sm:$0xff]   ;;  %v6534_v16 = vld [vmem:[#allocation6 + $0x158] sm:$0xff]  }
 0x141   : > { %v6715_v24 = vpop.eup %6714  ;;  %v603_v4 = vmul.f32 %v6713_v11, %v555_v19  ;;  %v5407_v51 = vadd.f32 0.85714287, %v7989_v55  ;;  %v1059_v5 = vmul.f32 1.442695, %v1040_v15  ;;  %v895_v12 = vmul.f32 1.75, %v5406_v35  ;;  %v6541_v35 = vld [vmem:[#allocation6 + $0x188] sm:$0xff]  }
 0x142   : > { %v973_v21 = vpack.c.bf16 %v6715_v24, %v6711_v3  ;;  %v688_v1 = vmul.f32 %v672_v6, %v672_v6  ;;  %6724 = vpow2.f32 %v1057_v57  ;;  %v703_v32 = vsub.f32 0.0, %v687_v60  ;;  %v6535_v60 = vld [vmem:[#allocation6 + $0x118] sm:$0xff]  }
 0x143   : > { %v6717_v9 = vpop.eup %6716  ;;  %v626_v59 = vmul.f32 %v7899_v10, %v603_v4  ;;  %v896_v33 = vmul.f32 1.75, %v5407_v51  ;;  %5946 = vmatpush3.bf16.msra.mxu0 %v6531_v52  ;;  %6726 = vpow2.f32 %v1059_v5  ;;  %v911_v3 = vmul.f32 %v895_v12, %v895_v12 }
 0x144   : > { %2462 = vmatmul.mubr.bf16.vlgmr.msra.gmra.mrb[0].mxu1 %v973_v21  ;;  %v604_v7 = vmul.f32 %v6717_v9, %v556_v44  ;;  %v704_v19 = vsub.f32 0.0, %v688_v1  ;;  %5947 = vmatprep.subr.bf16.mxu0 %v6532_v56  ;;  %v721_v11 = vmul.f32 1.442695, %v703_v32  ;;  %v510_v6 = vmul.f32 0.03125, %v494_v45  ;;  %v6536_v1 = vld [vmem:[#allocation6 + $0x160] sm:$0xff]   ;;  %v6545_v32 = vld [vmem:[#allocation6 + $0x190] sm:$0xff]  }
 0x145   : > { %v8133_v40 = vadd.f32 %v7915_v23, %v626_v59  ;;  %v912_v15 = vmul.f32 %v896_v33, %v896_v33  ;;  %6008 = vmatpush3.bf16.msra.mxu1 %v6539_v36  ;;  %v927_v4 = vsub.f32 0.0, %v911_v3  ;;  %v5392_v37 = vadd.f32 1.4285715, %v8011_v17  ;;  %v6546_v3 = vld [vmem:[#allocation6 + $0x1d8] sm:$0xff]  }
 0x146   : > { %v627_v52 = vmul.f32 %v7899_v10, %v604_v7  ;;  %v723_v24 = vmul.f32 1.442695, %v704_v19  ;;  %6009 = vmatprep.subr.bf16.mxu1 %v6540_v29  ;;  %6728 = vpow2.f32 %v721_v11  ;;  %v542_v56 = vsub.f32 %v510_v6, %v8098_v27 }
 0x147   : > { %v928_v44 = vsub.f32 0.0, %v912_v15  ;;  %v5393_v57 = vadd.f32 1.4285715, %v8022_v58  ;;  %5948 = vmatpush3.bf16.msra.mxu0 %v6533_v42  ;;  %v945_v21 = vmul.f32 1.442695, %v927_v4  ;;  %v785_v5 = vmul.f32 1.75, %v5392_v37 }
 0x148   : > { %v6719_v51 = vpop.eup %6718  ;;  %v8140_v36 = vadd.f32 %v7915_v23, %v627_v52  ;;  %6730 = vpow2.f32 %v723_v24  ;;  %5949 = vmatprep.subr.bf16.mxu0 %v6534_v16  ;;  %v9115_v45 = vsub.f32 %v8087_v41, %v8077_v13  ;;  %v574_v27 = vadd.f32 1e-05, %v542_v56  ;;  %v6537_v41 = vld [vmem:[#allocation6 + $0x120] sm:$0xff]   ;;  %v6542_v52 = vld [vmem:[#allocation6 + $0x168] sm:$0xff]   ;;  %v6547_v56 = vld [vmem:[#allocation6 + $0x198] sm:$0xff]  }
 0x149   : > { %v6721_v12 = vpop.eup %6720  ;;  %v947_v9 = vmul.f32 1.442695, %v928_v44  ;;  %v786_v59 = vmul.f32 1.75, %v5393_v57  ;;  %6010 = vmatpush3.bf16.msra.mxu1 %v6541_v35  ;;  %6732 = vpow2.f32 %v945_v21  ;;  %v801_v42 = vmul.f32 %v785_v5, %v785_v5 }
 0x14a   : > { %v605_v29 = vmul.f32 %v6719_v51, %v9115_v45  ;;  %v6723_v33 = vpop.eup %6722  ;;  %v5424_v7 = vadd.f32 0.2857143, %v8011_v17  ;;  %v5425_v19 = vadd.f32 0.2857143, %v8022_v58  ;;  %6011 = vmatprep.subr.bf16.mxu1 %v6544_v22  ;;  %v5376_v22 = vadd.f32 2.0, %v8011_v17 }
 0x14b   : > { %v862_v11 = vpack.c.bf16 %v6723_v33, %v6721_v12  ;;  %6734 = vpow2.f32 %v947_v9  ;;  %v802_v13 = vmul.f32 %v786_v59, %v786_v59  ;;  %5950 = vmatpush3.bf16.msra.mxu0 %v6535_v60  ;;  %v817_v15 = vsub.f32 0.0, %v801_v42  ;;  %v6548_v42 = vld [vmem:[#allocation6 + $0x170] sm:$0xff]  }
 0x14c   : > { %v628_v16 = vmul.f32 %v7899_v10, %v605_v29  ;;  %6736 = vrsqrt.f32 %v574_v27  ;;  %v1009_v6 = vmul.f32 1.75, %v5424_v7  ;;  %v1010_v35 = vmul.f32 1.75, %v5425_v19  ;;  %5951 = vmatprep.subr.bf16.mxu0 %v6536_v1  ;;  %v6725_v24 = vpop.eup %6724  ;;  %v6550_v1 = vld [vmem:[#allocation6 + $0x1e0] sm:$0xff]   ;;  %v6543_v27 = vld [vmem:[#allocation6 + $0x128] sm:$0xff]  }
 0x14d   : > { %2372 = vmatprep.mubr.bf16.mxu0 %v862_v11  ;;  %v818_v37 = vsub.f32 0.0, %v802_v13  ;;  %v5377_v44 = vadd.f32 2.0, %v8022_v58  ;;  %6012 = vmatpush3.bf16.msra.mxu1 %v6545_v32  ;;  %v6727_v57 = vpop.eup %6726  ;;  %v837_v60 = vmul.f32 1.442695, %v817_v15  ;;  %v5408_v5 = vadd.f32 0.85714287, %v8011_v17 }
 0x14e   : > { %v8149_v4 = vadd.f32 %v7915_v23, %v628_v16  ;;  %v1025_v51 = vmul.f32 %v1009_v6, %v1009_v6  ;;  %v1026_v21 = vmul.f32 %v1010_v35, %v1010_v35  ;;  %6013 = vmatprep.subr.bf16.mxu1 %v6546_v3  ;;  %v1086_v12 = vpack.c.bf16 %v6727_v57, %v6725_v24  ;;  %v6551_v11 = vld [vmem:[#allocation6 + $0x1a0] sm:$0xff]   ;;  %v6552_v13 = vld [vmem:[#allocation6 + $0x1e8] sm:$0xff]   ;;  %v6549_v57 = vld [vmem:[#allocation6 + $0x130] sm:$0xff]  }
 0x14f   : > { %v839_v45 = vmul.f32 1.442695, %v818_v37  ;;  %v673_v29 = vmul.f32 1.75, %v5376_v22  ;;  %v674_v9 = vmul.f32 1.75, %v5377_v44  ;;  %5952 = vmatpush3.bf16.msra.mxu0 %v6537_v41  ;;  %6738 = vpow2.f32 %v837_v60 }
 0x150   : > { %v1041_v59 = vsub.f32 0.0, %v1025_v51  ;;  %v1042_v33 = vsub.f32 0.0, %v1026_v21  ;;  %v5409_v32 = vadd.f32 0.85714287, %v8022_v58  ;;  %5953 = vmatprep.subr.bf16.mxu0 %v6542_v52  ;;  %v6729_v7 = vpop.eup %6728  ;;  %2469 = vmatprep.mubr.bf16.mxu1 %v1086_v12  ;;  %v897_v3 = vmul.f32 1.75, %v5408_v5  ;;  %v6554_v5 = vld [vmem:[#allocation6 + $0x178] sm:$0xff]  }
 0x151   : > { %6740 = vpow2.f32 %v839_v45  ;;  %v689_v19 = vmul.f32 %v673_v29, %v673_v29  ;;  %v690_v16 = vmul.f32 %v674_v9, %v674_v9  ;;  %6014 = vmatpush3.bf16.msra.mxu1 %v6547_v56  ;;  %v5378_v24 = vadd.f32 2.0, %v8047_v20  ;;  %v6553_v9 = vld [vmem:[#allocation6 + $0x1a8] sm:$0xff]  }
 0x152   : > { %v6731_v15 = vpop.eup %6730  ;;  %v1061_v6 = vmul.f32 1.442695, %v1041_v59  ;;  %v1063_v41 = vmul.f32 1.442695, %v1042_v33  ;;  %v898_v35 = vmul.f32 1.75, %v5409_v32  ;;  %6015 = vmatprep.subr.bf16.mxu1 %v6550_v1  ;;  %v913_v44 = vmul.f32 %v897_v3, %v897_v3 }
 0x153   : > { %v750_v37 = vpack.c.bf16 %v6731_v15, %v6729_v7  ;;  %v705_v22 = vsub.f32 0.0, %v689_v19  ;;  %v706_v52 = vsub.f32 0.0, %v690_v16  ;;  %5954 = vmatpush3.bf16.msra.mxu0 %v6543_v27  ;;  %v6733_v60 = vpop.eup %6732  ;;  %v5394_v56 = vadd.f32 1.4285715, %v8047_v20  ;;  %v6556_v19 = vld [vmem:[#allocation6 + $0x1f0] sm:$0xff]  }
 0x154   : > { %6742 = vpow2.f32 %v1061_v6  ;;  %v914_v51 = vmul.f32 %v898_v35, %v898_v35  ;;  %v5395_v21 = vadd.f32 1.4285715, %v8058_v30  ;;  %5955 = vmatprep.subr.bf16.mxu0 %v6548_v42  ;;  %v929_v29 = vsub.f32 0.0, %v913_v44  ;;  %v6555_v6 = vld [vmem:[#allocation6 + $0x138] sm:$0xff]  }
 0x155   : > { %v6735_v12 = vpop.eup %6734  ;;  %2373 = vmatmul.mubr.bf16.gmra.mrb[4].mxu0 %v750_v37  ;;  %6744 = vpow2.f32 %v1063_v41  ;;  %v725_v45 = vmul.f32 1.442695, %v705_v22  ;;  %v727_v1 = vmul.f32 1.442695, %v706_v52  ;;  %6016 = vmatpush3.bf16.msra.mxu1 %v6551_v11  ;;  %v787_v32 = vmul.f32 1.75, %v5394_v56  ;;  %v8162_v37 = vld [vmem:[#allocation6 + $0x200] sm:$0xff]  }
 0x156   : > { %v6737_v59 = vpop.eup %6736  ;;  %v974_v27 = vpack.c.bf16 %v6735_v12, %v6733_v60  ;;  %v930_v33 = vsub.f32 0.0, %v914_v51  ;;  %v788_v7 = vmul.f32 1.75, %v5395_v21  ;;  %6017 = vmatprep.subr.bf16.mxu1 %v6552_v13  ;;  %v9116_v16 = vsub.f32 %v8101_v49, %v8091_v8  ;;  %v6557_v22 = vld [vmem:[#allocation6 + $0x1b0] sm:$0xff]   ;;  %v6558_v51 = vld [vmem:[#allocation6 + $0x1f8] sm:$0xff]  }
 0x157   : > { %6746 = vpow2.f32 %v725_v45  ;;  %v949_v3 = vmul.f32 1.442695, %v929_v29  ;;  %v5426_v15 = vadd.f32 0.2857143, %v8047_v20  ;;  %5956 = vmatpush3.bf16.msra.mxu0 %v6549_v57  ;;  %v803_v41 = vmul.f32 %v787_v32, %v787_v32 }
 0x158   : > { %v606_v42 = vmul.f32 %v6737_v59, %v9116_v16  ;;  %2470 = vmatmul.mubr.bf16.gmra.mrb[4].mxu1 %v974_v27  ;;  %6748 = vpow2.f32 %v727_v1  ;;  %v951_v11 = vmul.f32 1.442695, %v930_v33  ;;  %v804_v35 = vmul.f32 %v788_v7, %v788_v7  ;;  %5957 = vmatprep.subr.bf16.mxu0 %v6554_v5  ;;  %v6559_v7 = vld [vmem:[#allocation6 + $0x1b8] sm:$0xff]  }
 0x159   : > { %6750 = vpow2.f32 %v949_v3  ;;  %v5427_v8 = vadd.f32 0.2857143, %v8058_v30  ;;  %v1011_v49 = vmul.f32 1.75, %v5426_v15  ;;  %6018 = vmatpush3.bf16.msra.mxu1 %v6553_v9  ;;  %v6739_v52 = vpop.eup %6738  ;;  %v819_v44 = vsub.f32 0.0, %v803_v41 }
 0x15a   : > { %v629_v13 = vmul.f32 %v7899_v10, %v606_v42  ;;  %6752 = vpow2.f32 %v951_v11  ;;  %v820_v57 = vsub.f32 0.0, %v804_v35  ;;  %v5379_v60 = vadd.f32 2.0, %v8058_v30  ;;  %6019 = vmatprep.subr.bf16.mxu1 %v6556_v19 }
 0x15b   : > { %v6741_v56 = vpop.eup %6740  ;;  %v1012_v5 = vmul.f32 1.75, %v5427_v8  ;;  %v1027_v10 = vmul.f32 %v1011_v49, %v1011_v49  ;;  %v675_v12 = vmul.f32 1.75, %v5378_v24  ;;  %5958 = vmatpush3.bf16.msra.mxu0 %v6555_v6  ;;  %v841_v1 = vmul.f32 1.442695, %v819_v44 }
 0x15c   : > { %v8168_v21 = vadd.f32 %v7915_v23, %v629_v13  ;;  %v863_v45 = vpack.c.bf16 %v6741_v56, %v6739_v52  ;;  %v843_v29 = vmul.f32 1.442695, %v820_v57  ;;  %v676_v9 = vmul.f32 1.75, %v5379_v60  ;;  %6359 = vmatprep.subr.bf16.mxu0 %v8162_v37 }
 0x15d   : > { %v1028_v59 = vmul.f32 %v1012_v5, %v1012_v5  ;;  %v1043_v27 = vsub.f32 0.0, %v1027_v10  ;;  %v691_v33 = vmul.f32 %v675_v12, %v675_v12  ;;  %v5410_v32 = vadd.f32 0.85714287, %v8047_v20  ;;  %6020 = vmatpush3.bf16.msra.mxu1 %v6557_v22 }
 0x15e   : > { %v6743_v19 = vpop.eup %6742  ;;  %2380 = vmatprep.mubr.bf16.mxu0 %v863_v45  ;;  %6754 = vpow2.f32 %v841_v1  ;;  %v692_v23 = vmul.f32 %v676_v9, %v676_v9  ;;  %v5411_v24 = vadd.f32 0.85714287, %v8058_v30  ;;  %v5396_v16 = vadd.f32 1.4285715, %v8080_v54  ;;  %6021 = vmatprep.subr.bf16.mxu1 %v6558_v51 }
 0x15f   : > { %v6745_v42 = vpop.eup %6744  ;;  %6756 = vpow2.f32 %v843_v29  ;;  %v1044_v3 = vsub.f32 0.0, %v1028_v59  ;;  %v1065_v15 = vmul.f32 1.442695, %v1043_v27  ;;  %v707_v6 = vsub.f32 0.0, %v691_v33 }
 0x160   : > { %v1087_v11 = vpack.c.bf16 %v6745_v42, %v6743_v19  ;;  %v708_v41 = vsub.f32 0.0, %v692_v23  ;;  %v899_v35 = vmul.f32 1.75, %v5410_v32  ;;  %v900_v13 = vmul.f32 1.75, %v5411_v24 }
 0x161   : > { %v6747_v8 = vpop.eup %6746  ;;  %6758 = vpow2.f32 %v1065_v15  ;;  %v1067_v49 = vmul.f32 1.442695, %v1044_v3  ;;  %v729_v22 = vmul.f32 1.442695, %v707_v6  ;;  %v5397_v52 = vadd.f32 1.4285715, %v8094_v62  ;;  %6022 = vmatpush3.bf16.msra.mxu1 %v6559_v7 }
 0x162   : > { %v6749_v44 = vpop.eup %6748  ;;  %2477 = vmatprep.mubr.bf16.mxu1 %v1087_v11  ;;  %v731_v57 = vmul.f32 1.442695, %v708_v41  ;;  %v915_v60 = vmul.f32 %v899_v35, %v899_v35  ;;  %v916_v51 = vmul.f32 %v900_v13, %v900_v13  ;;  %v789_v56 = vmul.f32 1.75, %v5396_v16 }
 0x163   : > { %v6751_v5 = vpop.eup %6750  ;;  %v751_v10 = vpack.c.bf16 %v6749_v44, %v6747_v8  ;;  %6760 = vpow2.f32 %v1067_v49  ;;  %v790_v12 = vmul.f32 1.75, %v5397_v52  ;;  %v5428_v45 = vadd.f32 0.2857143, %v8080_v54 }
 0x164   : > { %v6753_v1 = vpop.eup %6752  ;;  %6762 = vpow2.f32 %v729_v22  ;;  %v931_v29 = vsub.f32 0.0, %v915_v60  ;;  %v932_v9 = vsub.f32 0.0, %v916_v51  ;;  %v805_v59 = vmul.f32 %v789_v56, %v789_v56 }
 0x165   : > { %2381 = vmatmul.mubr.bf16.gmra.mrb[8].mxu0 %v751_v10  ;;  %v975_v27 = vpack.c.bf16 %v6753_v1, %v6751_v5  ;;  %6764 = vpow2.f32 %v731_v57  ;;  %v806_v33 = vmul.f32 %v790_v12, %v790_v12  ;;  %v5429_v32 = vadd.f32 0.2857143, %v8094_v62 }
 0x166   : > { %v953_v7 = vmul.f32 1.442695, %v931_v29  ;;  %v955_v19 = vmul.f32 1.442695, %v932_v9  ;;  %v821_v23 = vsub.f32 0.0, %v805_v59  ;;  %v1013_v24 = vmul.f32 1.75, %v5428_v45 }
 0x167   : > { %2478 = vmatmul.mubr.bf16.gmra.mrb[8].mxu1 %v975_v27  ;;  %v822_v16 = vsub.f32 0.0, %v806_v33  ;;  %v1014_v42 = vmul.f32 1.75, %v5429_v32  ;;  %v5380_v3 = vadd.f32 2.0, %v8080_v54  ;;  %v5381_v15 = vadd.f32 2.0, %v8094_v62 }
 0x168   : > { %v6755_v6 = vpop.eup %6754  ;;  %6766 = vpow2.f32 %v953_v7  ;;  %v845_v11 = vmul.f32 1.442695, %v821_v23  ;;  %v1029_v41 = vmul.f32 %v1013_v24, %v1013_v24  ;;  %v5412_v35 = vadd.f32 0.85714287, %v8080_v54 }
 0x169   : > { %v6757_v13 = vpop.eup %6756  ;;  %6768 = vpow2.f32 %v955_v19  ;;  %v847_v8 = vmul.f32 1.442695, %v822_v16  ;;  %v1030_v49 = vmul.f32 %v1014_v42, %v1014_v42  ;;  %v677_v22 = vmul.f32 1.75, %v5380_v3 }
 0x16a   : > { %v864_v52 = vpack.c.bf16 %v6757_v13, %v6755_v6  ;;  %6770 = vpow2.f32 %v845_v11  ;;  %v1045_v44 = vsub.f32 0.0, %v1029_v41  ;;  %v678_v57 = vmul.f32 1.75, %v5381_v15 }
 0x16b   : > { %v6759_v60 = vpop.eup %6758  ;;  %6772 = vpow2.f32 %v847_v8  ;;  %v1046_v51 = vsub.f32 0.0, %v1030_v49  ;;  %v693_v56 = vmul.f32 %v677_v22, %v677_v22  ;;  %v5413_v5 = vadd.f32 0.85714287, %v8094_v62 }
 0x16c   : > { %2388 = vmatprep.mubr.bf16.mxu0 %v864_v52  ;;  %v1069_v10 = vmul.f32 1.442695, %v1045_v44  ;;  %v694_v12 = vmul.f32 %v678_v57, %v678_v57  ;;  %v901_v45 = vmul.f32 1.75, %v5412_v35  ;;  %v5398_v1 = vadd.f32 1.4285715, %v8116_v48 }
 0x16d   : > { %v6761_v29 = vpop.eup %6760  ;;  %v1071_v9 = vmul.f32 1.442695, %v1046_v51  ;;  %v709_v59 = vsub.f32 0.0, %v693_v56  ;;  %v902_v27 = vmul.f32 1.75, %v5413_v5  ;;  %v5399_v33 = vadd.f32 1.4285715, %v8121_v61 }
 0x16e   : > { %v6763_v32 = vpop.eup %6762  ;;  %v1088_v7 = vpack.c.bf16 %v6761_v29, %v6759_v60  ;;  %6774 = vpow2.f32 %v1069_v10  ;;  %v710_v19 = vsub.f32 0.0, %v694_v12  ;;  %v917_v23 = vmul.f32 %v901_v45, %v901_v45 }
 0x16f   : > { %v6765_v24 = vpop.eup %6764  ;;  %6776 = vpow2.f32 %v1071_v9  ;;  %v733_v16 = vmul.f32 1.442695, %v709_v59  ;;  %v918_v42 = vmul.f32 %v902_v27, %v902_v27  ;;  %v791_v3 = vmul.f32 1.75, %v5398_v1 }
 0x170   : > { %2485 = vmatprep.mubr.bf16.mxu1 %v1088_v7  ;;  %v752_v15 = vpack.c.bf16 %v6765_v24, %v6763_v32  ;;  %v735_v6 = vmul.f32 1.442695, %v710_v19  ;;  %v933_v11 = vsub.f32 0.0, %v917_v23  ;;  %v792_v41 = vmul.f32 1.75, %v5399_v33 }
 0x171   : > { %6778 = vpow2.f32 %v733_v16  ;;  %v934_v35 = vsub.f32 0.0, %v918_v42  ;;  %v807_v13 = vmul.f32 %v791_v3, %v791_v3  ;;  %v5430_v8 = vadd.f32 0.2857143, %v8116_v48 }
 0x172   : > { %v6767_v49 = vpop.eup %6766  ;;  %2389 = vmatmul.mubr.bf16.gmra.mrb[12].mxu0 %v752_v15  ;;  %6780 = vpow2.f32 %v735_v6  ;;  %v957_v22 = vmul.f32 1.442695, %v933_v11  ;;  %v808_v52 = vmul.f32 %v792_v41, %v792_v41  ;;  %v5431_v44 = vadd.f32 0.2857143, %v8121_v61 }
 0x173   : > { %v6769_v57 = vpop.eup %6768  ;;  %v959_v60 = vmul.f32 1.442695, %v934_v35  ;;  %v823_v51 = vsub.f32 0.0, %v807_v13  ;;  %v1015_v56 = vmul.f32 1.75, %v5430_v8  ;;  %v5382_v5 = vadd.f32 2.0, %v8116_v48 }
 0x174   : > { %v6771_v10 = vpop.eup %6770  ;;  %v976_v12 = vpack.c.bf16 %v6769_v57, %v6767_v49  ;;  %6782 = vpow2.f32 %v957_v22  ;;  %v824_v45 = vsub.f32 0.0, %v808_v52  ;;  %v1016_v1 = vmul.f32 1.75, %v5431_v44 }
 0x175   : > { %v6773_v29 = vpop.eup %6772  ;;  %6784 = vpow2.f32 %v959_v60  ;;  %v849_v9 = vmul.f32 1.442695, %v823_v51  ;;  %v1031_v59 = vmul.f32 %v1015_v56, %v1015_v56  ;;  %v5383_v27 = vadd.f32 2.0, %v8121_v61 }
 0x176   : > { %2486 = vmatmul.mubr.bf16.gmra.mrb[12].mxu1 %v976_v12  ;;  %v865_v33 = vpack.c.bf16 %v6773_v29, %v6771_v10  ;;  %v851_v32 = vmul.f32 1.442695, %v824_v45  ;;  %v1032_v7 = vmul.f32 %v1016_v1, %v1016_v1  ;;  %v679_v19 = vmul.f32 1.75, %v5382_v5 }
 0x177   : > { %6786 = vpow2.f32 %v849_v9  ;;  %v1047_v23 = vsub.f32 0.0, %v1031_v59  ;;  %v680_v24 = vmul.f32 1.75, %v5383_v27  ;;  %v5414_v16 = vadd.f32 0.85714287, %v8116_v48 }
 0x178   : > { %v6775_v42 = vpop.eup %6774  ;;  %2396 = vmatprep.mubr.bf16.mxu0 %v865_v33  ;;  %6788 = vpow2.f32 %v851_v32  ;;  %v1048_v3 = vsub.f32 0.0, %v1032_v7  ;;  %v695_v15 = vmul.f32 %v679_v19, %v679_v19  ;;  %v5415_v6 = vadd.f32 0.85714287, %v8121_v61 }
 0x179   : > { %v6777_v11 = vpop.eup %6776  ;;  %v1073_v41 = vmul.f32 1.442695, %v1047_v23  ;;  %v696_v35 = vmul.f32 %v680_v24, %v680_v24  ;;  %v903_v13 = vmul.f32 1.75, %v5414_v16  ;;  %v5400_v8 = vadd.f32 1.4285715, %v8133_v40 }
 0x17a   : > { %v1089_v49 = vpack.c.bf16 %v6777_v11, %v6775_v42  ;;  %v1075_v22 = vmul.f32 1.442695, %v1048_v3  ;;  %v711_v52 = vsub.f32 0.0, %v695_v15  ;;  %v904_v44 = vmul.f32 1.75, %v5415_v6 }
 0x17b   : > { %v6779_v57 = vpop.eup %6778  ;;  %6790 = vpow2.f32 %v1073_v41  ;;  %v712_v60 = vsub.f32 0.0, %v696_v35  ;;  %v919_v51 = vmul.f32 %v903_v13, %v903_v13  ;;  %v5401_v56 = vadd.f32 1.4285715, %v8140_v36 }
 0x17c   : > { %v6781_v5 = vpop.eup %6780  ;;  %2493 = vmatprep.mubr.bf16.mxu1 %v1089_v49  ;;  %6792 = vpow2.f32 %v1075_v22  ;;  %v737_v10 = vmul.f32 1.442695, %v711_v52  ;;  %v920_v12 = vmul.f32 %v904_v44, %v904_v44  ;;  %v793_v45 = vmul.f32 1.75, %v5400_v8 }
 0x17d   : > { %v753_v1 = vpack.c.bf16 %v6781_v5, %v6779_v57  ;;  %v739_v29 = vmul.f32 1.442695, %v712_v60  ;;  %v935_v9 = vsub.f32 0.0, %v919_v51  ;;  %v794_v59 = vmul.f32 1.75, %v5401_v56 }
 0x17e   : > { %v6783_v27 = vpop.eup %6782  ;;  %6794 = vpow2.f32 %v737_v10  ;;  %v936_v33 = vsub.f32 0.0, %v920_v12  ;;  %v809_v32 = vmul.f32 %v793_v45, %v793_v45  ;;  %v5432_v7 = vadd.f32 0.2857143, %v8133_v40 }
 0x17f   : > { %v6785_v19 = vpop.eup %6784  ;;  %2397 = vmatmul.mubr.bf16.gmra.mrb[16].mxu0 %v753_v1  ;;  %6796 = vpow2.f32 %v739_v29  ;;  %v961_v23 = vmul.f32 1.442695, %v935_v9  ;;  %v810_v24 = vmul.f32 %v794_v59, %v794_v59  ;;  %v5433_v16 = vadd.f32 0.2857143, %v8140_v36 }
 0x180   : > { %v977_v42 = vpack.c.bf16 %v6785_v19, %v6783_v27  ;;  %v963_v3 = vmul.f32 1.442695, %v936_v33  ;;  %v825_v15 = vsub.f32 0.0, %v809_v32  ;;  %v1017_v6 = vmul.f32 1.75, %v5432_v7 }
 0x181   : > { %v6787_v11 = vpop.eup %6786  ;;  %6798 = vpow2.f32 %v961_v23  ;;  %v826_v41 = vsub.f32 0.0, %v810_v24  ;;  %v1018_v35 = vmul.f32 1.75, %v5433_v16  ;;  %v5384_v13 = vadd.f32 2.0, %v8133_v40 }
 0x182   : > { %v6789_v8 = vpop.eup %6788  ;;  %2494 = vmatmul.mubr.bf16.gmra.mrb[16].mxu1 %v977_v42  ;;  %6800 = vpow2.f32 %v963_v3  ;;  %v853_v49 = vmul.f32 1.442695, %v825_v15  ;;  %v1033_v22 = vmul.f32 %v1017_v6, %v1017_v6  ;;  %v5385_v52 = vadd.f32 2.0, %v8140_v36 }
 0x183   : > { %v866_v44 = vpack.c.bf16 %v6789_v8, %v6787_v11  ;;  %v855_v57 = vmul.f32 1.442695, %v826_v41  ;;  %v1034_v60 = vmul.f32 %v1018_v35, %v1018_v35  ;;  %v681_v51 = vmul.f32 1.75, %v5384_v13 }
 0x184   : > { %6802 = vpow2.f32 %v853_v49  ;;  %v1049_v56 = vsub.f32 0.0, %v1033_v22  ;;  %v682_v5 = vmul.f32 1.75, %v5385_v52  ;;  %v5416_v10 = vadd.f32 0.85714287, %v8133_v40 }
 0x185   : > { %v6791_v12 = vpop.eup %6790  ;;  %2404 = vmatprep.mubr.bf16.mxu0 %v866_v44  ;;  %6804 = vpow2.f32 %v855_v57  ;;  %v1050_v45 = vsub.f32 0.0, %v1034_v60  ;;  %v697_v1 = vmul.f32 %v681_v51, %v681_v51  ;;  %v5417_v29 = vadd.f32 0.85714287, %v8140_v36 }
 0x186   : > { %v6793_v9 = vpop.eup %6792  ;;  %v1077_v59 = vmul.f32 1.442695, %v1049_v56  ;;  %v698_v27 = vmul.f32 %v682_v5, %v682_v5  ;;  %v905_v33 = vmul.f32 1.75, %v5416_v10  ;;  %v5402_v32 = vadd.f32 1.4285715, %v8149_v4 }
 0x187   : > { %v1090_v7 = vpack.c.bf16 %v6793_v9, %v6791_v12  ;;  %v1079_v19 = vmul.f32 1.442695, %v1050_v45  ;;  %v713_v23 = vsub.f32 0.0, %v697_v1  ;;  %v906_v24 = vmul.f32 1.75, %v5417_v29 }
 0x188   : > { %v6795_v16 = vpop.eup %6794  ;;  %6806 = vpow2.f32 %v1077_v59  ;;  %v714_v42 = vsub.f32 0.0, %v698_v27  ;;  %v921_v3 = vmul.f32 %v905_v33, %v905_v33  ;;  %v5403_v15 = vadd.f32 1.4285715, %v8168_v21 }
 0x189   : > { %v6797_v6 = vpop.eup %6796  ;;  %2501 = vmatprep.mubr.bf16.mxu1 %v1090_v7  ;;  %6808 = vpow2.f32 %v1079_v19  ;;  %v741_v11 = vmul.f32 1.442695, %v713_v23  ;;  %v922_v41 = vmul.f32 %v906_v24, %v906_v24  ;;  %v795_v35 = vmul.f32 1.75, %v5402_v32 }
 0x18a   : > { %v754_v13 = vpack.c.bf16 %v6797_v6, %v6795_v16  ;;  %v743_v8 = vmul.f32 1.442695, %v714_v42  ;;  %v937_v49 = vsub.f32 0.0, %v921_v3  ;;  %v796_v22 = vmul.f32 1.75, %v5403_v15 }
 0x18b   : > { %v6799_v52 = vpop.eup %6798  ;;  %6810 = vpow2.f32 %v741_v11  ;;  %v938_v44 = vsub.f32 0.0, %v922_v41  ;;  %v811_v57 = vmul.f32 %v795_v35, %v795_v35  ;;  %v5434_v60 = vadd.f32 0.2857143, %v8149_v4 }
 0x18c   : > { %v6801_v51 = vpop.eup %6800  ;;  %2405 = vmatmul.mubr.bf16.gmra.mrb[20].mxu0 %v754_v13  ;;  %6812 = vpow2.f32 %v743_v8  ;;  %v965_v56 = vmul.f32 1.442695, %v937_v49  ;;  %v812_v5 = vmul.f32 %v796_v22, %v796_v22  ;;  %v5435_v10 = vadd.f32 0.2857143, %v8168_v21 }
 0x18d   : > { %v978_v12 = vpack.c.bf16 %v6801_v51, %v6799_v52  ;;  %v967_v45 = vmul.f32 1.442695, %v938_v44  ;;  %v827_v1 = vsub.f32 0.0, %v811_v57  ;;  %v1019_v29 = vmul.f32 1.75, %v5434_v60 }
 0x18e   : > { %v6803_v9 = vpop.eup %6802  ;;  %6814 = vpow2.f32 %v965_v56  ;;  %v828_v59 = vsub.f32 0.0, %v812_v5  ;;  %v1020_v27 = vmul.f32 1.75, %v5435_v10  ;;  %v5386_v33 = vadd.f32 2.0, %v8149_v4 }
 0x18f   : > { %v6805_v32 = vpop.eup %6804  ;;  %2502 = vmatmul.mubr.bf16.gmra.mrb[20].mxu1 %v978_v12  ;;  %6816 = vpow2.f32 %v967_v45  ;;  %v857_v7 = vmul.f32 1.442695, %v827_v1  ;;  %v1035_v19 = vmul.f32 %v1019_v29, %v1019_v29  ;;  %v5387_v23 = vadd.f32 2.0, %v8168_v21 }
 0x190   : > { %v867_v24 = vpack.c.bf16 %v6805_v32, %v6803_v9  ;;  %v859_v16 = vmul.f32 1.442695, %v828_v59  ;;  %v1036_v42 = vmul.f32 %v1020_v27, %v1020_v27  ;;  %v683_v3 = vmul.f32 1.75, %v5386_v33 }
 0x191   : > { %6818 = vpow2.f32 %v857_v7  ;;  %v1051_v15 = vsub.f32 0.0, %v1035_v19  ;;  %v684_v6 = vmul.f32 1.75, %v5387_v23  ;;  %v5418_v11 = vadd.f32 0.85714287, %v8149_v4 }
 0x192   : > { %v6807_v41 = vpop.eup %6806  ;;  %2412 = vmatprep.mubr.bf16.mxu0 %v867_v24  ;;  %6820 = vpow2.f32 %v859_v16  ;;  %v1052_v35 = vsub.f32 0.0, %v1036_v42  ;;  %v699_v13 = vmul.f32 %v683_v3, %v683_v3  ;;  %v5419_v8 = vadd.f32 0.85714287, %v8168_v21 }
 0x193   : > { %v6809_v49 = vpop.eup %6808  ;;  %v1081_v22 = vmul.f32 1.442695, %v1051_v15  ;;  %v700_v52 = vmul.f32 %v684_v6, %v684_v6  ;;  %v907_v44 = vmul.f32 1.75, %v5418_v11  ;;  %v5452_v57 = vadd.f32 -0.85714287, %v7931_v39 }
 0x194   : > { %v1091_v60 = vpack.c.bf16 %v6809_v49, %v6807_v41  ;;  %v1083_v51 = vmul.f32 1.442695, %v1052_v35  ;;  %v715_v56 = vsub.f32 0.0, %v699_v13  ;;  %v908_v5 = vmul.f32 1.75, %v5419_v8 }
 0x195   : > { %v6811_v10 = vpop.eup %6810  ;;  %6822 = vpow2.f32 %v1081_v22  ;;  %v716_v12 = vsub.f32 0.0, %v700_v52  ;;  %v923_v45 = vmul.f32 %v907_v44, %v907_v44  ;;  %v5453_v1 = vadd.f32 -0.85714287, %v7958_v53 }
 0x196   : > { %v6813_v29 = vpop.eup %6812  ;;  %2509 = vmatprep.mubr.bf16.mxu1 %v1091_v60  ;;  %6824 = vpow2.f32 %v1083_v51  ;;  %v745_v9 = vmul.f32 1.442695, %v715_v56  ;;  %v924_v59 = vmul.f32 %v908_v5, %v908_v5  ;;  %v1229_v27 = vmul.f32 1.75, %v5452_v57 }
 0x197   : > { %v755_v33 = vpack.c.bf16 %v6813_v29, %v6811_v10  ;;  %v747_v32 = vmul.f32 1.442695, %v716_v12  ;;  %v939_v7 = vsub.f32 0.0, %v923_v45  ;;  %v1230_v19 = vmul.f32 1.75, %v5453_v1 }
 0x198   : > { %v6815_v23 = vpop.eup %6814  ;;  %6826 = vpow2.f32 %v745_v9  ;;  %v940_v24 = vsub.f32 0.0, %v924_v59  ;;  %v1245_v16 = vmul.f32 %v1229_v27, %v1229_v27  ;;  %v5484_v42 = vadd.f32 -2.0, %v7931_v39 }
 0x199   : > { %v6817_v3 = vpop.eup %6816  ;;  %2413 = vmatmul.mubr.bf16.gmra.mrb[24].mxu0 %v755_v33  ;;  %6828 = vpow2.f32 %v747_v32  ;;  %v969_v15 = vmul.f32 1.442695, %v939_v7  ;;  %v1246_v6 = vmul.f32 %v1230_v19, %v1230_v19  ;;  %v5485_v11 = vadd.f32 -2.0, %v7958_v53 }
 0x19a   : > { %v979_v41 = vpack.c.bf16 %v6817_v3, %v6815_v23  ;;  %v971_v35 = vmul.f32 1.442695, %v940_v24  ;;  %v1261_v13 = vsub.f32 0.0, %v1245_v16  ;;  %v1453_v8 = vmul.f32 1.75, %v5484_v42 }
 0x19b   : > { %v6819_v49 = vpop.eup %6818  ;;  %6830 = vpow2.f32 %v969_v15  ;;  %v1262_v22 = vsub.f32 0.0, %v1246_v6  ;;  %v1454_v52 = vmul.f32 1.75, %v5485_v11  ;;  %v5436_v44 = vadd.f32 -0.2857143, %v7931_v39 }
 0x19c   : > { %v6821_v57 = vpop.eup %6820  ;;  %2510 = vmatmul.mubr.bf16.gmra.mrb[24].mxu1 %v979_v41  ;;  %6832 = vpow2.f32 %v971_v35  ;;  %v1277_v60 = vmul.f32 1.442695, %v1261_v13  ;;  %v1469_v51 = vmul.f32 %v1453_v8, %v1453_v8  ;;  %v5437_v56 = vadd.f32 -0.2857143, %v7958_v53 }
 0x19d   : > { %v868_v5 = vpack.c.bf16 %v6821_v57, %v6819_v49  ;;  %v1279_v10 = vmul.f32 1.442695, %v1262_v22  ;;  %v1470_v12 = vmul.f32 %v1454_v52, %v1454_v52  ;;  %v1117_v45 = vmul.f32 1.75, %v5436_v44 }
 0x19e   : > { %6834 = vpow2.f32 %v1277_v60  ;;  %v1485_v1 = vsub.f32 0.0, %v1469_v51  ;;  %v1118_v29 = vmul.f32 1.75, %v5437_v56  ;;  %v5468_v9 = vadd.f32 -1.4285715, %v7931_v39 }
 0x19f   : > { %v6823_v59 = vpop.eup %6822  ;;  %2420 = vmatprep.mubr.bf16.mxu0 %v868_v5  ;;  %6836 = vpow2.f32 %v1279_v10  ;;  %v1486_v27 = vsub.f32 0.0, %v1470_v12  ;;  %v1133_v33 = vmul.f32 %v1117_v45, %v1117_v45  ;;  %v5469_v32 = vadd.f32 -1.4285715, %v7958_v53 }
 0x1a0   : > { %v6825_v7 = vpop.eup %6824  ;;  %v1501_v19 = vmul.f32 1.442695, %v1485_v1  ;;  %v1134_v23 = vmul.f32 %v1118_v29, %v1118_v29  ;;  %v1341_v24 = vmul.f32 1.75, %v5468_v9  ;;  %v5454_v16 = vadd.f32 -0.85714287, %v7981_v47 }
 0x1a1   : > { %v1092_v42 = vpack.c.bf16 %v6825_v7, %v6823_v59  ;;  %v1503_v3 = vmul.f32 1.442695, %v1486_v27  ;;  %v1149_v15 = vsub.f32 0.0, %v1133_v33  ;;  %v1342_v6 = vmul.f32 1.75, %v5469_v32 }
 0x1a2   : > { %v6827_v11 = vpop.eup %6826  ;;  %6838 = vpow2.f32 %v1501_v19  ;;  %v1150_v39 = vsub.f32 0.0, %v1134_v23  ;;  %v1357_v41 = vmul.f32 %v1341_v24, %v1341_v24  ;;  %v5455_v35 = vadd.f32 -0.85714287, %v7989_v55 }
 0x1a3   : > { %v6829_v13 = vpop.eup %6828  ;;  %2517 = vmatprep.mubr.bf16.mxu1 %v1092_v42  ;;  %6840 = vpow2.f32 %v1503_v3  ;;  %v1165_v53 = vmul.f32 1.442695, %v1149_v15  ;;  %v1358_v8 = vmul.f32 %v1342_v6, %v1342_v6  ;;  %v1231_v49 = vmul.f32 1.75, %v5454_v16 }
 0x1a4   : > { %v756_v22 = vpack.c.bf16 %v6829_v13, %v6827_v11  ;;  %v1167_v52 = vmul.f32 1.442695, %v1150_v39  ;;  %v1373_v44 = vsub.f32 0.0, %v1357_v41  ;;  %v1232_v57 = vmul.f32 1.75, %v5455_v35 }
 0x1a5   : > { %v6831_v60 = vpop.eup %6830  ;;  %6842 = vpow2.f32 %v1165_v53  ;;  %v1374_v51 = vsub.f32 0.0, %v1358_v8  ;;  %v1247_v56 = vmul.f32 %v1231_v49, %v1231_v49  ;;  %v5486_v5 = vadd.f32 -2.0, %v7981_v47 }
 0x1a6   : > { %v6833_v10 = vpop.eup %6832  ;;  %2421 = vmatmul.mubr.bf16.gmra.mrb[28].mxu0 %v756_v22  ;;  %6844 = vpow2.f32 %v1167_v52  ;;  %v1389_v12 = vmul.f32 1.442695, %v1373_v44  ;;  %v1248_v45 = vmul.f32 %v1232_v57, %v1232_v57  ;;  %v5487_v1 = vadd.f32 -2.0, %v7989_v55 }
 0x1a7   : > { %v980_v29 = vpack.c.bf16 %v6833_v10, %v6831_v60  ;;  %v1391_v9 = vmul.f32 1.442695, %v1374_v51  ;;  %v1263_v59 = vsub.f32 0.0, %v1247_v56  ;;  %v1455_v27 = vmul.f32 1.75, %v5486_v5 }
 0x1a8   : > { %v6835_v33 = vpop.eup %6834  ;;  %6846 = vpow2.f32 %v1389_v12  ;;  %v1264_v32 = vsub.f32 0.0, %v1248_v45  ;;  %v1456_v7 = vmul.f32 1.75, %v5487_v1  ;;  %v5438_v19 = vadd.f32 -0.2857143, %v7981_v47 }
 0x1a9   : > { %v6837_v23 = vpop.eup %6836  ;;  %2518 = vmatmul.mubr.bf16.gmra.mrb[28].mxu1 %v980_v29  ;;  %6848 = vpow2.f32 %v1391_v9  ;;  %v1281_v24 = vmul.f32 1.442695, %v1263_v59  ;;  %v1471_v16 = vmul.f32 %v1455_v27, %v1455_v27  ;;  %v5439_v42 = vadd.f32 -0.2857143, %v7989_v55 }
 0x1aa   : > { %v1309_v3 = vpack.c.bf16 %v6837_v23, %v6835_v33  ;;  %v1283_v15 = vmul.f32 1.442695, %v1264_v32  ;;  %v1472_v6 = vmul.f32 %v1456_v7, %v1456_v7  ;;  %v1119_v11 = vmul.f32 1.75, %v5438_v19  ;;  %v6561_v33 = vld [vmem:[#allocation6 + $0x208] sm:$0xff]  }
 0x1ab   : > { %6850 = vpow2.f32 %v1281_v24  ;;  %v1487_v39 = vsub.f32 0.0, %v1471_v16  ;;  %v1120_v41 = vmul.f32 1.75, %v5439_v42  ;;  %v5470_v35 = vadd.f32 -1.4285715, %v7981_v47 }
 0x1ac   : > { %v6839_v13 = vpop.eup %6838  ;;  %2558 = vmatprep.mubr.bf16.mxu0 %v1309_v3  ;;  %6852 = vpow2.f32 %v1283_v15  ;;  %v1488_v53 = vsub.f32 0.0, %v1472_v6  ;;  %v1135_v8 = vmul.f32 %v1119_v11, %v1119_v11  ;;  %v5471_v49 = vadd.f32 -1.4285715, %v7989_v55 }
 0x1ad   : > { %v6841_v22 = vpop.eup %6840  ;;  %v1505_v52 = vmul.f32 1.442695, %v1487_v39  ;;  %v1136_v44 = vmul.f32 %v1120_v41, %v1120_v41  ;;  %v1343_v57 = vmul.f32 1.75, %v5470_v35  ;;  %v5456_v60 = vadd.f32 -0.85714287, %v8011_v17 }
 0x1ae   : > { %v1533_v51 = vpack.c.bf16 %v6841_v22, %v6839_v13  ;;  %v1507_v56 = vmul.f32 1.442695, %v1488_v53  ;;  %v1151_v5 = vsub.f32 0.0, %v1135_v8  ;;  %v1344_v10 = vmul.f32 1.75, %v5471_v49  ;;  %v6562_v22 = vld [vmem:[#allocation6 + $0x210] sm:$0xff]  }
 0x1af   : > { %v6843_v12 = vpop.eup %6842  ;;  %6854 = vpow2.f32 %v1505_v52  ;;  %v1152_v47 = vsub.f32 0.0, %v1136_v44  ;;  %v1359_v45 = vmul.f32 %v1343_v57, %v1343_v57  ;;  %v5457_v1 = vadd.f32 -0.85714287, %v8022_v58 }
 0x1b0   : > { %v6845_v29 = vpop.eup %6844  ;;  %2655 = vmatprep.mubr.bf16.mxu1 %v1533_v51  ;;  %6856 = vpow2.f32 %v1507_v56  ;;  %v1169_v55 = vmul.f32 1.442695, %v1151_v5  ;;  %v1360_v9 = vmul.f32 %v1344_v10, %v1344_v10  ;;  %v1233_v59 = vmul.f32 1.75, %v5456_v60 }
 0x1b1   : > { %v1197_v27 = vpack.c.bf16 %v6845_v29, %v6843_v12  ;;  %v1171_v32 = vmul.f32 1.442695, %v1152_v47  ;;  %v1375_v7 = vsub.f32 0.0, %v1359_v45  ;;  %v1234_v19 = vmul.f32 1.75, %v5457_v1 }
 0x1b2   : > { %v6847_v23 = vpop.eup %6846  ;;  %6858 = vpow2.f32 %v1169_v55  ;;  %v1376_v24 = vsub.f32 0.0, %v1360_v9  ;;  %v1249_v16 = vmul.f32 %v1233_v59, %v1233_v59  ;;  %v5488_v42 = vadd.f32 -2.0, %v8011_v17  ;;  %v6563_v59 = vld [vmem:[#allocation6 + $0x218] sm:$0xff]  }
 0x1b3   : > { %v6849_v3 = vpop.eup %6848  ;;  %2559 = vmatmul.mubr.bf16.vlgmr.msra.gmra.mrb[32].mxu0 %v1197_v27  ;;  %6860 = vpow2.f32 %v1171_v32  ;;  %v1393_v15 = vmul.f32 1.442695, %v1375_v7  ;;  %v1250_v6 = vmul.f32 %v1234_v19, %v1234_v19  ;;  %v5489_v11 = vadd.f32 -2.0, %v8022_v58 }
 0x1b4   : > { %v1421_v39 = vpack.c.bf16 %v6849_v3, %v6847_v23  ;;  %6360 = vmatpush3.bf16.msra.mxu0 %v8162_v37  ;;  %v1395_v41 = vmul.f32 1.442695, %v1376_v24  ;;  %v1265_v35 = vsub.f32 0.0, %v1249_v16  ;;  %v1457_v13 = vmul.f32 1.75, %v5488_v42 }
 0x1b5   : > { %v6851_v53 = vpop.eup %6850  ;;  %6361 = vmatprep.subr.bf16.mxu0 %v6561_v33  ;;  %6862 = vpow2.f32 %v1393_v15  ;;  %v1266_v8 = vsub.f32 0.0, %v1250_v6  ;;  %v1458_v49 = vmul.f32 1.75, %v5489_v11  ;;  %v5440_v52 = vadd.f32 -0.2857143, %v8011_v17 }
 0x1b6   : > { %v6853_v44 = vpop.eup %6852  ;;  %2656 = vmatmul.mubr.bf16.vlgmr.msra.gmra.mrb[32].mxu1 %v1421_v39  ;;  %6864 = vpow2.f32 %v1395_v41  ;;  %v1285_v57 = vmul.f32 1.442695, %v1265_v35  ;;  %v1473_v60 = vmul.f32 %v1457_v13, %v1457_v13  ;;  %v5441_v51 = vadd.f32 -0.2857143, %v8022_v58 }
 0x1b7   : > { %v1310_v56 = vpack.c.bf16 %v6853_v44, %v6851_v53  ;;  %v1287_v37 = vmul.f32 1.442695, %v1266_v8  ;;  %v1474_v5 = vmul.f32 %v1458_v49, %v1458_v49  ;;  %v1121_v10 = vmul.f32 1.75, %v5440_v52  ;;  %v6564_v49 = vld [vmem:[#allocation6 + $0x220] sm:$0xff]  }
 0x1b8   : > { %6362 = vmatpush3.bf16.msra.mxu0 %v6561_v33  ;;  %6866 = vpow2.f32 %v1285_v57  ;;  %v1489_v12 = vsub.f32 0.0, %v1473_v60  ;;  %v1122_v47 = vmul.f32 1.75, %v5441_v51  ;;  %v5472_v45 = vadd.f32 -1.4285715, %v8011_v17 }
 0x1b9   : > { %v6855_v1 = vpop.eup %6854  ;;  %2566 = vmatprep.mubr.bf16.mxu0 %v1310_v56  ;;  %6868 = vpow2.f32 %v1287_v37  ;;  %v1490_v29 = vsub.f32 0.0, %v1474_v5  ;;  %6363 = vmatprep.subr.bf16.mxu0 %v6562_v22  ;;  %v1137_v55 = vmul.f32 %v1121_v10, %v1121_v10  ;;  %v5473_v9 = vadd.f32 -1.4285715, %v8022_v58 }
 0x1ba   : > { %v6857_v27 = vpop.eup %6856  ;;  %v1509_v32 = vmul.f32 1.442695, %v1489_v12  ;;  %v1138_v7 = vmul.f32 %v1122_v47, %v1122_v47  ;;  %v1345_v19 = vmul.f32 1.75, %v5472_v45  ;;  %v5458_v33 = vadd.f32 -0.85714287, %v8047_v20 }
 0x1bb   : > { %v1534_v23 = vpack.c.bf16 %v6857_v27, %v6855_v1  ;;  %v1511_v24 = vmul.f32 1.442695, %v1490_v29  ;;  %v1153_v16 = vsub.f32 0.0, %v1137_v55  ;;  %v1346_v42 = vmul.f32 1.75, %v5473_v9  ;;  %v6565_v9 = vld [vmem:[#allocation6 + $0x228] sm:$0xff]  }
 0x1bc   : > { %v6859_v17 = vpop.eup %6858  ;;  %6870 = vpow2.f32 %v1509_v32  ;;  %v1154_v3 = vsub.f32 0.0, %v1138_v7  ;;  %v1361_v15 = vmul.f32 %v1345_v19, %v1345_v19  ;;  %6364 = vmatpush3.bf16.msra.mxu0 %v6562_v22  ;;  %v5459_v6 = vadd.f32 -0.85714287, %v8058_v30 }
 0x1bd   : > { %v6861_v11 = vpop.eup %6860  ;;  %2663 = vmatprep.mubr.bf16.mxu1 %v1534_v23  ;;  %6872 = vpow2.f32 %v1511_v24  ;;  %v1173_v58 = vmul.f32 1.442695, %v1153_v16  ;;  %v1362_v39 = vmul.f32 %v1346_v42, %v1346_v42  ;;  %v1235_v41 = vmul.f32 1.75, %v5458_v33  ;;  %6365 = vmatprep.subr.bf16.mxu0 %v6563_v59 }
 0x1be   : > { %v1198_v35 = vpack.c.bf16 %v6861_v11, %v6859_v17  ;;  %v1175_v13 = vmul.f32 1.442695, %v1154_v3  ;;  %v1377_v53 = vsub.f32 0.0, %v1361_v15  ;;  %v1236_v8 = vmul.f32 1.75, %v5459_v6 }
 0x1bf   : > { %v6863_v52 = vpop.eup %6862  ;;  %6874 = vpow2.f32 %v1173_v58  ;;  %v1378_v44 = vsub.f32 0.0, %v1362_v39  ;;  %v1251_v57 = vmul.f32 %v1235_v41, %v1235_v41  ;;  %v5490_v22 = vadd.f32 -2.0, %v8047_v20  ;;  %v6566_v58 = vld [vmem:[#allocation6 + $0x230] sm:$0xff]  }
 0x1c0   : > { %v6865_v60 = vpop.eup %6864  ;;  %2567 = vmatmul.mubr.bf16.gmra.mrb[36].mxu0 %v1198_v35  ;;  %6876 = vpow2.f32 %v1175_v13  ;;  %v1397_v51 = vmul.f32 1.442695, %v1377_v53  ;;  %v1252_v56 = vmul.f32 %v1236_v8, %v1236_v8  ;;  %v5491_v37 = vadd.f32 -2.0, %v8058_v30 }
 0x1c1   : > { %v1422_v5 = vpack.c.bf16 %v6865_v60, %v6863_v52  ;;  %v1399_v10 = vmul.f32 1.442695, %v1378_v44  ;;  %v1267_v12 = vsub.f32 0.0, %v1251_v57  ;;  %v1459_v47 = vmul.f32 1.75, %v5490_v22  ;;  %6366 = vmatpush3.bf16.msra.mxu0 %v6563_v59 }
 0x1c2   : > { %v6867_v45 = vpop.eup %6866  ;;  %6878 = vpow2.f32 %v1397_v51  ;;  %v1268_v1 = vsub.f32 0.0, %v1252_v56  ;;  %v1460_v29 = vmul.f32 1.75, %v5491_v37  ;;  %v5442_v55 = vadd.f32 -0.2857143, %v8047_v20  ;;  %6367 = vmatprep.subr.bf16.mxu0 %v6564_v49 }
 0x1c3   : > { %v6869_v27 = vpop.eup %6868  ;;  %2664 = vmatmul.mubr.bf16.gmra.mrb[36].mxu1 %v1422_v5  ;;  %6880 = vpow2.f32 %v1399_v10  ;;  %v1289_v32 = vmul.f32 1.442695, %v1267_v12  ;;  %v1475_v7 = vmul.f32 %v1459_v47, %v1459_v47  ;;  %v5443_v19 = vadd.f32 -0.2857143, %v8058_v30 }
 0x1c4   : > { %v1311_v33 = vpack.c.bf16 %v6869_v27, %v6867_v45  ;;  %v1291_v23 = vmul.f32 1.442695, %v1268_v1  ;;  %v1476_v24 = vmul.f32 %v1460_v29, %v1460_v29  ;;  %v1123_v16 = vmul.f32 1.75, %v5442_v55  ;;  %v6567_v45 = vld [vmem:[#allocation6 + $0x238] sm:$0xff]  }
 0x1c5   : > { %6882 = vpow2.f32 %v1289_v32  ;;  %v1491_v59 = vsub.f32 0.0, %v1475_v7  ;;  %v1124_v42 = vmul.f32 1.75, %v5443_v19  ;;  %v5474_v17 = vadd.f32 -1.4285715, %v8047_v20  ;;  %6368 = vmatpush3.bf16.msra.mxu0 %v6564_v49 }
 0x1c6   : > { %v6871_v3 = vpop.eup %6870  ;;  %2574 = vmatprep.mubr.bf16.mxu0 %v1311_v33  ;;  %6884 = vpow2.f32 %v1291_v23  ;;  %v1492_v15 = vsub.f32 0.0, %v1476_v24  ;;  %v1139_v6 = vmul.f32 %v1123_v16, %v1123_v16  ;;  %v5475_v11 = vadd.f32 -1.4285715, %v8058_v30  ;;  %6369 = vmatprep.subr.bf16.mxu0 %v6565_v9 }
 0x1c7   : > { %v6873_v39 = vpop.eup %6872  ;;  %v1513_v41 = vmul.f32 1.442695, %v1491_v59  ;;  %v1140_v35 = vmul.f32 %v1124_v42, %v1124_v42  ;;  %v1347_v13 = vmul.f32 1.75, %v5474_v17  ;;  %v5460_v53 = vadd.f32 -0.85714287, %v8080_v54 }
 0x1c8   : > { %v1535_v8 = vpack.c.bf16 %v6873_v39, %v6871_v3  ;;  %v1515_v52 = vmul.f32 1.442695, %v1492_v15  ;;  %v1155_v44 = vsub.f32 0.0, %v1139_v6  ;;  %v1348_v20 = vmul.f32 1.75, %v5475_v11 }
 0x1c9   : > { %v6875_v49 = vpop.eup %6874  ;;  %6886 = vpow2.f32 %v1513_v41  ;;  %v1156_v57 = vsub.f32 0.0, %v1140_v35  ;;  %v1363_v22 = vmul.f32 %v1347_v13, %v1347_v13  ;;  %v5461_v60 = vadd.f32 -0.85714287, %v8094_v62  ;;  %6370 = vmatpush3.bf16.msra.mxu0 %v6565_v9 }
 0x1ca   : > { %v6877_v30 = vpop.eup %6876  ;;  %2671 = vmatprep.mubr.bf16.mxu1 %v1535_v8  ;;  %6888 = vpow2.f32 %v1515_v52  ;;  %v1177_v51 = vmul.f32 1.442695, %v1155_v44  ;;  %v1364_v56 = vmul.f32 %v1348_v20, %v1348_v20  ;;  %v1237_v37 = vmul.f32 1.75, %v5460_v53  ;;  %6371 = vmatprep.subr.bf16.mxu0 %v6566_v58 }
 0x1cb   : > { %v1199_v5 = vpack.c.bf16 %v6877_v30, %v6875_v49  ;;  %v1179_v10 = vmul.f32 1.442695, %v1156_v57  ;;  %v1379_v12 = vsub.f32 0.0, %v1363_v22  ;;  %v1238_v47 = vmul.f32 1.75, %v5461_v60 }
 0x1cc   : > { %v6879_v1 = vpop.eup %6878  ;;  %6890 = vpow2.f32 %v1177_v51  ;;  %v1380_v29 = vsub.f32 0.0, %v1364_v56  ;;  %v1253_v55 = vmul.f32 %v1237_v37, %v1237_v37  ;;  %v5492_v27 = vadd.f32 -2.0, %v8080_v54 }
 0x1cd   : > { %v6881_v32 = vpop.eup %6880  ;;  %2575 = vmatmul.mubr.bf16.gmra.mrb[40].mxu0 %v1199_v5  ;;  %6892 = vpow2.f32 %v1179_v10  ;;  %v1401_v9 = vmul.f32 1.442695, %v1379_v12  ;;  %v1254_v7 = vmul.f32 %v1238_v47, %v1238_v47  ;;  %v5493_v19 = vadd.f32 -2.0, %v8094_v62 }
 0x1ce   : > { %v1423_v33 = vpack.c.bf16 %v6881_v32, %v6879_v1  ;;  %v1403_v23 = vmul.f32 1.442695, %v1380_v29  ;;  %v1269_v24 = vsub.f32 0.0, %v1253_v55  ;;  %v1461_v16 = vmul.f32 1.75, %v5492_v27  ;;  %6372 = vmatpush3.bf16.msra.mxu0 %v6566_v58 }
 0x1cf   : > { %v6883_v59 = vpop.eup %6882  ;;  %6894 = vpow2.f32 %v1401_v9  ;;  %v1270_v42 = vsub.f32 0.0, %v1254_v7  ;;  %v1462_v17 = vmul.f32 1.75, %v5493_v19  ;;  %v5444_v3 = vadd.f32 -0.2857143, %v8080_v54  ;;  %6373 = vmatprep.subr.bf16.mxu0 %v6567_v45 }
 0x1d0   : > { %v6885_v15 = vpop.eup %6884  ;;  %2672 = vmatmul.mubr.bf16.gmra.mrb[40].mxu1 %v1423_v33  ;;  %6896 = vpow2.f32 %v1403_v23  ;;  %v1293_v6 = vmul.f32 1.442695, %v1269_v24  ;;  %v1477_v11 = vmul.f32 %v1461_v16, %v1461_v16  ;;  %v5445_v39 = vadd.f32 -0.2857143, %v8094_v62 }
 0x1d1   : > { %v1312_v41 = vpack.c.bf16 %v6885_v15, %v6883_v59  ;;  %v1295_v35 = vmul.f32 1.442695, %v1270_v42  ;;  %v1478_v13 = vmul.f32 %v1462_v17, %v1462_v17  ;;  %v1125_v53 = vmul.f32 1.75, %v5444_v3 }
 0x1d2   : > { %6898 = vpow2.f32 %v1293_v6  ;;  %v1493_v58 = vsub.f32 0.0, %v1477_v11  ;;  %v1126_v8 = vmul.f32 1.75, %v5445_v39  ;;  %v5476_v52 = vadd.f32 -1.4285715, %v8080_v54  ;;  %6374 = vmatpush3.bf16.msra.mxu0 %v6567_v45 }
 0x1d3   : > { %v6887_v44 = vpop.eup %6886  ;;  %2582 = vmatprep.mubr.bf16.mxu0 %v1312_v41  ;;  %6900 = vpow2.f32 %v1295_v35  ;;  %v1494_v20 = vsub.f32 0.0, %v1478_v13  ;;  %v1141_v49 = vmul.f32 %v1125_v53, %v1125_v53  ;;  %v5477_v57 = vadd.f32 -1.4285715, %v8094_v62 }
 0x1d4   : > { %v6889_v22 = vpop.eup %6888  ;;  %v1517_v60 = vmul.f32 1.442695, %v1493_v58  ;;  %v1142_v30 = vmul.f32 %v1126_v8, %v1126_v8  ;;  %v1349_v51 = vmul.f32 1.75, %v5476_v52  ;;  %v5462_v56 = vadd.f32 -0.85714287, %v8116_v48 }
 0x1d5   : > { %v1536_v37 = vpack.c.bf16 %v6889_v22, %v6887_v44  ;;  %v1519_v5 = vmul.f32 1.442695, %v1494_v20  ;;  %v1157_v10 = vsub.f32 0.0, %v1141_v49  ;;  %v1350_v12 = vmul.f32 1.75, %v5477_v57 }
 0x1d6   : > { %v6891_v47 = vpop.eup %6890  ;;  %6902 = vpow2.f32 %v1517_v60  ;;  %v1158_v54 = vsub.f32 0.0, %v1142_v30  ;;  %v1365_v45 = vmul.f32 %v1349_v51, %v1349_v51  ;;  %v5463_v1 = vadd.f32 -0.85714287, %v8121_v61 }
 0x1d7   : > { %v6893_v29 = vpop.eup %6892  ;;  %2679 = vmatprep.mubr.bf16.mxu1 %v1536_v37  ;;  %6904 = vpow2.f32 %v1519_v5  ;;  %v1181_v62 = vmul.f32 1.442695, %v1157_v10  ;;  %v1366_v55 = vmul.f32 %v1350_v12, %v1350_v12  ;;  %v1239_v27 = vmul.f32 1.75, %v5462_v56 }
 0x1d8   : > { %v1200_v32 = vpack.c.bf16 %v6893_v29, %v6891_v47  ;;  %v1183_v9 = vmul.f32 1.442695, %v1158_v54  ;;  %v1381_v7 = vsub.f32 0.0, %v1365_v45  ;;  %v1240_v19 = vmul.f32 1.75, %v5463_v1 }
 0x1d9   : > { %v6895_v33 = vpop.eup %6894  ;;  %6906 = vpow2.f32 %v1181_v62  ;;  %v1382_v23 = vsub.f32 0.0, %v1366_v55  ;;  %v1255_v24 = vmul.f32 %v1239_v27, %v1239_v27  ;;  %v5494_v16 = vadd.f32 -2.0, %v8116_v48 }
 0x1da   : > { %v6897_v59 = vpop.eup %6896  ;;  %2583 = vmatmul.mubr.bf16.gmra.mrb[44].mxu0 %v1200_v32  ;;  %6908 = vpow2.f32 %v1183_v9  ;;  %v1405_v42 = vmul.f32 1.442695, %v1381_v7  ;;  %v1256_v17 = vmul.f32 %v1240_v19, %v1240_v19  ;;  %v5495_v3 = vadd.f32 -2.0, %v8121_v61 }
 0x1db   : > { %v1424_v15 = vpack.c.bf16 %v6897_v59, %v6895_v33  ;;  %v1407_v6 = vmul.f32 1.442695, %v1382_v23  ;;  %v1271_v11 = vsub.f32 0.0, %v1255_v24  ;;  %v1463_v39 = vmul.f32 1.75, %v5494_v16 }
 0x1dc   : > { %v6899_v41 = vpop.eup %6898  ;;  %6910 = vpow2.f32 %v1405_v42  ;;  %v1272_v35 = vsub.f32 0.0, %v1256_v17  ;;  %v1464_v13 = vmul.f32 1.75, %v5495_v3  ;;  %v5446_v53 = vadd.f32 -0.2857143, %v8116_v48 }
 0x1dd   : > { %v6901_v58 = vpop.eup %6900  ;;  %2680 = vmatmul.mubr.bf16.gmra.mrb[44].mxu1 %v1424_v15  ;;  %6912 = vpow2.f32 %v1407_v6  ;;  %v1297_v8 = vmul.f32 1.442695, %v1271_v11  ;;  %v1479_v52 = vmul.f32 %v1463_v39, %v1463_v39  ;;  %v5447_v44 = vadd.f32 -0.2857143, %v8121_v61 }
 0x1de   : > { %v1313_v20 = vpack.c.bf16 %v6901_v58, %v6899_v41  ;;  %v1299_v49 = vmul.f32 1.442695, %v1272_v35  ;;  %v1480_v57 = vmul.f32 %v1464_v13, %v1464_v13  ;;  %v1127_v22 = vmul.f32 1.75, %v5446_v53 }
 0x1df   : > { %6914 = vpow2.f32 %v1297_v8  ;;  %v1495_v60 = vsub.f32 0.0, %v1479_v52  ;;  %v1128_v30 = vmul.f32 1.75, %v5447_v44  ;;  %v5478_v51 = vadd.f32 -1.4285715, %v8116_v48 }
 0x1e0   : > { %v6903_v56 = vpop.eup %6902  ;;  %2590 = vmatprep.mubr.bf16.mxu0 %v1313_v20  ;;  %6916 = vpow2.f32 %v1299_v49  ;;  %v1496_v37 = vsub.f32 0.0, %v1480_v57  ;;  %v1143_v5 = vmul.f32 %v1127_v22, %v1127_v22  ;;  %v5479_v10 = vadd.f32 -1.4285715, %v8121_v61 }
 0x1e1   : > { %v6905_v12 = vpop.eup %6904  ;;  %v1521_v47 = vmul.f32 1.442695, %v1495_v60  ;;  %v1144_v54 = vmul.f32 %v1128_v30, %v1128_v30  ;;  %v1351_v45 = vmul.f32 1.75, %v5478_v51  ;;  %v5464_v1 = vadd.f32 -0.85714287, %v8133_v40 }
 0x1e2   : > { %v1537_v29 = vpack.c.bf16 %v6905_v12, %v6903_v56  ;;  %v1523_v62 = vmul.f32 1.442695, %v1496_v37  ;;  %v1159_v55 = vsub.f32 0.0, %v1143_v5  ;;  %v1352_v27 = vmul.f32 1.75, %v5479_v10 }
 0x1e3   : > { %v6907_v32 = vpop.eup %6906  ;;  %6918 = vpow2.f32 %v1521_v47  ;;  %v1160_v48 = vsub.f32 0.0, %v1144_v54  ;;  %v1367_v9 = vmul.f32 %v1351_v45, %v1351_v45  ;;  %v5465_v7 = vadd.f32 -0.85714287, %v8140_v36 }
 0x1e4   : > { %v6909_v19 = vpop.eup %6908  ;;  %2687 = vmatprep.mubr.bf16.mxu1 %v1537_v29  ;;  %6920 = vpow2.f32 %v1523_v62  ;;  %v1185_v61 = vmul.f32 1.442695, %v1159_v55  ;;  %v1368_v33 = vmul.f32 %v1352_v27, %v1352_v27  ;;  %v1241_v23 = vmul.f32 1.75, %v5464_v1 }
 0x1e5   : > { %v1201_v24 = vpack.c.bf16 %v6909_v19, %v6907_v32  ;;  %v1187_v16 = vmul.f32 1.442695, %v1160_v48  ;;  %v1383_v59 = vsub.f32 0.0, %v1367_v9  ;;  %v1242_v42 = vmul.f32 1.75, %v5465_v7 }
 0x1e6   : > { %v6911_v17 = vpop.eup %6910  ;;  %6922 = vpow2.f32 %v1185_v61  ;;  %v1384_v3 = vsub.f32 0.0, %v1368_v33  ;;  %v1257_v15 = vmul.f32 %v1241_v23, %v1241_v23  ;;  %v5496_v6 = vadd.f32 -2.0, %v8133_v40 }
 0x1e7   : > { %v6913_v11 = vpop.eup %6912  ;;  %2591 = vmatmul.mubr.bf16.gmra.mrb[48].mxu0 %v1201_v24  ;;  %6924 = vpow2.f32 %v1187_v16  ;;  %v1409_v39 = vmul.f32 1.442695, %v1383_v59  ;;  %v1258_v41 = vmul.f32 %v1242_v42, %v1242_v42  ;;  %v5497_v35 = vadd.f32 -2.0, %v8140_v36 }
 0x1e8   : > { %v1425_v13 = vpack.c.bf16 %v6913_v11, %v6911_v17  ;;  %v1411_v53 = vmul.f32 1.442695, %v1384_v3  ;;  %v1273_v58 = vsub.f32 0.0, %v1257_v15  ;;  %v1465_v8 = vmul.f32 1.75, %v5496_v6 }
 0x1e9   : > { %v6915_v52 = vpop.eup %6914  ;;  %6926 = vpow2.f32 %v1409_v39  ;;  %v1274_v44 = vsub.f32 0.0, %v1258_v41  ;;  %v1466_v20 = vmul.f32 1.75, %v5497_v35  ;;  %v5448_v49 = vadd.f32 -0.2857143, %v8133_v40 }
 0x1ea   : > { %v6917_v57 = vpop.eup %6916  ;;  %2688 = vmatmul.mubr.bf16.gmra.mrb[48].mxu1 %v1425_v13  ;;  %6928 = vpow2.f32 %v1411_v53  ;;  %v1301_v22 = vmul.f32 1.442695, %v1273_v58  ;;  %v1481_v60 = vmul.f32 %v1465_v8, %v1465_v8  ;;  %v5449_v30 = vadd.f32 -0.2857143, %v8140_v36 }
 0x1eb   : > { %v1314_v51 = vpack.c.bf16 %v6917_v57, %v6915_v52  ;;  %v1303_v56 = vmul.f32 1.442695, %v1274_v44  ;;  %v1482_v37 = vmul.f32 %v1466_v20, %v1466_v20  ;;  %v1129_v5 = vmul.f32 1.75, %v5448_v49 }
 0x1ec   : > { %6930 = vpow2.f32 %v1301_v22  ;;  %v1497_v10 = vsub.f32 0.0, %v1481_v60  ;;  %v1130_v12 = vmul.f32 1.75, %v5449_v30  ;;  %v5480_v47 = vadd.f32 -1.4285715, %v8133_v40 }
 0x1ed   : > { %v6919_v54 = vpop.eup %6918  ;;  %2598 = vmatprep.mubr.bf16.mxu0 %v1314_v51  ;;  %6932 = vpow2.f32 %v1303_v56  ;;  %v1498_v45 = vsub.f32 0.0, %v1482_v37  ;;  %v1145_v1 = vmul.f32 %v1129_v5, %v1129_v5  ;;  %v5481_v29 = vadd.f32 -1.4285715, %v8140_v36 }
 0x1ee   : > { %v6921_v62 = vpop.eup %6920  ;;  %v1525_v55 = vmul.f32 1.442695, %v1497_v10  ;;  %v1146_v27 = vmul.f32 %v1130_v12, %v1130_v12  ;;  %v1353_v32 = vmul.f32 1.75, %v5480_v47  ;;  %v5466_v48 = vadd.f32 -0.85714287, %v8149_v4 }
 0x1ef   : > { %v1538_v9 = vpack.c.bf16 %v6921_v62, %v6919_v54  ;;  %v1527_v7 = vmul.f32 1.442695, %v1498_v45  ;;  %v1161_v19 = vsub.f32 0.0, %v1145_v1  ;;  %v1354_v61 = vmul.f32 1.75, %v5481_v29 }
 0x1f0   : > { %v6923_v33 = vpop.eup %6922  ;;  %6934 = vpow2.f32 %v1525_v55  ;;  %v1162_v40 = vsub.f32 0.0, %v1146_v27  ;;  %v1369_v23 = vmul.f32 %v1353_v32, %v1353_v32  ;;  %v5467_v24 = vadd.f32 -0.85714287, %v8168_v21 }
 0x1f1   : > { %v6925_v16 = vpop.eup %6924  ;;  %2695 = vmatprep.mubr.bf16.mxu1 %v1538_v9  ;;  %6936 = vpow2.f32 %v1527_v7  ;;  %v1189_v36 = vmul.f32 1.442695, %v1161_v19  ;;  %v1370_v59 = vmul.f32 %v1354_v61, %v1354_v61  ;;  %v1243_v42 = vmul.f32 1.75, %v5466_v48 }
 0x1f2   : > { %v1202_v17 = vpack.c.bf16 %v6925_v16, %v6923_v33  ;;  %v1191_v3 = vmul.f32 1.442695, %v1162_v40  ;;  %v1385_v15 = vsub.f32 0.0, %v1369_v23  ;;  %v1244_v6 = vmul.f32 1.75, %v5467_v24 }
 0x1f3   : > { %v6927_v11 = vpop.eup %6926  ;;  %6938 = vpow2.f32 %v1189_v36  ;;  %v1386_v39 = vsub.f32 0.0, %v1370_v59  ;;  %v1259_v41 = vmul.f32 %v1243_v42, %v1243_v42  ;;  %v5498_v35 = vadd.f32 -2.0, %v8149_v4 }
 0x1f4   : > { %v6929_v13 = vpop.eup %6928  ;;  %2599 = vmatmul.mubr.bf16.gmra.mrb[52].mxu0 %v1202_v17  ;;  %6940 = vpow2.f32 %v1191_v3  ;;  %v1413_v53 = vmul.f32 1.442695, %v1385_v15  ;;  %v1260_v58 = vmul.f32 %v1244_v6, %v1244_v6  ;;  %v5499_v8 = vadd.f32 -2.0, %v8168_v21 }
 0x1f5   : > { %v1426_v52 = vpack.c.bf16 %v6929_v13, %v6927_v11  ;;  %v1415_v44 = vmul.f32 1.442695, %v1386_v39  ;;  %v1275_v20 = vsub.f32 0.0, %v1259_v41  ;;  %v1467_v49 = vmul.f32 1.75, %v5498_v35 }
 0x1f6   : > { %v6931_v57 = vpop.eup %6930  ;;  %6942 = vpow2.f32 %v1413_v53  ;;  %v1276_v22 = vsub.f32 0.0, %v1260_v58  ;;  %v1468_v60 = vmul.f32 1.75, %v5499_v8  ;;  %v5450_v30 = vadd.f32 -0.2857143, %v8149_v4  ;;  %v8276_v53 = vld [vmem:[%s7763_s22 + $0x70] sm:$0xff] }
 0x1f7   : > { %v6933_v51 = vpop.eup %6932  ;;  %2696 = vmatmul.mubr.bf16.gmra.mrb[52].mxu1 %v1426_v52  ;;  %6944 = vpow2.f32 %v1415_v44  ;;  %v1305_v56 = vmul.f32 1.442695, %v1275_v20  ;;  %v1483_v37 = vmul.f32 %v1467_v49, %v1467_v49  ;;  %v5451_v5 = vadd.f32 -0.2857143, %v8168_v21  ;;  %v8280_v52 = vld [vmem:[%s7763_s22 + $0x78] sm:$0xff] }
 0x1f8   : > { %v1315_v10 = vpack.c.bf16 %v6933_v51, %v6931_v57  ;;  %v1307_v12 = vmul.f32 1.442695, %v1276_v22  ;;  %v1484_v47 = vmul.f32 %v1468_v60, %v1468_v60  ;;  %v1131_v54 = vmul.f32 1.75, %v5450_v30  ;;  %v7353_v22 = vld [vmem:[%s7763_s22] sm:$0xff]  ;;  %v7354_v30 = vld [vmem:[%s7763_s22 + $0x8] sm:$0xff] }
 0x1f9   : > { %6946 = vpow2.f32 %v1305_v56  ;;  %v1499_v45 = vsub.f32 0.0, %v1483_v37  ;;  %v1132_v1 = vmul.f32 1.75, %v5451_v5  ;;  %v5482_v29 = vadd.f32 -1.4285715, %v8149_v4 }
 0x1fa   : > { %v6935_v62 = vpop.eup %6934  ;;  %2606 = vmatprep.mubr.bf16.mxu0 %v1315_v10  ;;  %6948 = vpow2.f32 %v1307_v12  ;;  %v1500_v55 = vsub.f32 0.0, %v1484_v47  ;;  %v1147_v27 = vmul.f32 %v1131_v54, %v1131_v54  ;;  %v5483_v32 = vadd.f32 -1.4285715, %v8168_v21 }
 0x1fb   : > { %v6937_v48 = vpop.eup %6936  ;;  %6950 = vrcp.f32 %v7919_v28  ;;  %v1529_v9 = vmul.f32 1.442695, %v1499_v45  ;;  %v1148_v7 = vmul.f32 %v1132_v1, %v1132_v1  ;;  %v1355_v19 = vmul.f32 1.75, %v5482_v29  ;;  %v7355_v29 = vld [vmem:[%s7763_s22 + $0x10] sm:$0xff] }
 0x1fc   : > { %v1539_v61 = vpack.c.bf16 %v6937_v48, %v6935_v62  ;;  %v1531_v33 = vmul.f32 1.442695, %v1500_v55  ;;  %v1163_v40 = vsub.f32 0.0, %v1147_v27  ;;  %v1356_v23 = vmul.f32 1.75, %v5483_v32  ;;  %v7356_v55 = vld [vmem:[%s7763_s22 + $0x18] sm:$0xff] }
 0x1fd   : > { %v6939_v24 = vpop.eup %6938  ;;  %6952 = vpow2.f32 %v1529_v9  ;;  %v1164_v4 = vsub.f32 0.0, %v1148_v7  ;;  %v1371_v16 = vmul.f32 %v1355_v19, %v1355_v19  ;;  %v1602_v59 = vadd.f32 1.0, %v7888_v34  ;;  %v7357_v9 = vld [vmem:[%s7763_s22 + $0x20] sm:$0xff]  ;;  %v7358_v7 = vld [vmem:[%s7763_s22 + $0x28] sm:$0xff] }
 0x1fe   : > { %v6941_v36 = vpop.eup %6940  ;;  %2703 = vmatprep.mubr.bf16.mxu1 %v1539_v61  ;;  %6954 = vpow2.f32 %v1531_v33  ;;  %v1193_v21 = vmul.f32 1.442695, %v1163_v40  ;;  %v1372_v42 = vmul.f32 %v1356_v23, %v1356_v23  ;;  %v1603_v39 = vadd.f32 1.0, %v7892_v63 }
 0x1ff   : > { %6956 = vpow2.f32 %v7910_v14  ;;  %v1203_v28 = vpack.c.bf16 %v6941_v36, %v6939_v24  ;;  %v1195_v17 = vmul.f32 1.442695, %v1164_v4  ;;  %v1387_v3 = vsub.f32 0.0, %v1371_v16 }
 0x200   : > { %v6943_v15 = vpop.eup %6942  ;;  %6958 = vpow2.f32 %v1193_v21  ;;  %v1388_v6 = vsub.f32 0.0, %v1372_v42  ;;  %v1604_v41 = vadd.f32 1.0, %v7903_v18  ;;  %v5514_v58 = vmul.f32 -1.442695, %v8276_v53  ;;  %v8301_v21 = vld [vmem:[%s9085_s4] ss:$0 sm:$0xff] }
 0x201   : > { %v6945_v11 = vpop.eup %6944  ;;  %2607 = vmatmul.mubr.bf16.gmra.mrb[56].mxu0 %v1203_v28  ;;  %6960 = vpow2.f32 %v1195_v17  ;;  %v1417_v34 = vmul.f32 1.442695, %v1387_v3  ;;  %v5515_v63 = vmul.f32 -1.442695, %v8280_v52  ;;  %v1605_v18 = vadd.f32 1.0, %v7907_v0  ;;  %v7359_v3 = vld [vmem:[%s7763_s22 + $0x30] sm:$0xff] }
 0x202   : > { %6962 = vrcp.f32 %v1602_v59  ;;  %v1427_v35 = vpack.c.bf16 %v6945_v11, %v6943_v15  ;;  %v1419_v13 = vmul.f32 1.442695, %v1388_v6  ;;  %v1606_v49 = vadd.f32 1.0, %v7917_v26  ;;  %v7360_v6 = vld [vmem:[%s7763_s22 + $0x38] sm:$0xff] }
 0x203   : > { %v6947_v14 = vpop.eup %6946  ;;  %6964 = vpow2.f32 %v1417_v34  ;;  %v1645_v60 = vmul.f32 %v7353_v22, %v7949_v50  ;;  %v1646_v51 = vmul.f32 %v7354_v30, %v7955_v25  ;;  %v1607_v26 = vadd.f32 1.0, %v7928_v38 }
 0x204   : > { %v6949_v8 = vpop.eup %6948  ;;  %2704 = vmatmul.mubr.bf16.gmra.mrb[56].mxu1 %v1427_v35  ;;  %6966 = vpow2.f32 %v1419_v13  ;;  %v1608_v50 = vadd.f32 1.0, %v7937_v43  ;;  %v1609_v45 = vadd.f32 1.0, %v7943_v46  ;;  %v1647_v62 = vmul.f32 %v7355_v29, %v7967_v2 }
 0x205   : > { %v6951_v44 = vpop.eup %6950  ;;  %6968 = vrcp.f32 %v1603_v39  ;;  %v1316_v20 = vpack.c.bf16 %v6949_v8, %v6947_v14  ;;  %v1661_v12 = vpack.c.bf16 %v1646_v51, %v1645_v60  ;;  %v1648_v27 = vmul.f32 %v7356_v55, %v7975_v31  ;;  %v7361_v39 = vld [vmem:[%s7763_s22 + $0x40] sm:$0xff] }
 0x206   : > { %6970 = vrcp.f32 %v1604_v41  ;;  %v1649_v43 = vmul.f32 %v7357_v9, %v6951_v44  ;;  %v7362_v41 = vld [vmem:[%s7763_s22 + $0x48] sm:$0xff] }
 0x207   : > { %v6953_v57 = vpop.eup %6952  ;;  %6972 = vpow2.f32 %v5514_v58  ;;  %2614 = vmatprep.mubr.bf16.mxu0 %v1316_v20  ;;  %v1662_v31 = vpack.c.bf16 %v1648_v27, %v1647_v62 }
 0x208   : > { %v6955_v56 = vpop.eup %6954  ;;  %6974 = vpow2.f32 %v5515_v63 }
 0x209   : > { %v6957_v37 = vpop.eup %6956  ;;  %6976 = vrcp.f32 %v1605_v18  ;;  %v1540_v0 = vpack.c.bf16 %v6955_v56, %v6953_v57 }
 0x20a   : > { %v6959_v5 = vpop.eup %6958  ;;  %6978 = vrcp.f32 %v1606_v49  ;;  %v1610_v32 = vadd.f32 1.0, %v6957_v37 }
 0x20b   : > { %v6961_v10 = vpop.eup %6960  ;;  %2711 = vmatprep.mubr.bf16.mxu1 %v1540_v0  ;;  %6980 = vrcp.f32 %v1607_v26  ;;  %v7363_v0 = vld [vmem:[%s7763_s22 + $0x50] sm:$0xff] }
 0x20c   : > { %v6963_v47 = vpop.eup %6962  ;;  %v1204_v54 = vpack.c.bf16 %v6961_v10, %v6959_v5  ;;  %6982 = vrcp.f32 %v1608_v50  ;;  %v7364_v10 = vld [vmem:[%s7763_s22 + $0x58] sm:$0xff]  ;;  %v7366_v50 = vld [vmem:[%s7763_s22 + $0x68] sm:$0xff] }
 0x20d   : > { %v6965_v25 = vpop.eup %6964  ;;  %v1650_v19 = vmul.f32 %v7358_v7, %v6963_v47  ;;  %6984 = vrcp.f32 %v1609_v45 }
 0x20e   : > { %v6967_v1 = vpop.eup %6966  ;;  %2615 = vmatmul.mubr.bf16.gmra.mrb[60].mxu0 %v1204_v54  ;;  %6986 = vrcp.f32 %v1610_v32 }
 0x20f   : > { %v6969_v38 = vpop.eup %6968  ;;  %v1428_v48 = vpack.c.bf16 %v6967_v1, %v6965_v25  ;;  %6375 = vmatprep.mubr.bf16.mxu0 %v1661_v12  ;;  %v1663_v24 = vpack.c.bf16 %v1650_v19, %v1649_v43  ;;  %v7365_v12 = vld [vmem:[%s7763_s22 + $0x60] sm:$0xff] }
 0x210   : > { %v6971_v61 = vpop.eup %6970  ;;  %v1651_v15 = vmul.f32 %v7359_v3, %v6969_v38 }
 0x211   : > { %v6973_v46 = vpop.eup %6972  ;;  %2712 = vmatmul.mubr.bf16.gmra.mrb[60].mxu1 %v1428_v48  ;;  %v5831_v33 = vpop.f32.mrb[0].mxu0  ;;  %v1652_v11 = vmul.f32 %v7360_v6, %v6971_v61 }
 0x212   : > { %v6975_v2 = vpop.eup %6974  ;;  %v5832_v40 = vpop.f32.mrb[1].mxu0  ;;  %v1611_v59 = vadd.f32 1.0, %v6973_v46 }
 0x213   : > { %v6977_v23 = vpop.eup %6976  ;;  %v5833_v4 = vadd.f32 %v5832_v40, %v5831_v33  ;;  %v5834_v16 = vpop.f32.mrb[2].mxu0  ;;  %v1612_v28 = vadd.f32 1.0, %v6975_v2  ;;  %v1664_v49 = vpack.c.bf16 %v1652_v11, %v1651_v15 }
 0x214   : > { %v6979_v36 = vpop.eup %6978  ;;  %v5835_v42 = vpop.f32.mrb[3].mxu0  ;;  %v1653_v34 = vmul.f32 %v7361_v39, %v6977_v23  ;;  %6988 = vrcp.f32 %v1611_v59 }
 0x215   : > { %v5836_v17 = vadd.f32 %v5835_v42, %v5834_v16  ;;  %v1654_v35 = vmul.f32 %v7362_v41, %v6979_v36  ;;  %v2367_v14 = vadd.f32 %v5833_v4, %v8301_v21  ;;  %v6981_v8 = vpop.eup %6980  ;;  %6990 = vrcp.f32 %v1612_v28 }
 0x216   : > { %6376 = vmatmul.mubr.bf16.vlgmr.msra.gmra.mrb[64].mxu0 %v1662_v31  ;;  %v6983_v20 = vpop.eup %6982  ;;  %v1655_v5 = vmul.f32 %v7363_v0, %v6981_v8 }
 0x217   : > { %6379 = vmatprep.mubr.bf16.mxu0 %v1663_v24  ;;  %v5895_v13 = vpop.f32.mrb[0].mxu1  ;;  %v2370_v18 = vadd.f32 %v5836_v17, %v8301_v21  ;;  %v6985_v22 = vpop.eup %6984  ;;  %v1665_v60 = vpack.c.bf16 %v1654_v35, %v1653_v34  ;;  %v1656_v26 = vmul.f32 %v7364_v10, %v6983_v20 }
 0x218   : > { %v5896_v58 = vpop.f32.mrb[1].mxu1  ;;  %v6987_v56 = vpop.eup %6986  ;;  %v1657_v47 = vmul.f32 %v7365_v12, %v6985_v22 }
 0x219   : > { %v5897_v63 = vadd.f32 %v5896_v58, %v5895_v13  ;;  %v5898_v44 = vpop.f32.mrb[2].mxu1  ;;  %v1658_v54 = vmul.f32 %v7366_v50, %v6987_v56  ;;  %v1666_v45 = vpack.c.bf16 %v1656_v26, %v1655_v5 }
 0x21a   : > { %v5899_v57 = vpop.f32.mrb[3].mxu1 }
 0x21b   : > { %v8309_v30 = vadd.f32 %v5897_v63, %v2367_v14  ;;  %v5900_v51 = vadd.f32 %v5899_v57, %v5898_v44  ;;  %v1667_v29 = vpack.c.bf16 %v1658_v54, %v1657_v47 }
 0x21d   : > { %v8311_v37 = vadd.f32 %v5900_v51, %v2370_v18 }
 0x21e   : > { %6380 = vmatmul.mubr.bf16.gmra.mrb[68].mxu0 %v1664_v49  ;;  %v6989_v25 = vpop.eup %6988 }
 0x21f   : > { %6383 = vmatprep.mubr.bf16.mxu0 %v1665_v60  ;;  %v6991_v1 = vpop.eup %6990  ;;  %v1659_v62 = vmul.f32 %v8276_v53, %v6989_v25 }
 0x220   : > { %v1660_v55 = vmul.f32 %v8280_v52, %v6991_v1 }
 0x222   : > { %v1668_v38 = vpack.c.bf16 %v1660_v55, %v1659_v62 }
 0x226   : > { %6384 = vmatmul.mubr.bf16.gmra.mrb[72].mxu0 %v1666_v45 }
 0x227   : > { %6387 = vmatprep.mubr.bf16.mxu0 %v1667_v29 }
 0x228   : > { %v5837_v27 = vpop.f32.mrb[4].mxu0 }
 0x229   : > { %v5838_v32 = vpop.f32.mrb[5].mxu0 }
 0x22a   : > { %v5839_v48 = vadd.f32 %v5838_v32, %v5837_v27  ;;  %v5840_v9 = vpop.f32.mrb[6].mxu0 }
 0x22b   : > { %v5901_v43 = vpop.f32.mrb[4].mxu1  ;;  %v5841_v7 = vpop.f32.mrb[7].mxu0 }
 0x22c   : > { %v2375_v19 = vadd.f32 %v5839_v48, %v8301_v21  ;;  %v5902_v61 = vpop.f32.mrb[5].mxu1  ;;  %v5842_v46 = vadd.f32 %v5841_v7, %v5840_v9 }
 0x22d   : > { %v5903_v33 = vadd.f32 %v5902_v61, %v5901_v43  ;;  %v5904_v2 = vpop.f32.mrb[6].mxu1 }
 0x22e   : > { %6388 = vmatmul.mubr.bf16.gmra.mrb[76].mxu0 %v1668_v38  ;;  %v2378_v31 = vadd.f32 %v5842_v46, %v8301_v21  ;;  %v5905_v53 = vpop.f32.mrb[7].mxu1 }
 0x22f   : > { %v8321_v40 = vadd.f32 %v5903_v33, %v2375_v19  ;;  %v5906_v52 = vadd.f32 %v5905_v53, %v5904_v2 }
 0x231   : > { %v8323_v23 = vadd.f32 %v5906_v52, %v2378_v31 }
 0x238   : > { %v5843_v24 = vpop.f32.mrb[8].mxu0 }
 0x239   : > { %v5844_v4 = vpop.f32.mrb[9].mxu0 }
 0x23a   : > { %v5907_v16 = vpop.f32.mrb[8].mxu1  ;;  %v5845_v36 = vadd.f32 %v5844_v4, %v5843_v24  ;;  %v5846_v59 = vpop.f32.mrb[10].mxu0 }
 0x23b   : > { %v5908_v42 = vpop.f32.mrb[9].mxu1  ;;  %v5847_v28 = vpop.f32.mrb[11].mxu0 }
 0x23c   : > { %v2383_v17 = vadd.f32 %v5845_v36, %v8301_v21  ;;  %v5909_v3 = vadd.f32 %v5908_v42, %v5907_v16  ;;  %v5910_v15 = vpop.f32.mrb[10].mxu1  ;;  %v5848_v6 = vadd.f32 %v5847_v28, %v5846_v59 }
 0x23d   : > { %v5911_v11 = vpop.f32.mrb[11].mxu1 }
 0x23e   : > { %v8326_v39 = vadd.f32 %v5909_v3, %v2383_v17  ;;  %v2386_v34 = vadd.f32 %v5848_v6, %v8301_v21  ;;  %v5912_v41 = vadd.f32 %v5911_v11, %v5910_v15 }
 0x240   : > { %v8329_v35 = vadd.f32 %v5912_v41, %v2386_v34 }
 0x245   : > { %v5849_v13 = vpop.f32.mrb[12].mxu0 }
 0x246   : > { %v5850_v14 = vpop.f32.mrb[13].mxu0 }
 0x247   : > { %v5851_v58 = vadd.f32 %v5850_v14, %v5849_v13  ;;  %v5852_v8 = vpop.f32.mrb[14].mxu0 }
 0x248   : > { %v5853_v63 = vpop.f32.mrb[15].mxu0 }
 0x249   : > { %v5913_v44 = vpop.f32.mrb[12].mxu1  ;;  %v2391_v18 = vadd.f32 %v5851_v58, %v8301_v21  ;;  %v5854_v20 = vadd.f32 %v5853_v63, %v5852_v8 }
 0x24a   : > { %v5914_v49 = vpop.f32.mrb[13].mxu1 }
 0x24b   : > { %v5915_v57 = vadd.f32 %v5914_v49, %v5913_v44  ;;  %v5916_v22 = vpop.f32.mrb[14].mxu1  ;;  %v2394_v60 = vadd.f32 %v5854_v20, %v8301_v21 }
 0x24c   : > { %v5917_v51 = vpop.f32.mrb[15].mxu1 }
 0x24d   : > { %v8333_v56 = vadd.f32 %v5915_v57, %v2391_v18  ;;  %v5918_v0 = vadd.f32 %v5917_v51, %v5916_v22 }
 0x24f   : > { %v8335_v5 = vadd.f32 %v5918_v0, %v2394_v60 }
 0x252   : > { %v5855_v10 = vpop.f32.mrb[16].mxu0 }
 0x253   : > { %v5856_v26 = vpop.f32.mrb[17].mxu0 }
 0x254   : > { %v5857_v12 = vadd.f32 %v5856_v26, %v5855_v10  ;;  %v5858_v47 = vpop.f32.mrb[18].mxu0 }
 0x255   : > { %v5919_v50 = vpop.f32.mrb[16].mxu1  ;;  %v5859_v54 = vpop.f32.mrb[19].mxu0 }
 0x256   : > { %v2399_v25 = vadd.f32 %v5857_v12, %v8301_v21  ;;  %v5920_v45 = vpop.f32.mrb[17].mxu1  ;;  %v5860_v1 = vadd.f32 %v5859_v54, %v5858_v47 }
 0x257   : > { %v5921_v29 = vadd.f32 %v5920_v45, %v5919_v50  ;;  %v5922_v62 = vpop.f32.mrb[18].mxu1 }
 0x258   : > { %v2402_v55 = vadd.f32 %v5860_v1, %v8301_v21  ;;  %v5923_v27 = vpop.f32.mrb[19].mxu1 }
 0x259   : > { %v8339_v32 = vadd.f32 %v5921_v29, %v2399_v25  ;;  %v5924_v38 = vadd.f32 %v5923_v27, %v5922_v62 }
 0x25b   : > { %v8341_v48 = vadd.f32 %v5924_v38, %v2402_v55 }
 0x25f   : > { %v5861_v9 = vpop.f32.mrb[20].mxu0 }
 0x260   : > { %v5862_v43 = vpop.f32.mrb[21].mxu0 }
 0x261   : > { %v5863_v7 = vadd.f32 %v5862_v43, %v5861_v9  ;;  %v5864_v19 = vpop.f32.mrb[22].mxu0 }
 0x262   : > { %v5925_v61 = vpop.f32.mrb[20].mxu1  ;;  %v5865_v46 = vpop.f32.mrb[23].mxu0 }
 0x263   : > { %v2407_v33 = vadd.f32 %v5863_v7, %v8301_v21  ;;  %v5926_v2 = vpop.f32.mrb[21].mxu1  ;;  %v5866_v31 = vadd.f32 %v5865_v46, %v5864_v19 }
 0x264   : > { %v5927_v53 = vadd.f32 %v5926_v2, %v5925_v61  ;;  %v5928_v52 = vpop.f32.mrb[22].mxu1 }
 0x265   : > { %v2410_v24 = vadd.f32 %v5866_v31, %v8301_v21  ;;  %v5929_v4 = vpop.f32.mrb[23].mxu1 }
 0x266   : > { %v8345_v16 = vadd.f32 %v5927_v53, %v2407_v33  ;;  %v5930_v36 = vadd.f32 %v5929_v4, %v5928_v52 }
 0x268   : > { %v8347_v59 = vadd.f32 %v5930_v36, %v2410_v24 }
 0x26c   : > { %v5867_v42 = vpop.f32.mrb[24].mxu0 }
 0x26d   : > { %v5868_v28 = vpop.f32.mrb[25].mxu0 }
 0x26e   : > { %v5869_v17 = vadd.f32 %v5868_v28, %v5867_v42  ;;  %v5870_v3 = vpop.f32.mrb[26].mxu0 }
 0x26f   : > { %v5931_v15 = vpop.f32.mrb[24].mxu1  ;;  %v5871_v6 = vpop.f32.mrb[27].mxu0 }
 0x270   : > { %v2415_v11 = vadd.f32 %v5869_v17, %v8301_v21  ;;  %v5932_v34 = vpop.f32.mrb[25].mxu1  ;;  %v5872_v41 = vadd.f32 %v5871_v6, %v5870_v3 }
 0x271   : > { %v5933_v13 = vadd.f32 %v5932_v34, %v5931_v15  ;;  %v5934_v14 = vpop.f32.mrb[26].mxu1 }
 0x272   : > { %v2418_v58 = vadd.f32 %v5872_v41, %v8301_v21  ;;  %v5935_v8 = vpop.f32.mrb[27].mxu1 }
 0x273   : > { %v8351_v63 = vadd.f32 %v5933_v13, %v2415_v11  ;;  %v5936_v44 = vadd.f32 %v5935_v8, %v5934_v14 }
 0x275   : > { %v8353_v18 = vadd.f32 %v5936_v44, %v2418_v58 }
 0x279   : > { %v5873_v20 = vpop.f32.mrb[28].mxu0 }
 0x27a   : > { %v5874_v49 = vpop.f32.mrb[29].mxu0 }
 0x27b   : > { %v5875_v57 = vadd.f32 %v5874_v49, %v5873_v20  ;;  %v5876_v22 = vpop.f32.mrb[30].mxu0 }
 0x27c   : > { %v5937_v60 = vpop.f32.mrb[28].mxu1  ;;  %v5877_v51 = vpop.f32.mrb[31].mxu0 }
 0x27d   : > { %v2423_v0 = vadd.f32 %v5875_v57, %v8301_v21  ;;  %v5938_v10 = vpop.f32.mrb[29].mxu1  ;;  %v5878_v26 = vadd.f32 %v5877_v51, %v5876_v22 }
 0x27e   : > { %v5939_v12 = vadd.f32 %v5938_v10, %v5937_v60  ;;  %v5940_v47 = vpop.f32.mrb[30].mxu1 }
 0x27f   : > { %v2426_v50 = vadd.f32 %v5878_v26, %v8301_v21  ;;  %v5941_v54 = vpop.f32.mrb[31].mxu1 }
 0x280   : > { %v8357_v25 = vadd.f32 %v5939_v12, %v2423_v0  ;;  %v5942_v45 = vadd.f32 %v5941_v54, %v5940_v47  ;;  %v6568_v47 = vld [vmem:[#allocation8 + $0x40] sm:$0xff]   ;;  %v6570_v54 = vld [vmem:[#allocation8 + $0x48] sm:$0xff]  }
 0x281   : > { %6087 = vmatprep.subr.bf16.mxu1 %v6568_v47 }
 0x282   : > { %v8359_v1 = vadd.f32 %v5942_v45, %v2426_v50  ;;  %v6569_v50 = vld [vmem:[#allocation8] sm:$0xff]  }
 0x283   : > { %6088 = vmatpush3.bf16.msra.mxu1 %v6569_v50 }
 0x284   : > { %6089 = vmatprep.subr.bf16.mxu1 %v6570_v54 }
 0x286   : > { %v5959_v29 = vpop.f32.mrb[32].mxu0 }
 0x287   : > { %v5960_v62 = vpop.f32.mrb[33].mxu0 }
 0x288   : > { %v5961_v55 = vadd.f32 %v5960_v62, %v5959_v29  ;;  %v5962_v27 = vpop.f32.mrb[34].mxu0 }
 0x289   : > { %v6023_v38 = vpop.f32.mrb[32].mxu1  ;;  %v5963_v9 = vpop.f32.mrb[35].mxu0 }
 0x28a   : > { %v2561_v43 = vadd.f32 %v5961_v55, %v8309_v30  ;;  %v6024_v7 = vpop.f32.mrb[33].mxu1  ;;  %v5964_v19 = vadd.f32 %v5963_v9, %v5962_v27 }
 0x28b   : > { %v6025_v61 = vadd.f32 %v6024_v7, %v6023_v38  ;;  %v6026_v46 = vpop.f32.mrb[34].mxu1 }
 0x28c   : > { %v2564_v21 = vadd.f32 %v5964_v19, %v8311_v37  ;;  %v6027_v33 = vpop.f32.mrb[35].mxu1 }
 0x28d   : > { %v6028_v2 = vadd.f32 %v6027_v33, %v6026_v46  ;;  %v8363_v31 = vadd.f32 %v6025_v61, %v2561_v43 }
 0x28f   : > { %v8365_v53 = vadd.f32 %v6028_v2, %v2564_v21 }
 0x293   : > { %v5965_v52 = vpop.f32.mrb[36].mxu0 }
 0x294   : > { %v5966_v24 = vpop.f32.mrb[37].mxu0 }
 0x295   : > { %v5967_v4 = vadd.f32 %v5966_v24, %v5965_v52  ;;  %v5968_v36 = vpop.f32.mrb[38].mxu0 }
 0x296   : > { %v6029_v42 = vpop.f32.mrb[36].mxu1  ;;  %v5969_v28 = vpop.f32.mrb[39].mxu0 }
 0x297   : > { %v2569_v30 = vadd.f32 %v5967_v4, %v8321_v40  ;;  %v6030_v17 = vpop.f32.mrb[37].mxu1  ;;  %v5970_v3 = vadd.f32 %v5969_v28, %v5968_v36 }
 0x298   : > { %v6031_v15 = vadd.f32 %v6030_v17, %v6029_v42  ;;  %v6032_v6 = vpop.f32.mrb[38].mxu1 }
 0x299   : > { %v2572_v37 = vadd.f32 %v5970_v3, %v8323_v23  ;;  %v6033_v11 = vpop.f32.mrb[39].mxu1 }
 0x29a   : > { %v6034_v34 = vadd.f32 %v6033_v11, %v6032_v6  ;;  %v8369_v41 = vadd.f32 %v6031_v15, %v2569_v30 }
 0x29c   : > { %v8371_v13 = vadd.f32 %v6034_v34, %v2572_v37 }
 0x2a0   : > { %v5971_v14 = vpop.f32.mrb[40].mxu0 }
 0x2a1   : > { %v5972_v58 = vpop.f32.mrb[41].mxu0 }
 0x2a2   : > { %v5973_v8 = vadd.f32 %v5972_v58, %v5971_v14  ;;  %v5974_v44 = vpop.f32.mrb[42].mxu0 }
 0x2a3   : > { %v6035_v20 = vpop.f32.mrb[40].mxu1  ;;  %v5975_v49 = vpop.f32.mrb[43].mxu0 }
 0x2a4   : > { %v2577_v40 = vadd.f32 %v5973_v8, %v8326_v39  ;;  %v6036_v57 = vpop.f32.mrb[41].mxu1  ;;  %v5976_v22 = vadd.f32 %v5975_v49, %v5974_v44  ;;  %v6571_v39 = vld [vmem:[#allocation8 + $0x8] sm:$0xff]  }
 0x2a5   : > { %v6037_v60 = vadd.f32 %v6036_v57, %v6035_v20  ;;  %v6038_v51 = vpop.f32.mrb[42].mxu1  ;;  %6090 = vmatpush3.bf16.msra.mxu1 %v6571_v39 }
 0x2a6   : > { %v2580_v23 = vadd.f32 %v5976_v22, %v8329_v35  ;;  %v6039_v0 = vpop.f32.mrb[43].mxu1 }
 0x2a7   : > { %v6040_v10 = vadd.f32 %v6039_v0, %v6038_v51  ;;  %v8375_v26 = vadd.f32 %v6037_v60, %v2577_v40 }
 0x2a9   : > { %v8377_v12 = vadd.f32 %v6040_v10, %v2580_v23 }
 0x2ad   : > { %v5977_v45 = vpop.f32.mrb[44].mxu0 }
 0x2ae   : > { %v5978_v29 = vpop.f32.mrb[45].mxu0 }
 0x2af   : > { %v5979_v62 = vadd.f32 %v5978_v29, %v5977_v45  ;;  %v5980_v55 = vpop.f32.mrb[46].mxu0 }
 0x2b0   : > { %v6041_v27 = vpop.f32.mrb[44].mxu1  ;;  %v5981_v38 = vpop.f32.mrb[47].mxu0 }
 0x2b1   : > { %v2585_v35 = vadd.f32 %v5979_v62, %v8333_v56  ;;  %v6042_v9 = vpop.f32.mrb[45].mxu1  ;;  %v5982_v43 = vadd.f32 %v5981_v38, %v5980_v55 }
 0x2b2   : > { %v6043_v7 = vadd.f32 %v6042_v9, %v6041_v27  ;;  %v6044_v19 = vpop.f32.mrb[46].mxu1 }
 0x2b3   : > { %v2588_v61 = vadd.f32 %v5982_v43, %v8335_v5  ;;  %v6045_v46 = vpop.f32.mrb[47].mxu1 }
 0x2b4   : > { %v6046_v21 = vadd.f32 %v6045_v46, %v6044_v19  ;;  %v8381_v33 = vadd.f32 %v6043_v7, %v2585_v35 }
 0x2b6   : > { %v8383_v2 = vadd.f32 %v6046_v21, %v2588_v61 }
 0x2ba   : > { %v5983_v52 = vpop.f32.mrb[48].mxu0 }
 0x2bb   : > { %v5984_v24 = vpop.f32.mrb[49].mxu0 }
 0x2bc   : > { %v5985_v4 = vadd.f32 %v5984_v24, %v5983_v52  ;;  %v5986_v36 = vpop.f32.mrb[50].mxu0 }
 0x2bd   : > { %v6047_v42 = vpop.f32.mrb[48].mxu1  ;;  %v5987_v28 = vpop.f32.mrb[51].mxu0 }
 0x2be   : > { %v2593_v56 = vadd.f32 %v5985_v4, %v8339_v32  ;;  %v6048_v30 = vpop.f32.mrb[49].mxu1  ;;  %v5988_v17 = vadd.f32 %v5987_v28, %v5986_v36 }
 0x2bf   : > { %v6049_v3 = vadd.f32 %v6048_v30, %v6047_v42  ;;  %v6050_v15 = vpop.f32.mrb[50].mxu1 }
 0x2c0   : > { %v2596_v5 = vadd.f32 %v5988_v17, %v8341_v48  ;;  %v6051_v6 = vpop.f32.mrb[51].mxu1 }
 0x2c1   : > { %v6052_v37 = vadd.f32 %v6051_v6, %v6050_v15  ;;  %v8387_v11 = vadd.f32 %v6049_v3, %v2593_v56 }
 0x2c3   : > { %v8389_v34 = vadd.f32 %v6052_v37, %v2596_v5 }
 0x2c7   : > { %v5989_v14 = vpop.f32.mrb[52].mxu0 }
 0x2c8   : > { %v5990_v58 = vpop.f32.mrb[53].mxu0 }
 0x2c9   : > { %v5991_v8 = vadd.f32 %v5990_v58, %v5989_v14  ;;  %v5992_v44 = vpop.f32.mrb[54].mxu0 }
 0x2ca   : > { %v6053_v20 = vpop.f32.mrb[52].mxu1  ;;  %v5993_v49 = vpop.f32.mrb[55].mxu0 }
 0x2cb   : > { %v2601_v32 = vadd.f32 %v5991_v8, %v8345_v16  ;;  %v6054_v40 = vpop.f32.mrb[53].mxu1  ;;  %v5994_v57 = vadd.f32 %v5993_v49, %v5992_v44 }
 0x2cc   : > { %v6055_v22 = vadd.f32 %v6054_v40, %v6053_v20  ;;  %v6056_v60 = vpop.f32.mrb[54].mxu1 }
 0x2cd   : > { %v2604_v48 = vadd.f32 %v5994_v57, %v8347_v59  ;;  %v6057_v51 = vpop.f32.mrb[55].mxu1 }
 0x2ce   : > { %v6058_v23 = vadd.f32 %v6057_v51, %v6056_v60  ;;  %v2698_v0 = vadd.f32 %v6055_v22, %v2601_v32 }
 0x2d0   : > { %v8393_v10 = vadd.f32 %v6058_v23, %v2604_v48 }
 0x2d4   : > { %v5995_v47 = vpop.f32.mrb[56].mxu0 }
 0x2d5   : > { %v5996_v50 = vpop.f32.mrb[57].mxu0 }
 0x2d6   : > { %v5997_v54 = vadd.f32 %v5996_v50, %v5995_v47  ;;  %v5998_v45 = vpop.f32.mrb[58].mxu0 }
 0x2d7   : > { %v6059_v29 = vpop.f32.mrb[56].mxu1  ;;  %v5999_v39 = vpop.f32.mrb[59].mxu0 }
 0x2d8   : > { %v2609_v62 = vadd.f32 %v5997_v54, %v8351_v63  ;;  %v6060_v16 = vpop.f32.mrb[57].mxu1  ;;  %v6000_v55 = vadd.f32 %v5999_v39, %v5998_v45 }
 0x2d9   : > { %v6061_v27 = vadd.f32 %v6060_v16, %v6059_v29  ;;  %v6062_v38 = vpop.f32.mrb[58].mxu1 }
 0x2da   : > { %v2612_v35 = vadd.f32 %v6000_v55, %v8353_v18  ;;  %v6063_v59 = vpop.f32.mrb[59].mxu1 }
 0x2db   : > { %v6064_v9 = vadd.f32 %v6063_v59, %v6062_v38  ;;  %v2706_v43 = vadd.f32 %v6061_v27, %v2609_v62  ;;  %v6572_v38 = vld [vmem:[#allocation8 + $0x50] sm:$0xff]  }
 0x2dc   : > { %6091 = vmatprep.subr.bf16.mxu1 %v6572_v38 }
 0x2dd   : > { %v8397_v7 = vadd.f32 %v6064_v9, %v2612_v35  ;;  %v6573_v35 = vld [vmem:[#allocation8 + $0x10] sm:$0xff]  }
 0x2de   : > { %6092 = vmatpush3.bf16.msra.mxu1 %v6573_v35 }
 0x2e1   : > { %v6001_v19 = vpop.f32.mrb[60].mxu0 }
 0x2e2   : > { %v6002_v61 = vpop.f32.mrb[61].mxu0 }
 0x2e3   : > { %v6003_v46 = vadd.f32 %v6002_v61, %v6001_v19  ;;  %v6004_v21 = vpop.f32.mrb[62].mxu0 }
 0x2e4   : > { %v6065_v52 = vpop.f32.mrb[60].mxu1  ;;  %v6005_v24 = vpop.f32.mrb[63].mxu0 }
 0x2e5   : > { %v2617_v4 = vadd.f32 %v6003_v46, %v8357_v25  ;;  %v6066_v63 = vpop.f32.mrb[61].mxu1  ;;  %v6006_v36 = vadd.f32 %v6005_v24, %v6004_v21  ;;  %v6576_v46 = vld [vmem:[#allocation8 + $0x60] sm:$0xff]  }
 0x2e6   : > { %v6067_v42 = vadd.f32 %v6066_v63, %v6065_v52  ;;  %v6068_v28 = vpop.f32.mrb[62].mxu1  ;;  %v6577_v21 = vld [vmem:[#allocation8 + $0x20] sm:$0xff]  }
 0x2e7   : > { %v2620_v56 = vadd.f32 %v6006_v36, %v8359_v1  ;;  %v6069_v18 = vpop.f32.mrb[63].mxu1  ;;  %v6578_v52 = vld [vmem:[#allocation8 + $0xc0] sm:$0xff]   ;;  %v6581_v36 = vld [vmem:[#allocation8 + $0x88] sm:$0xff]  }
 0x2e8   : > { %v6070_v30 = vadd.f32 %v6069_v18, %v6068_v28  ;;  %v2714_v17 = vadd.f32 %v6067_v42, %v2617_v4  ;;  %6151 = vmatprep.subr.bf16.mxu0 %v6578_v52  ;;  %v6579_v24 = vld [vmem:[#allocation8 + $0x80] sm:$0xff]   ;;  %v6580_v4 = vld [vmem:[#allocation8 + $0xc8] sm:$0xff]   ;;  %v6584_v18 = vld [vmem:[#allocation8 + $0xd0] sm:$0xff]  }
 0x2e9   : > { %v6377_v3 = vpop.f32.mrb[64].mxu0  ;;  %6152 = vmatpush3.bf16.msra.mxu0 %v6579_v24  ;;  %v6582_v28 = vld [vmem:[#allocation8 + $0x68] sm:$0xff]  }
 0x2ea   : > { %v8402_v15 = vadd.f32 %v6377_v3, %v8369_v41  ;;  %v2754_v5 = vpop.f32.mrb[65].mxu0  ;;  %v2717_v6 = vadd.f32 %v6070_v30, %v2620_v56  ;;  %6153 = vmatprep.subr.bf16.mxu0 %v6580_v4  ;;  %v6583_v56 = vld [vmem:[#allocation8 + $0x28] sm:$0xff]   ;;  %v6585_v30 = vld [vmem:[#allocation8 + $0x90] sm:$0xff]   ;;  %v6587_v3 = vld [vmem:[#allocation8 + $0x98] sm:$0xff]  }
 0x2eb   : > { %v8405_v37 = vadd.f32 %v2754_v5, %v8363_v31  ;;  %v6378_v14 = vpop.f32.mrb[66].mxu0  ;;  %v6588_v5 = vld [vmem:[#allocation8 + $0x70] sm:$0xff]  }
 0x2ec   : > { %9117 = vst [vmem:[#allocation14_spill] sm:$0xff] %v8402_v15  ;;  %v8408_v25 = vadd.f32 %v6378_v14, %v8371_v13  ;;  %v2757_v58 = vpop.f32.mrb[67].mxu0  ;;  %v6590_v14 = vld [vmem:[#allocation8 + $0xe0] sm:$0xff]  }
 0x2ed   : > { %v8411_v8 = vadd.f32 %v2757_v58, %v8365_v53  ;;  %2817 = vadd.xlane.f32.xlu0 %v8405_v37  ;;  %v2865_v1 = vmul.f32 %v8405_v37, %v8405_v37  ;;  %6154 = vmatpush3.bf16.msra.mxu0 %v6581_v36  ;;  %v6591_v58 = vld [vmem:[#allocation8 + $0xa0] sm:$0xff]  }
 0x2ee   : > { %6155 = vmatprep.subr.bf16.mxu0 %v6584_v18 }
 0x2ef   : > { %2819 = vadd.xlane.f32.xlu1 %v8411_v8  ;;  %v2866_v31 = vmul.f32 %v8411_v8, %v8411_v8 }
 0x2f1   : > { %v6381_v41 = vpop.f32.mrb[68].mxu0  ;;  %2881 = vadd.xlane.f32.xlu0 %v2865_v1  ;;  %6156 = vmatpush3.bf16.msra.mxu0 %v6585_v30  ;;  %v6592_v1 = vld [vmem:[#allocation8 + $0xe8] sm:$0xff]  }
 0x2f2   : > { %v8420_v44 = vadd.f32 %v6381_v41, %v8381_v33  ;;  %v2770_v13 = vpop.f32.mrb[69].mxu0  ;;  %v2867_v33 = vmul.f32 %v8402_v15, %v8402_v15  ;;  %v6593_v41 = vld [vmem:[#allocation8 + $0xa8] sm:$0xff]  }
 0x2f3   : > { %v8423_v20 = vadd.f32 %v2770_v13, %v8375_v26  ;;  %v6382_v53 = vpop.f32.mrb[70].mxu0  ;;  %2883 = vadd.xlane.f32.xlu1 %v2866_v31  ;;  %v2868_v26 = vmul.f32 %v8408_v25, %v8408_v25  ;;  %v6594_v31 = vld [vmem:[#allocation8 + $0x78] sm:$0xff]  }
 0x2f4   : > { %9118 = vst [vmem:[#allocation15_spill] sm:$0xff] %v8420_v44  ;;  %v8426_v49 = vadd.f32 %v6382_v53, %v8383_v2  ;;  %v2773_v32 = vpop.f32.mrb[71].mxu0  ;;  %v2871_v62 = vmul.f32 %v8420_v44, %v8420_v44  ;;  %v6595_v13 = vld [vmem:[#allocation8 + $0x38] sm:$0xff]   ;;  %v6596_v53 = vld [vmem:[#allocation8 + $0xf0] sm:$0xff]  }
 0x2f5   : > { %9119 = vst [vmem:[#allocation16_spill] sm:$0xff] %v8423_v20  ;;  %v8429_v40 = vadd.f32 %v2773_v32, %v8377_v12  ;;  %2821 = vadd.xlane.f32.xlu0 %v8402_v15  ;;  %v6597_v32 = vld [vmem:[#allocation8 + $0xb0] sm:$0xff]  }
 0x2f6   : > { %9120 = vst [vmem:[#allocation17_spill] sm:$0xff] %v8426_v49  ;;  %v2872_v16 = vmul.f32 %v8426_v49, %v8426_v49 }
 0x2f7   : > { %9121 = vst [vmem:[#allocation18_spill] sm:$0xff] %v8429_v40  ;;  %2823 = vadd.xlane.f32.xlu1 %v8408_v25  ;;  %v5724_v38 = vmul.f32 -1.442695, %v8429_v40 }
 0x2f9   : > { %v6385_v57 = vpop.f32.mrb[72].mxu0  ;;  %2885 = vadd.xlane.f32.xlu0 %v2867_v33  ;;  %v6598_v33 = vld [vmem:[#allocation8 + $0xf8] sm:$0xff]  }
 0x2fa   : > { %v8437_v22 = vadd.f32 %v6385_v57, %v2698_v0  ;;  %v2786_v2 = vpop.f32.mrb[73].mxu0  ;;  %v2869_v0 = vmul.f32 %v8423_v20, %v8423_v20  ;;  %v6599_v57 = vld [vmem:[#allocation8 + $0xb8] sm:$0xff]  }
 0x2fb   : > { %v8440_v60 = vadd.f32 %v2786_v2, %v8387_v11  ;;  %v6386_v12 = vpop.f32.mrb[74].mxu0  ;;  %2887 = vadd.xlane.f32.xlu1 %v2868_v26  ;;  %v2870_v11 = vmul.f32 %v8429_v40, %v8429_v40  ;;  %v6600_v26 = vld [vmem:[#allocation8 + $0x140] sm:$0xff]   ;;  %v5721_v2 = vmul.f32 -1.442695, %v8402_v15 }
 0x2fc   : > { %9122 = vst [vmem:[#allocation19_spill] sm:$0xff] %v8437_v22  ;;  %v8443_v48 = vadd.f32 %v6386_v12, %v8393_v10  ;;  %v2789_v51 = vpop.f32.mrb[75].mxu0  ;;  %v2875_v59 = vmul.f32 %v8437_v22, %v8437_v22  ;;  %v5719_v12 = vmul.f32 -1.442695, %v8405_v37 }
 0x2fd   : > { %9123 = vst [vmem:[#allocation20_spill] sm:$0xff] %v8440_v60  ;;  %v8446_v23 = vadd.f32 %v2789_v51, %v8389_v34  ;;  %2825 = vadd.xlane.f32.xlu0 %v8423_v20  ;;  %v2873_v55 = vmul.f32 %v8440_v60, %v8440_v60  ;;  %v6608_v51 = vld [vmem:[#allocation8 + $0x1c0] sm:$0xff]   ;;  %6992 = vpow2.f32 %v5721_v2 }
 0x2fe   : > { %9124 = vst [vmem:[#allocation21_spill] sm:$0xff] %v8443_v48  ;;  %v2876_v9 = vmul.f32 %v8443_v48, %v8443_v48  ;;  %6994 = vpow2.f32 %v5719_v12 }
 0x2ff   : > { %9125 = vst [vmem:[#allocation22_spill] sm:$0xff] %v8446_v23  ;;  %2827 = vadd.xlane.f32.xlu1 %v8429_v40  ;;  %v2874_v27 = vmul.f32 %v8446_v23, %v8446_v23 }
 0x301   : > { %v6389_v47 = vpop.f32.mrb[76].mxu0  ;;  %2889 = vadd.xlane.f32.xlu0 %v2869_v0  ;;  %v5722_v0 = vmul.f32 -1.442695, %v8408_v25 }
 0x302   : > { %v8454_v50 = vadd.f32 %v6389_v47, %v2714_v17  ;;  %v2802_v10 = vpop.f32.mrb[77].mxu0  ;;  %v6586_v17 = vld [vmem:[#allocation8 + $0xd8] sm:$0xff]   ;;  %v5720_v47 = vmul.f32 -1.442695, %v8411_v8 }
 0x303   : > { %v8456_v54 = vadd.f32 %v2802_v10, %v2706_v43  ;;  %v6390_v45 = vpop.f32.mrb[78].mxu0  ;;  %2891 = vadd.xlane.f32.xlu1 %v2870_v11  ;;  %v6574_v43 = vld [vmem:[#allocation8 + $0x58] sm:$0xff]   ;;  %6157 = vmatprep.subr.bf16.mxu0 %v6586_v17  ;;  %6996 = vpow2.f32 %v5722_v0 }
 0x304   : > { %v8458_v34 = vadd.f32 %v6390_v45, %v2717_v6  ;;  %v2805_v29 = vpop.f32.mrb[79].mxu0  ;;  %6093 = vmatprep.subr.bf16.mxu1 %v6574_v43  ;;  %v2879_v63 = vmul.f32 %v8454_v50, %v8454_v50  ;;  %6158 = vmatpush3.bf16.msra.mxu0 %v6587_v3  ;;  %v6589_v6 = vld [vmem:[#allocation8 + $0x30] sm:$0xff]   ;;  %6998 = vpow2.f32 %v5720_v47 }
 0x305   : > { %v8461_v39 = vadd.f32 %v2805_v29, %v8397_v7  ;;  %2829 = vadd.xlane.f32.xlu0 %v8420_v44  ;;  %v6575_v7 = vld [vmem:[#allocation8 + $0x18] sm:$0xff]   ;;  %v2877_v19 = vmul.f32 %v8456_v54, %v8456_v54  ;;  %6159 = vmatprep.subr.bf16.mxu0 %v6590_v14 }
 0x306   : > { %6094 = vmatpush3.bf16.msra.mxu1 %v6575_v7  ;;  %v2880_v42 = vmul.f32 %v8458_v34, %v8458_v34 }
 0x307   : > { %2831 = vadd.xlane.f32.xlu1 %v8426_v49  ;;  %v2878_v61 = vmul.f32 %v8461_v39, %v8461_v39  ;;  %6095 = vmatprep.subr.bf16.mxu1 %v6576_v46  ;;  %v6993_v7 = vpop.eup %6992 }
 0x308   : > { %6160 = vmatpush3.bf16.msra.mxu0 %v6591_v58  ;;  %v6995_v46 = vpop.eup %6994 }
 0x309   : > { %2893 = vadd.xlane.f32.xlu0 %v2871_v62  ;;  %6161 = vmatprep.subr.bf16.mxu0 %v6592_v1  ;;  %v4015_v18 = vadd.f32 1.0, %v6995_v46 }
 0x30a   : > { %6096 = vmatpush3.bf16.msra.mxu1 %v6577_v21 }
 0x30b   : > { %2895 = vadd.xlane.f32.xlu1 %v2872_v16  ;;  %6097 = vmatprep.subr.bf16.mxu1 %v6582_v28  ;;  %v5725_v16 = vmul.f32 -1.442695, %v8420_v44  ;;  %v4017_v28 = vadd.f32 1.0, %v6993_v7 }
 0x30c   : > { %6162 = vmatpush3.bf16.msra.mxu0 %v6593_v41 }
 0x30d   : > { %2833 = vadd.xlane.f32.xlu0 %v8440_v60  ;;  %6163 = vmatprep.subr.bf16.mxu0 %v6596_v53  ;;  %7000 = vpow2.f32 %v5725_v16  ;;  %v6997_v4 = vpop.eup %6996 }
 0x30e   : > { %6098 = vmatpush3.bf16.msra.mxu1 %v6583_v56  ;;  %7002 = vpow2.f32 %v5724_v38  ;;  %v4018_v3 = vadd.f32 1.0, %v6997_v4 }
 0x30f   : > { %2835 = vadd.xlane.f32.xlu1 %v8446_v23  ;;  %6099 = vmatprep.subr.bf16.mxu1 %v6588_v5 }
 0x310   : > { %6164 = vmatpush3.bf16.msra.mxu0 %v6597_v32 }
 0x311   : > { %2897 = vadd.xlane.f32.xlu0 %v2873_v55  ;;  %6165 = vmatprep.subr.bf16.mxu0 %v6598_v33 }
 0x312   : > { %6100 = vmatpush3.bf16.msra.mxu1 %v6589_v6 }
 0x313   : > { %2899 = vadd.xlane.f32.xlu1 %v2874_v27  ;;  %6101 = vmatprep.subr.bf16.mxu1 %v6594_v31 }
 0x314   : > { %6166 = vmatpush3.bf16.msra.mxu0 %v6599_v57 }
 0x315   : > { %2837 = vadd.xlane.f32.xlu0 %v8437_v22  ;;  %6279 = vmatprep.subr.bf16.mxu0 %v6608_v51  ;;  %v5728_v51 = vmul.f32 -1.442695, %v8446_v23 }
 0x316   : > { %6102 = vmatpush3.bf16.msra.mxu1 %v6595_v13  ;;  %v5729_v13 = vmul.f32 -1.442695, %v8437_v22 }
 0x317   : > { %2839 = vadd.xlane.f32.xlu1 %v8443_v48  ;;  %6215 = vmatprep.subr.bf16.mxu1 %v6600_v26  ;;  %v5727_v26 = vmul.f32 -1.442695, %v8440_v60 }
 0x319   : > { %2901 = vadd.xlane.f32.xlu0 %v2875_v59 }
 0x31b   : > { %2903 = vadd.xlane.f32.xlu1 %v2876_v9 }
 0x31d   : > { %2841 = vadd.xlane.f32.xlu0 %v8456_v54 }
 0x31f   : > { %2843 = vadd.xlane.f32.xlu1 %v8461_v39 }
 0x321   : > { %2905 = vadd.xlane.f32.xlu0 %v2877_v19  ;;  %v5723_v19 = vmul.f32 -1.442695, %v8423_v20 }
 0x323   : > { %2907 = vadd.xlane.f32.xlu1 %v2878_v61 }
 0x325   : > { %2845 = vadd.xlane.f32.xlu0 %v8454_v50 }
 0x327   : > { %2847 = vadd.xlane.f32.xlu1 %v8458_v34 }
 0x329   : > { %2909 = vadd.xlane.f32.xlu0 %v2879_v63  ;;  %v5726_v63 = vmul.f32 -1.442695, %v8426_v49 }
 0x32b   : > { %2911 = vadd.xlane.f32.xlu1 %v2880_v42  ;;  %v6999_v42 = vpop.eup %6998 }
 0x32c   : > { %v4016_v14 = vadd.f32 1.0, %v6999_v42  ;;  %v8521_v12 = vpop.eup %7000 }
 0x32d   : > { %v7003_v47 = vpop.eup %7002 }
 0x32e   : > { %v8551_v4 = vadd.f32 1.0, %v7003_v47 }
 0x37a   : > { %v2818_v11 = vpop.xlane.xlu0 %2817 }
 0x37b   : > { %v8497_v10 = vmul.f32 0.015625, %v2818_v11 }
 0x37c   : > { %v2820_v45 = vpop.xlane.xlu1 %2819 }
 0x37d   : > { %v8499_v29 = vmul.f32 0.015625, %v2820_v45  ;;  %v2929_v55 = vmul.f32 %v8497_v10, %v8497_v10  ;;  %v2961_v11 = vsub.f32 %v8405_v37, %v8497_v10 }
 0x37e   : > { %v2882_v62 = vpop.xlane.xlu0 %2881 }
 0x37f   : > { %v2913_v27 = vmul.f32 0.015625, %v2882_v62  ;;  %v2930_v59 = vmul.f32 %v8499_v29, %v8499_v29  ;;  %v2962_v10 = vsub.f32 %v8411_v8, %v8499_v29 }
 0x380   : > { %v2884_v35 = vpop.xlane.xlu1 %2883 }
 0x381   : > { %v2945_v9 = vsub.f32 %v2913_v27, %v2929_v55  ;;  %v2914_v43 = vmul.f32 0.015625, %v2884_v35  ;;  %v8531_v55 = vld [vmem:[%s9086_s5] ss:$0 sm:$0xff] }
 0x382   : > { %v2822_v61 = vpop.xlane.xlu0 %2821 }
 0x383   : > { %v2977_v21 = vadd.f32 1e-05, %v2945_v9  ;;  %v2946_v52 = vsub.f32 %v2914_v43, %v2930_v59  ;;  %v8508_v24 = vmul.f32 0.015625, %v2822_v61  ;;  %v8538_v59 = vmul.f32 -1.442695, %v8443_v48 }
 0x384   : > { %v2824_v36 = vpop.xlane.xlu1 %2823 }
 0x385   : > { %7004 = vrsqrt.f32 %v2977_v21  ;;  %v2978_v56 = vadd.f32 1e-05, %v2946_v52  ;;  %v8511_v30 = vmul.f32 0.015625, %v2824_v36  ;;  %v2931_v5 = vmul.f32 %v8508_v24, %v8508_v24 }
 0x386   : > { %7006 = vpow2.f32 %v5723_v19  ;;  %v2886_v17 = vpop.xlane.xlu0 %2885  ;;  %v8545_v19 = vld [vmem:[%s9087_s6] ss:$0 sm:$0xff]  ;;  %v2963_v36 = vsub.f32 %v8402_v15, %v8508_v24 }
 0x387   : > { %7008 = vrsqrt.f32 %v2978_v56  ;;  %v2915_v6 = vmul.f32 0.015625, %v2886_v17  ;;  %v2932_v1 = vmul.f32 %v8511_v30, %v8511_v30  ;;  %v2964_v56 = vsub.f32 %v8408_v25, %v8511_v30 }
 0x388   : > { %7010 = vpow2.f32 %v5726_v63  ;;  %v2888_v58 = vpop.xlane.xlu1 %2887 }
 0x389   : > { %7012 = vrcp.f32 %v4017_v28  ;;  %v2947_v41 = vsub.f32 %v2915_v6, %v2931_v5  ;;  %v2916_v31 = vmul.f32 0.015625, %v2888_v58 }
 0x38a   : > { %7014 = vrcp.f32 %v4015_v18  ;;  %v2826_v53 = vpop.xlane.xlu0 %2825 }
 0x38b   : > { %7016 = vrcp.f32 %v4018_v3  ;;  %v2979_v32 = vadd.f32 1e-05, %v2947_v41  ;;  %v2948_v33 = vsub.f32 %v2916_v31, %v2932_v1  ;;  %v8518_v57 = vmul.f32 0.015625, %v2826_v53 }
 0x38c   : > { %7018 = vrcp.f32 %v4016_v14  ;;  %v2828_v2 = vpop.xlane.xlu1 %2827 }
 0x38d   : > { %7020 = vrsqrt.f32 %v2979_v32  ;;  %v2980_v0 = vadd.f32 1e-05, %v2948_v33  ;;  %v8526_v45 = vmul.f32 0.015625, %v2828_v2  ;;  %v2933_v27 = vmul.f32 %v8518_v57, %v8518_v57 }
 0x38e   : > { %7022 = vpow2.f32 %v5729_v13  ;;  %v2890_v62 = vpop.xlane.xlu0 %2889  ;;  %v2965_v24 = vsub.f32 %v8423_v20, %v8518_v57 }
 0x38f   : > { %v7005_v16 = vpop.eup %7004  ;;  %7024 = vrsqrt.f32 %v2980_v0  ;;  %v2917_v38 = vmul.f32 0.015625, %v2890_v62  ;;  %v2934_v61 = vmul.f32 %v8526_v45, %v8526_v45 }
 0x390   : > { %v8535_v35 = vpop.eup %7006  ;;  %7026 = vpow2.f32 %v5727_v26  ;;  %v3009_v9 = vmul.f32 %v7005_v16, %v2961_v11  ;;  %v2892_v43 = vpop.xlane.xlu1 %2891 }
 0x391   : > { %v7009_v7 = vpop.eup %7008  ;;  %7028 = vpow2.f32 %v5728_v51  ;;  %v2949_v46 = vsub.f32 %v2917_v38, %v2933_v27  ;;  %v2918_v21 = vmul.f32 0.015625, %v2892_v43 }
 0x392   : > { %v8549_v52 = vpop.eup %7010  ;;  %v3032_v29 = vmul.f32 %v8531_v55, %v3009_v9  ;;  %v3010_v63 = vmul.f32 %v7009_v7, %v2962_v10  ;;  %v2830_v42 = vpop.xlane.xlu0 %2829 }
 0x393   : > { %v8556_v28 = vpop.eup %7012  ;;  %v2981_v18 = vadd.f32 1e-05, %v2949_v46  ;;  %v2950_v17 = vsub.f32 %v2918_v21, %v2934_v61  ;;  %v8560_v3 = vmul.f32 0.015625, %v2830_v42 }
 0x394   : > { %9126 = vst [vmem:[#allocation23_spill] sm:$0xff] %v8556_v28  ;;  %v8562_v5 = vpop.eup %7014  ;;  %v8565_v6 = vadd.f32 %v8545_v19, %v3032_v29  ;;  %v3033_v14 = vmul.f32 %v8531_v55, %v3010_v63  ;;  %v2832_v1 = vpop.xlane.xlu1 %2831 }
 0x395   : > { %v8572_v41 = vpop.eup %7016  ;;  %7030 = vrsqrt.f32 %v2981_v18  ;;  %v2982_v30 = vadd.f32 1e-05, %v2950_v17  ;;  %v2935_v31 = vmul.f32 %v8560_v3, %v8560_v3  ;;  %v8583_v33 = vmul.f32 0.015625, %v2832_v1 }
 0x396   : > { %v8578_v53 = vpop.eup %7018  ;;  %v8581_v32 = vadd.f32 %v8545_v19, %v3033_v14  ;;  %v2894_v57 = vpop.xlane.xlu0 %2893  ;;  %v5607_v26 = vadd.f32 1.4285715, %v8565_v6  ;;  %v5639_v2 = vadd.f32 0.2857143, %v8565_v6  ;;  %v8588_v47 = vadd.f32 2.0, %v8565_v6 }
 0x397   : > { %v7021_v51 = vpop.eup %7020  ;;  %7032 = vrsqrt.f32 %v2982_v30  ;;  %v2919_v0 = vmul.f32 0.015625, %v2894_v57  ;;  %v8591_v11 = vadd.f32 0.85714287, %v8565_v6  ;;  %v2936_v27 = vmul.f32 %v8583_v33, %v8583_v33 }
 0x398   : > { %v8593_v62 = vpop.eup %7022  ;;  %v3011_v16 = vmul.f32 %v7021_v51, %v2963_v36  ;;  %v2896_v10 = vpop.xlane.xlu1 %2895  ;;  %v5608_v9 = vadd.f32 1.4285715, %v8581_v32  ;;  %v3199_v46 = vmul.f32 1.75, %v5607_v26  ;;  %v5640_v21 = vadd.f32 0.2857143, %v8581_v32 }
 0x399   : > { %9127 = vst [vmem:[#allocation24_spill] sm:$0xff] %v8593_v62  ;;  %v7025_v43 = vpop.eup %7024  ;;  %v2951_v7 = vsub.f32 %v2919_v0, %v2935_v31  ;;  %v2920_v61 = vmul.f32 0.015625, %v2896_v10  ;;  %v3423_v17 = vmul.f32 1.75, %v5639_v2 }
 0x39a   : > { %v8601_v29 = vpop.eup %7026  ;;  %v3034_v63 = vmul.f32 %v8531_v55, %v3011_v16  ;;  %v3012_v36 = vmul.f32 %v7025_v43, %v2964_v56  ;;  %v2834_v42 = vpop.xlane.xlu0 %2833  ;;  %v3200_v18 = vmul.f32 1.75, %v5608_v9  ;;  %v3215_v51 = vmul.f32 %v3199_v46, %v3199_v46 }
 0x39b   : > { %v8604_v14 = vpop.eup %7028  ;;  %v2983_v1 = vadd.f32 1e-05, %v2951_v7  ;;  %v2952_v30 = vsub.f32 %v2920_v61, %v2936_v27  ;;  %v8606_v57 = vmul.f32 0.015625, %v2834_v42  ;;  %v3424_v38 = vmul.f32 1.75, %v5640_v21 }
 0x39c   : > { %v8609_v31 = vadd.f32 %v8545_v19, %v3034_v63  ;;  %v3035_v26 = vmul.f32 %v8531_v55, %v3012_v36  ;;  %v2836_v0 = vpop.xlane.xlu1 %2835  ;;  %v3216_v10 = vmul.f32 %v3200_v18, %v3200_v18  ;;  %v3231_v7 = vsub.f32 0.0, %v3215_v51 }
 0x39d   : > { %7034 = vrsqrt.f32 %v2983_v1  ;;  %v2984_v56 = vadd.f32 1e-05, %v2952_v30  ;;  %v2937_v2 = vmul.f32 %v8606_v57, %v8606_v57  ;;  %v8619_v9 = vmul.f32 0.015625, %v2836_v0 }
 0x39e   : > { %v8617_v27 = vadd.f32 %v8545_v19, %v3035_v26  ;;  %v2898_v43 = vpop.xlane.xlu0 %2897  ;;  %v3232_v61 = vsub.f32 0.0, %v3216_v10  ;;  %v3439_v21 = vmul.f32 %v3423_v17, %v3423_v17  ;;  %v3440_v36 = vmul.f32 %v3424_v38, %v3424_v38 }
 0x39f   : > { %v7031_v46 = vpop.eup %7030  ;;  %7036 = vrsqrt.f32 %v2984_v56  ;;  %v2921_v63 = vmul.f32 0.015625, %v2898_v43  ;;  %v2938_v18 = vmul.f32 %v8619_v9, %v8619_v9  ;;  %v3247_v26 = vmul.f32 1.442695, %v3231_v7 }
 0x3a0   : > { %v3013_v42 = vmul.f32 %v7031_v46, %v2965_v24  ;;  %v2900_v30 = vpop.xlane.xlu1 %2899  ;;  %v3249_v58 = vmul.f32 1.442695, %v3232_v61  ;;  %v3455_v51 = vsub.f32 0.0, %v3439_v21  ;;  %v9128_v17 = vsub.f32 %v8429_v40, %v8526_v45 }
 0x3a1   : > { %v7033_v16 = vpop.eup %7032  ;;  %v2953_v0 = vsub.f32 %v2921_v63, %v2937_v2  ;;  %v2922_v13 = vmul.f32 0.015625, %v2900_v30  ;;  %7038 = vpow2.f32 %v3247_v26  ;;  %v3456_v56 = vsub.f32 0.0, %v3440_v36 }
 0x3a2   : > { %v3036_v10 = vmul.f32 %v8531_v55, %v3013_v42  ;;  %v3014_v38 = vmul.f32 %v7033_v16, %v9128_v17  ;;  %v2838_v24 = vpop.xlane.xlu0 %2837  ;;  %7040 = vpow2.f32 %v3249_v58  ;;  %v3471_v63 = vmul.f32 1.442695, %v3455_v51 }
 0x3a3   : > { %v2985_v43 = vadd.f32 1e-05, %v2953_v0  ;;  %v2954_v46 = vsub.f32 %v2922_v13, %v2938_v18  ;;  %v8629_v20 = vmul.f32 0.015625, %v2838_v24  ;;  %v3473_v21 = vmul.f32 1.442695, %v3456_v56 }
 0x3a4   : > { %v8632_v7 = vadd.f32 %v8545_v19, %v3036_v10  ;;  %v3037_v2 = vmul.f32 %v8531_v55, %v3014_v38  ;;  %v2840_v61 = vpop.xlane.xlu1 %2839  ;;  %v5592_v18 = vadd.f32 2.0, %v8581_v32  ;;  %v3087_v0 = vmul.f32 1.75, %v8588_v47 }
 0x3a5   : > { %7042 = vrsqrt.f32 %v2985_v43  ;;  %v2986_v42 = vadd.f32 1e-05, %v2954_v46  ;;  %v2939_v45 = vmul.f32 %v8629_v20, %v8629_v20  ;;  %v8642_v58 = vmul.f32 0.015625, %v2840_v61 }
 0x3a6   : > { %v8640_v13 = vadd.f32 %v8545_v19, %v3037_v2  ;;  %v2902_v36 = vpop.xlane.xlu0 %2901  ;;  %7044 = vpow2.f32 %v3471_v63  ;;  %v5624_v51 = vadd.f32 0.85714287, %v8581_v32  ;;  %v9129_v10 = vsub.f32 %v8420_v44, %v8560_v3 }
 0x3a7   : > { %v7035_v30 = vpop.eup %7034  ;;  %7046 = vrsqrt.f32 %v2986_v42  ;;  %v2923_v26 = vmul.f32 0.015625, %v2902_v36  ;;  %v2940_v38 = vmul.f32 %v8642_v58, %v8642_v58  ;;  %v3088_v61 = vmul.f32 1.75, %v5592_v18 }
 0x3a8   : > { %v3015_v17 = vmul.f32 %v7035_v30, %v9129_v10  ;;  %v2904_v56 = vpop.xlane.xlu1 %2903  ;;  %7048 = vpow2.f32 %v3473_v21  ;;  %v3103_v63 = vmul.f32 %v3087_v0, %v3087_v0  ;;  %v9130_v42 = vsub.f32 %v8426_v49, %v8583_v33 }
 0x3a9   : > { %v7037_v43 = vpop.eup %7036  ;;  %v2955_v46 = vsub.f32 %v2923_v26, %v2939_v45  ;;  %v2924_v2 = vmul.f32 0.015625, %v2904_v56  ;;  %v3311_v30 = vmul.f32 1.75, %v8591_v11  ;;  %v3312_v10 = vmul.f32 1.75, %v5624_v51 }
 0x3aa   : > { %v3038_v47 = vmul.f32 %v8531_v55, %v3015_v17  ;;  %v3016_v3 = vmul.f32 %v7037_v43, %v9130_v42  ;;  %v2842_v36 = vpop.xlane.xlu0 %2841  ;;  %v3104_v21 = vmul.f32 %v3088_v61, %v3088_v61  ;;  %v3119_v0 = vsub.f32 0.0, %v3103_v63 }
 0x3ab   : > { %v2987_v16 = vadd.f32 1e-05, %v2955_v46  ;;  %v2956_v1 = vsub.f32 %v2924_v2, %v2940_v38  ;;  %v8659_v24 = vmul.f32 0.015625, %v2842_v36  ;;  %v7039_v44 = vpop.eup %7038  ;;  %v3327_v17 = vmul.f32 %v3311_v30, %v3311_v30 }
 0x3ac   : > { %v8662_v45 = vadd.f32 %v8545_v19, %v3038_v47  ;;  %v3039_v18 = vmul.f32 %v8531_v55, %v3016_v3  ;;  %v2844_v26 = vpop.xlane.xlu1 %2843  ;;  %v7041_v33 = vpop.eup %7040  ;;  %v3120_v61 = vsub.f32 0.0, %v3104_v21  ;;  %v3135_v42 = vmul.f32 1.442695, %v3119_v0 }
 0x3ad   : > { %7050 = vrsqrt.f32 %v2987_v16  ;;  %v2988_v56 = vadd.f32 1e-05, %v2956_v1  ;;  %v2941_v11 = vmul.f32 %v8659_v24, %v8659_v24  ;;  %v8672_v43 = vmul.f32 0.015625, %v2844_v26 }
 0x3ae   : > { %v8670_v38 = vadd.f32 %v8545_v19, %v3039_v18  ;;  %v2906_v46 = vpop.xlane.xlu0 %2905  ;;  %v3279_v2 = vpack.c.bf16 %v7041_v33, %v7039_v44  ;;  %v3328_v16 = vmul.f32 %v3312_v10, %v3312_v10  ;;  %v9131_v3 = vsub.f32 %v8440_v60, %v8606_v57 }
 0x3af   : > { %v7043_v47 = vpop.eup %7042  ;;  %7052 = vrsqrt.f32 %v2988_v56  ;;  %v2925_v63 = vmul.f32 0.015625, %v2906_v46  ;;  %v2942_v30 = vmul.f32 %v8672_v43, %v8672_v43  ;;  %v3137_v44 = vmul.f32 1.442695, %v3120_v61 }
 0x3b0   : > { %v7045_v1 = vpop.eup %7044  ;;  %v3017_v36 = vmul.f32 %v7043_v47, %v9131_v3  ;;  %4782 = vmatprep.mubr.bf16.mxu1 %v3279_v2  ;;  %v2908_v26 = vpop.xlane.xlu1 %2907  ;;  %7054 = vpow2.f32 %v3135_v42  ;;  %v3343_v0 = vsub.f32 0.0, %v3327_v17  ;;  %v9132_v57 = vsub.f32 %v8446_v23, %v8619_v9 }
 0x3b1   : > { %v7047_v21 = vpop.eup %7046  ;;  %v2957_v33 = vsub.f32 %v2925_v63, %v2941_v11  ;;  %v2926_v56 = vmul.f32 0.015625, %v2908_v26  ;;  %7056 = vpow2.f32 %v3137_v44  ;;  %v3344_v3 = vsub.f32 0.0, %v3328_v16  ;;  %v6601_v26 = vld [vmem:[#allocation8 + $0x100] sm:$0xff]  }
 0x3b2   : > { %v7049_v10 = vpop.eup %7048  ;;  %v3040_v46 = vmul.f32 %v8531_v55, %v3017_v36  ;;  %v3018_v47 = vmul.f32 %v7047_v21, %v9132_v57  ;;  %v2846_v51 = vpop.xlane.xlu0 %2845  ;;  %v3359_v49 = vmul.f32 1.442695, %v3343_v0  ;;  %v5609_v16 = vadd.f32 1.4285715, %v8609_v31 }
 0x3b3   : > { %v2989_v60 = vadd.f32 1e-05, %v2957_v33  ;;  %v3503_v18 = vpack.c.bf16 %v7049_v10, %v7045_v1  ;;  %v2958_v2 = vsub.f32 %v2926_v56, %v2942_v30  ;;  %v3361_v17 = vmul.f32 1.442695, %v3344_v3 }
 0x3b4   : > { %v8686_v61 = vadd.f32 %v8545_v19, %v3040_v46  ;;  %v3041_v11 = vmul.f32 %v8531_v55, %v3018_v47  ;;  %v8689_v63 = vmul.f32 0.015625, %v2846_v51  ;;  %v2848_v42 = vpop.xlane.xlu1 %2847  ;;  %v5610_v56 = vadd.f32 1.4285715, %v8617_v27 }
 0x3b5   : > { %7058 = vrsqrt.f32 %v2989_v60  ;;  %4879 = vmatprep.mubr.bf16.mxu0 %v3503_v18  ;;  %v2990_v9 = vadd.f32 1e-05, %v2958_v2  ;;  %v8691_v36 = vmul.f32 0.015625, %v2848_v42  ;;  %v3201_v0 = vmul.f32 1.75, %v5609_v16 }
 0x3b6   : > { %v8695_v1 = vadd.f32 %v8545_v19, %v3041_v11  ;;  %7060 = vpow2.f32 %v3359_v49  ;;  %v2943_v30 = vmul.f32 %v8689_v63, %v8689_v63  ;;  %v2910_v51 = vpop.xlane.xlu0 %2909  ;;  %v9133_v49 = vsub.f32 %v8437_v22, %v8629_v20 }
 0x3b7   : > { %v7051_v44 = vpop.eup %7050  ;;  %7062 = vrsqrt.f32 %v2990_v9  ;;  %v8703_v60 = vmul.f32 %v8691_v36, %v8691_v36  ;;  %v2927_v21 = vmul.f32 0.015625, %v2910_v51  ;;  %v5641_v57 = vadd.f32 0.2857143, %v8609_v31 }
 0x3b8   : > { %v3019_v33 = vmul.f32 %v7051_v44, %v9133_v49  ;;  %7064 = vpow2.f32 %v3361_v17  ;;  %v5642_v47 = vadd.f32 0.2857143, %v8617_v27  ;;  %v5593_v3 = vadd.f32 2.0, %v8609_v31 }
 0x3b9   : > { %v7053_v10 = vpop.eup %7052  ;;  %v2959_v46 = vsub.f32 %v2927_v21, %v2943_v30  ;;  %v9134_v11 = vsub.f32 %v8443_v48, %v8642_v58  ;;  %v3202_v20 = vmul.f32 1.75, %v5610_v56  ;;  %v3217_v9 = vmul.f32 %v3201_v0, %v3201_v0  ;;  %v6602_v0 = vld [vmem:[#allocation8 + $0x148] sm:$0xff]  }
 0x3ba   : > { %v3042_v2 = vmul.f32 %v8531_v55, %v3019_v33  ;;  %v7055_v17 = vpop.eup %7054  ;;  %v3425_v44 = vmul.f32 1.75, %v5641_v57  ;;  %v3426_v16 = vmul.f32 1.75, %v5642_v47  ;;  %v5594_v30 = vadd.f32 2.0, %v8617_v27 }
 0x3bb   : > { %v3020_v42 = vmul.f32 %v7053_v10, %v9134_v11  ;;  %v2991_v51 = vadd.f32 1e-05, %v2959_v46  ;;  %v7057_v21 = vpop.eup %7056  ;;  %v3218_v33 = vmul.f32 %v3202_v20, %v3202_v20  ;;  %v3233_v22 = vsub.f32 0.0, %v3217_v9 }
 0x3bc   : > { %v8720_v49 = vadd.f32 %v8545_v19, %v3042_v2  ;;  %v3167_v23 = vpack.c.bf16 %v7057_v21, %v7055_v17  ;;  %v3441_v58 = vmul.f32 %v3425_v44, %v3425_v44  ;;  %v3442_v56 = vmul.f32 %v3426_v16, %v3426_v16  ;;  %v6603_v44 = vld [vmem:[#allocation8 + $0x108] sm:$0xff]   ;;  %v6604_v16 = vld [vmem:[#allocation8 + $0x150] sm:$0xff]  }
 0x3bd   : > { %v3043_v18 = vmul.f32 %v8531_v55, %v3020_v42  ;;  %7066 = vrsqrt.f32 %v2991_v51  ;;  %v3234_v46 = vsub.f32 0.0, %v3218_v33  ;;  %v3251_v57 = vmul.f32 1.442695, %v3233_v22 }
 0x3be   : > { %v3089_v47 = vmul.f32 1.75, %v5593_v3  ;;  %4783 = vmatmul.mubr.bf16.vlgmr.msra.gmra.mrb[64].mxu1 %v3167_v23  ;;  %v3457_v2 = vsub.f32 0.0, %v3441_v58  ;;  %v3458_v48 = vsub.f32 0.0, %v3442_v56  ;;  %v3090_v28 = vmul.f32 1.75, %v5594_v30 }
 0x3bf   : > { %v8724_v10 = vadd.f32 %v8545_v19, %v3043_v18  ;;  %v7059_v11 = vpop.eup %7058  ;;  %v5625_v42 = vadd.f32 0.85714287, %v8609_v31  ;;  %v9135_v9 = vsub.f32 %v8456_v54, %v8659_v24  ;;  %6216 = vmatpush3.bf16.msra.mxu1 %v6601_v26  ;;  %7068 = vpow2.f32 %v3251_v57  ;;  %v6609_v57 = vld [vmem:[#allocation8 + $0x180] sm:$0xff]  }
 0x3c0   : > { %v7061_v20 = vpop.eup %7060  ;;  %v3253_v51 = vmul.f32 1.442695, %v3234_v46  ;;  %v3105_v18 = vmul.f32 %v3089_v47, %v3089_v47  ;;  %v3475_v3 = vmul.f32 1.442695, %v3457_v2  ;;  %v3477_v21 = vmul.f32 1.442695, %v3458_v48  ;;  %6217 = vmatprep.subr.bf16.mxu1 %v6602_v0  ;;  %v2912_v46 = vpop.xlane.xlu1 %2911 }
 0x3c1   : > { %v3021_v17 = vmul.f32 %v7059_v11, %v9135_v9  ;;  %v7063_v22 = vpop.eup %7062  ;;  %v3106_v23 = vmul.f32 %v3090_v28, %v3090_v28  ;;  %v5626_v30 = vadd.f32 0.85714287, %v8617_v27  ;;  %v9136_v24 = vsub.f32 %v8461_v39, %v8672_v43  ;;  %v6612_v48 = vld [vmem:[#allocation8 + $0x1c8] sm:$0xff]  }
 0x3c2   : > { %v7065_v33 = vpop.eup %7064  ;;  %7070 = vpow2.f32 %v3253_v51  ;;  %v3121_v26 = vsub.f32 0.0, %v3105_v18  ;;  %v3313_v2 = vmul.f32 1.75, %v5625_v42  ;;  %v5611_v42 = vadd.f32 1.4285715, %v8632_v7 }
 0x3c3   : > { %v3044_v58 = vmul.f32 %v8531_v55, %v3021_v17  ;;  %v3022_v56 = vmul.f32 %v7063_v22, %v9136_v24  ;;  %v3391_v47 = vpack.c.bf16 %v7065_v33, %v7061_v20  ;;  %7072 = vpow2.f32 %v3475_v3  ;;  %6218 = vmatpush3.bf16.msra.mxu1 %v6603_v44  ;;  %v6605_v17 = vld [vmem:[#allocation8 + $0x110] sm:$0xff]   ;;  %v6606_v20 = vld [vmem:[#allocation8 + $0x158] sm:$0xff]  }
 0x3c4   : > { %v3122_v11 = vsub.f32 0.0, %v3106_v23  ;;  %7074 = vpow2.f32 %v3477_v21  ;;  %v3139_v9 = vmul.f32 1.442695, %v3121_v26  ;;  %v3314_v51 = vmul.f32 1.75, %v5626_v30  ;;  %6219 = vmatprep.subr.bf16.mxu1 %v6604_v16  ;;  %v6613_v21 = vld [vmem:[#allocation8 + $0x188] sm:$0xff]   ;;  %v6616_v24 = vld [vmem:[#allocation8 + $0x1d0] sm:$0xff]  }
 0x3c5   : > { %v8736_v28 = vadd.f32 %v8545_v19, %v3044_v58  ;;  %v3045_v0 = vmul.f32 %v8531_v55, %v3022_v56  ;;  %4880 = vmatmul.mubr.bf16.vlgmr.msra.gmra.mrb[80].mxu0 %v3391_v47  ;;  %v3329_v18 = vmul.f32 %v3313_v2, %v3313_v2  ;;  %v2928_v22 = vmul.f32 0.015625, %v2912_v46 }
 0x3c6   : > { %v3141_v43 = vmul.f32 1.442695, %v3122_v11  ;;  %7076 = vpow2.f32 %v3139_v9  ;;  %v5612_v23 = vadd.f32 1.4285715, %v8640_v13  ;;  %6280 = vmatpush3.bf16.msra.mxu0 %v6609_v57  ;;  %v3330_v44 = vmul.f32 %v3314_v51, %v3314_v51  ;;  %v6607_v11 = vld [vmem:[#allocation8 + $0x118] sm:$0xff]   ;;  %v6610_v57 = vld [vmem:[#allocation8 + $0x160] sm:$0xff]  }
 0x3c7   : > { %v8740_v3 = vadd.f32 %v8545_v19, %v3045_v0  ;;  %v7067_v33 = vpop.eup %7066  ;;  %v3345_v58 = vsub.f32 0.0, %v3329_v18  ;;  %v2960_v30 = vsub.f32 %v2928_v22, %v8703_v60  ;;  %6281 = vmatprep.subr.bf16.mxu0 %v6612_v48  ;;  %v9137_v16 = vsub.f32 %v8454_v50, %v8689_v63  ;;  %6220 = vmatpush3.bf16.msra.mxu1 %v6605_v17  ;;  %v6617_v22 = vld [vmem:[#allocation8 + $0x190] sm:$0xff]  }
 0x3c8   : > { %7078 = vpow2.f32 %v3141_v43  ;;  %v3203_v26 = vmul.f32 1.75, %v5611_v42  ;;  %v3204_v46 = vmul.f32 1.75, %v5612_v23  ;;  %v5643_v47 = vadd.f32 0.2857143, %v8632_v7  ;;  %6221 = vmatprep.subr.bf16.mxu1 %v6606_v20 }
 0x3c9   : > { %v3023_v56 = vmul.f32 %v7067_v33, %v9137_v16  ;;  %v3346_v2 = vsub.f32 0.0, %v3330_v44  ;;  %v3363_v0 = vmul.f32 1.442695, %v3345_v58  ;;  %v2992_v9 = vadd.f32 1e-05, %v2960_v30  ;;  %v7069_v60 = vpop.eup %7068  ;;  %v6618_v33 = vld [vmem:[#allocation8 + $0x1d8] sm:$0xff]  }
 0x3ca   : > { %v5595_v43 = vadd.f32 2.0, %v8632_v7  ;;  %v3219_v51 = vmul.f32 %v3203_v26, %v3203_v26  ;;  %v3220_v18 = vmul.f32 %v3204_v46, %v3204_v46  ;;  %v5644_v63 = vadd.f32 0.2857143, %v8640_v13  ;;  %6282 = vmatpush3.bf16.msra.mxu0 %v6613_v21  ;;  %v6611_v16 = vld [vmem:[#allocation8 + $0x120] sm:$0xff]  }
 0x3cb   : > { %v3046_v48 = vmul.f32 %v8531_v55, %v3023_v56  ;;  %7080 = vpow2.f32 %v3363_v0  ;;  %v3365_v42 = vmul.f32 1.442695, %v3346_v2  ;;  %v3427_v17 = vmul.f32 1.75, %v5643_v47  ;;  %6283 = vmatprep.subr.bf16.mxu0 %v6616_v24  ;;  %6222 = vmatpush3.bf16.msra.mxu1 %v6607_v11  ;;  %v6614_v47 = vld [vmem:[#allocation8 + $0x168] sm:$0xff]   ;;  %v6619_v2 = vld [vmem:[#allocation8 + $0x198] sm:$0xff]  }
 0x3cc   : > { %v5596_v23 = vadd.f32 2.0, %v8640_v13  ;;  %v7071_v44 = vpop.eup %7070  ;;  %7082 = vrsqrt.f32 %v2992_v9  ;;  %v3235_v20 = vsub.f32 0.0, %v3219_v51  ;;  %v3236_v30 = vsub.f32 0.0, %v3220_v18  ;;  %6223 = vmatprep.subr.bf16.mxu1 %v6610_v57 }
 0x3cd   : > { %v8754_v58 = vadd.f32 %v8545_v19, %v3046_v48  ;;  %v7073_v56 = vpop.eup %7072  ;;  %v3280_v26 = vpack.c.bf16 %v7071_v44, %v7069_v60  ;;  %7084 = vpow2.f32 %v3365_v42  ;;  %v3428_v21 = vmul.f32 1.75, %v5644_v63  ;;  %v6622_v60 = vld [vmem:[#allocation8 + $0x1e0] sm:$0xff]   ;;  %v6615_v44 = vld [vmem:[#allocation8 + $0x128] sm:$0xff]  }
 0x3ce   : > { %v3443_v46 = vmul.f32 %v3427_v17, %v3427_v17  ;;  %v7075_v0 = vpop.eup %7074  ;;  %v3255_v24 = vmul.f32 1.442695, %v3235_v20  ;;  %v3257_v15 = vmul.f32 1.442695, %v3236_v30  ;;  %v3091_v40 = vmul.f32 1.75, %v5595_v43  ;;  %6284 = vmatpush3.bf16.msra.mxu0 %v6617_v22 }
 0x3cf   : > { %v3092_v62 = vmul.f32 1.75, %v5596_v23  ;;  %4790 = vmatprep.mubr.bf16.mxu1 %v3280_v26  ;;  %v3504_v9 = vpack.c.bf16 %v7075_v0, %v7073_v56  ;;  %v3444_v48 = vmul.f32 %v3428_v21, %v3428_v21  ;;  %v5627_v11 = vadd.f32 0.85714287, %v8632_v7  ;;  %6285 = vmatprep.subr.bf16.mxu0 %v6618_v33  ;;  %v6620_v26 = vld [vmem:[#allocation8 + $0x170] sm:$0xff]   ;;  %v6623_v21 = vld [vmem:[#allocation8 + $0x1a0] sm:$0xff]  }
 0x3d0   : > { %v3459_v51 = vsub.f32 0.0, %v3443_v46  ;;  %v7077_v18 = vpop.eup %7076  ;;  %7086 = vpow2.f32 %v3255_v24  ;;  %v3107_v63 = vmul.f32 %v3091_v40, %v3091_v40  ;;  %v5628_v42 = vadd.f32 0.85714287, %v8640_v13  ;;  %6224 = vmatpush3.bf16.msra.mxu1 %v6611_v16  ;;  %v6624_v46 = vld [vmem:[#allocation8 + $0x1e8] sm:$0xff]  }
 0x3d1   : > { %v3108_v57 = vmul.f32 %v3092_v62, %v3092_v62  ;;  %4887 = vmatprep.mubr.bf16.mxu0 %v3504_v9  ;;  %7088 = vpow2.f32 %v3257_v15  ;;  %v3460_v43 = vsub.f32 0.0, %v3444_v48  ;;  %v3315_v23 = vmul.f32 1.75, %v5627_v11  ;;  %6225 = vmatprep.subr.bf16.mxu1 %v6614_v47  ;;  %v6621_v11 = vld [vmem:[#allocation8 + $0x130] sm:$0xff]  }
 0x3d2   : > { %v7079_v17 = vpop.eup %7078  ;;  %v3479_v22 = vmul.f32 1.442695, %v3459_v51  ;;  %v3123_v30 = vsub.f32 0.0, %v3107_v63  ;;  %v3316_v33 = vmul.f32 1.75, %v5628_v42  ;;  %6286 = vmatpush3.bf16.msra.mxu0 %v6619_v2  ;;  %v5613_v16 = vadd.f32 1.4285715, %v8662_v45 }
 0x3d3   : > { %v3168_v20 = vpack.c.bf16 %v7079_v17, %v7077_v18  ;;  %v3124_v56 = vsub.f32 0.0, %v3108_v57  ;;  %v3481_v40 = vmul.f32 1.442695, %v3460_v43  ;;  %v3331_v62 = vmul.f32 %v3315_v23, %v3315_v23  ;;  %6287 = vmatprep.subr.bf16.mxu0 %v6622_v60  ;;  %v6626_v42 = vld [vmem:[#allocation8 + $0x178] sm:$0xff]  }
 0x3d4   : > { %7090 = vpow2.f32 %v3479_v22  ;;  %v3143_v15 = vmul.f32 1.442695, %v3123_v30  ;;  %v3332_v24 = vmul.f32 %v3316_v33, %v3316_v33  ;;  %v5614_v47 = vadd.f32 1.4285715, %v8670_v38  ;;  %6226 = vmatpush3.bf16.msra.mxu1 %v6615_v44  ;;  %v6625_v44 = vld [vmem:[#allocation8 + $0x1a8] sm:$0xff]  }
 0x3d5   : > { %4791 = vmatmul.mubr.bf16.gmra.mrb[68].mxu1 %v3168_v20  ;;  %v3145_v0 = vmul.f32 1.442695, %v3124_v56  ;;  %v7081_v9 = vpop.eup %7080  ;;  %7092 = vpow2.f32 %v3481_v40  ;;  %v3347_v48 = vsub.f32 0.0, %v3331_v62  ;;  %v3205_v51 = vmul.f32 1.75, %v5613_v16  ;;  %6227 = vmatprep.subr.bf16.mxu1 %v6620_v26  ;;  %v6628_v62 = vld [vmem:[#allocation8 + $0x1f0] sm:$0xff]  }
 0x3d6   : > { %v5645_v2 = vadd.f32 0.2857143, %v8662_v45  ;;  %v7083_v18 = vpop.eup %7082  ;;  %7094 = vpow2.f32 %v3143_v15  ;;  %v3348_v63 = vsub.f32 0.0, %v3332_v24  ;;  %v3206_v57 = vmul.f32 1.75, %v5614_v47  ;;  %6288 = vmatpush3.bf16.msra.mxu0 %v6623_v21  ;;  %v6627_v15 = vld [vmem:[#allocation8 + $0x138] sm:$0xff]   ;;  %v8767_v47 = vld [vmem:[#allocation8 + $0x200] sm:$0xff]  }
 0x3d7   : > { %v5646_v60 = vadd.f32 0.2857143, %v8670_v38  ;;  %v7085_v17 = vpop.eup %7084  ;;  %v9138_v43 = vsub.f32 %v8458_v34, %v8691_v36  ;;  %7096 = vpow2.f32 %v3145_v0  ;;  %v3367_v23 = vmul.f32 1.442695, %v3347_v48  ;;  %6289 = vmatprep.subr.bf16.mxu0 %v6624_v46 }
 0x3d8   : > { %v3221_v20 = vmul.f32 %v3205_v51, %v3205_v51  ;;  %v3392_v30 = vpack.c.bf16 %v7085_v17, %v7081_v9  ;;  %v3369_v56 = vmul.f32 1.442695, %v3348_v63  ;;  %v3222_v33 = vmul.f32 %v3206_v57, %v3206_v57  ;;  %6228 = vmatpush3.bf16.msra.mxu1 %v6621_v11  ;;  %v6629_v11 = vld [vmem:[#allocation8 + $0x1b0] sm:$0xff]   ;;  %v6630_v17 = vld [vmem:[#allocation8 + $0x1f8] sm:$0xff]  }
 0x3d9   : > { %v3024_v22 = vmul.f32 %v7083_v18, %v9138_v43  ;;  %v3429_v40 = vmul.f32 1.75, %v5645_v2  ;;  %7098 = vpow2.f32 %v3367_v23  ;;  %v3430_v21 = vmul.f32 1.75, %v5646_v60  ;;  %6229 = vmatprep.subr.bf16.mxu1 %v6626_v42 }
 0x3da   : > { %v3237_v26 = vsub.f32 0.0, %v3221_v20  ;;  %v7087_v24 = vpop.eup %7086  ;;  %4888 = vmatmul.mubr.bf16.gmra.mrb[84].mxu0 %v3392_v30  ;;  %7100 = vpow2.f32 %v3369_v56  ;;  %v3238_v36 = vsub.f32 0.0, %v3222_v33  ;;  %v5597_v46 = vadd.f32 2.0, %v8662_v45 }
 0x3db   : > { %v3047_v16 = vmul.f32 %v8531_v55, %v3024_v22  ;;  %v3445_v0 = vmul.f32 %v3429_v40, %v3429_v40  ;;  %v7089_v9 = vpop.eup %7088  ;;  %v3446_v51 = vmul.f32 %v3430_v21, %v3430_v21  ;;  %v5598_v2 = vadd.f32 2.0, %v8670_v38  ;;  %6290 = vmatpush3.bf16.msra.mxu0 %v6625_v44 }
 0x3dc   : > { %v3259_v55 = vmul.f32 1.442695, %v3237_v26  ;;  %v3281_v18 = vpack.c.bf16 %v7089_v9, %v7087_v24  ;;  %v3261_v63 = vmul.f32 1.442695, %v3238_v36  ;;  %v3093_v60 = vmul.f32 1.75, %v5597_v46  ;;  %6291 = vmatprep.subr.bf16.mxu0 %v6628_v62  ;;  %6230 = vmatpush3.bf16.msra.mxu1 %v6627_v15 }
 0x3dd   : > { %v8770_v48 = vadd.f32 %v8545_v19, %v3047_v16  ;;  %v3461_v57 = vsub.f32 0.0, %v3445_v0  ;;  %v3462_v42 = vsub.f32 0.0, %v3446_v51  ;;  %v3094_v22 = vmul.f32 1.75, %v5598_v2  ;;  %6391 = vmatprep.subr.bf16.mxu1 %v8767_v47  ;;  %v6631_v16 = vld [vmem:[#allocation8 + $0x1b8] sm:$0xff]  }
 0x3de   : > { %v7091_v43 = vpop.eup %7090  ;;  %7102 = vpow2.f32 %v3259_v55  ;;  %v5629_v23 = vadd.f32 0.85714287, %v8662_v45  ;;  %4798 = vmatprep.mubr.bf16.mxu1 %v3281_v18  ;;  %v3109_v20 = vmul.f32 %v3093_v60, %v3093_v60  ;;  %v5630_v44 = vadd.f32 0.85714287, %v8670_v38 }
 0x3df   : > { %7104 = vpow2.f32 %v3261_v63  ;;  %v3483_v19 = vmul.f32 1.442695, %v3461_v57  ;;  %v7093_v30 = vpop.eup %7092  ;;  %v3485_v56 = vmul.f32 1.442695, %v3462_v42  ;;  %v3110_v33 = vmul.f32 %v3094_v22, %v3094_v22  ;;  %6292 = vmatpush3.bf16.msra.mxu0 %v6629_v11 }
 0x3e0   : > { %v3317_v40 = vmul.f32 1.75, %v5629_v23  ;;  %v5615_v62 = vadd.f32 1.4285715, %v8686_v61  ;;  %v7095_v26 = vpop.eup %7094  ;;  %v3505_v21 = vpack.c.bf16 %v7093_v30, %v7091_v43  ;;  %v3125_v15 = vsub.f32 0.0, %v3109_v20  ;;  %6293 = vmatprep.subr.bf16.mxu0 %v6630_v17 }
 0x3e1   : > { %7106 = vpow2.f32 %v3483_v19  ;;  %v3318_v24 = vmul.f32 1.75, %v5630_v44  ;;  %v7097_v36 = vpop.eup %7096  ;;  %v3126_v0 = vsub.f32 0.0, %v3110_v33  ;;  %v5616_v9 = vadd.f32 1.4285715, %v8695_v1 }
 0x3e2   : > { %7108 = vpow2.f32 %v3485_v56  ;;  %v3333_v46 = vmul.f32 %v3317_v40, %v3317_v40  ;;  %4895 = vmatprep.mubr.bf16.mxu0 %v3505_v21  ;;  %v3169_v55 = vpack.c.bf16 %v7097_v36, %v7095_v26  ;;  %v3147_v51 = vmul.f32 1.442695, %v3125_v15 }
 0x3e3   : > { %v3334_v2 = vmul.f32 %v3318_v24, %v3318_v24  ;;  %v3207_v18 = vmul.f32 1.75, %v5615_v62  ;;  %v7099_v63 = vpop.eup %7098  ;;  %v3149_v11 = vmul.f32 1.442695, %v3126_v0  ;;  %v3208_v60 = vmul.f32 1.75, %v5616_v9  ;;  %6294 = vmatpush3.bf16.msra.mxu0 %v6631_v16 }
 0x3e4   : > { %v3349_v57 = vsub.f32 0.0, %v3333_v46  ;;  %v5647_v43 = vadd.f32 0.2857143, %v8686_v61  ;;  %v7101_v42 = vpop.eup %7100  ;;  %4799 = vmatmul.mubr.bf16.gmra.mrb[72].mxu1 %v3169_v55  ;;  %7110 = vpow2.f32 %v3147_v51  ;;  %v5648_v23 = vadd.f32 0.2857143, %v8695_v1 }
 0x3e5   : > { %v3350_v17 = vsub.f32 0.0, %v3334_v2  ;;  %v3223_v22 = vmul.f32 %v3207_v18, %v3207_v18  ;;  %v3393_v19 = vpack.c.bf16 %v7101_v42, %v7099_v63  ;;  %7112 = vpow2.f32 %v3149_v11 }
 0x3e6   : > { %v3371_v20 = vmul.f32 1.442695, %v3349_v57  ;;  %v3224_v44 = vmul.f32 %v3208_v60, %v3208_v60  ;;  %v3431_v33 = vmul.f32 1.75, %v5647_v43  ;;  %v3432_v40 = vmul.f32 1.75, %v5648_v23 }
 0x3e7   : > { %v3373_v30 = vmul.f32 1.442695, %v3350_v17  ;;  %v3239_v56 = vsub.f32 0.0, %v3223_v22  ;;  %4896 = vmatmul.mubr.bf16.gmra.mrb[88].mxu0 %v3393_v19  ;;  %v5599_v16 = vadd.f32 2.0, %v8686_v61  ;;  %v5600_v21 = vadd.f32 2.0, %v8695_v1 }
 0x3e8   : > { %v7103_v62 = vpop.eup %7102  ;;  %7114 = vpow2.f32 %v3371_v20  ;;  %v3240_v26 = vsub.f32 0.0, %v3224_v44  ;;  %v3447_v36 = vmul.f32 %v3431_v33, %v3431_v33  ;;  %v3448_v0 = vmul.f32 %v3432_v40, %v3432_v40 }
 0x3e9   : > { %v7105_v15 = vpop.eup %7104  ;;  %7116 = vpow2.f32 %v3373_v30  ;;  %v3263_v24 = vmul.f32 1.442695, %v3239_v56  ;;  %v3095_v55 = vmul.f32 1.75, %v5599_v16  ;;  %v3096_v51 = vmul.f32 1.75, %v5600_v21 }
 0x3ea   : > { %v3282_v46 = vpack.c.bf16 %v7105_v15, %v7103_v62  ;;  %v3265_v9 = vmul.f32 1.442695, %v3240_v26  ;;  %v3463_v18 = vsub.f32 0.0, %v3447_v36  ;;  %v3464_v63 = vsub.f32 0.0, %v3448_v0 }
 0x3eb   : > { %v7107_v2 = vpop.eup %7106  ;;  %7118 = vpow2.f32 %v3263_v24  ;;  %v5631_v11 = vadd.f32 0.85714287, %v8686_v61  ;;  %v3111_v60 = vmul.f32 %v3095_v55, %v3095_v55  ;;  %v3112_v43 = vmul.f32 %v3096_v51, %v3096_v51 }
 0x3ec   : > { %v7109_v57 = vpop.eup %7108  ;;  %4806 = vmatprep.mubr.bf16.mxu1 %v3282_v46  ;;  %7120 = vpow2.f32 %v3265_v9  ;;  %v5632_v42 = vadd.f32 0.85714287, %v8695_v1  ;;  %v3487_v22 = vmul.f32 1.442695, %v3463_v18  ;;  %v3489_v23 = vmul.f32 1.442695, %v3464_v63 }
 0x3ed   : > { %v3506_v17 = vpack.c.bf16 %v7109_v57, %v7107_v2  ;;  %v3319_v19 = vmul.f32 1.75, %v5631_v11  ;;  %v3127_v20 = vsub.f32 0.0, %v3111_v60  ;;  %v3128_v44 = vsub.f32 0.0, %v3112_v43 }
 0x3ee   : > { %v3320_v30 = vmul.f32 1.75, %v5632_v42  ;;  %v5617_v56 = vadd.f32 1.4285715, %v8720_v49  ;;  %v7111_v33 = vpop.eup %7110  ;;  %7122 = vpow2.f32 %v3487_v22  ;;  %v5618_v62 = vadd.f32 1.4285715, %v8724_v10 }
 0x3ef   : > { %4903 = vmatprep.mubr.bf16.mxu0 %v3506_v17  ;;  %v3335_v40 = vmul.f32 %v3319_v19, %v3319_v19  ;;  %v5649_v26 = vadd.f32 0.2857143, %v8720_v49  ;;  %v7113_v16 = vpop.eup %7112  ;;  %7124 = vpow2.f32 %v3489_v23  ;;  %v3151_v21 = vmul.f32 1.442695, %v3127_v20 }
 0x3f0   : > { %v3153_v15 = vmul.f32 1.442695, %v3128_v44  ;;  %v3336_v24 = vmul.f32 %v3320_v30, %v3320_v30  ;;  %v3170_v36 = vpack.c.bf16 %v7113_v16, %v7111_v33  ;;  %v3209_v46 = vmul.f32 1.75, %v5617_v56 }
 0x3f1   : > { %v3351_v0 = vsub.f32 0.0, %v3335_v40  ;;  %v3210_v9 = vmul.f32 1.75, %v5618_v62  ;;  %7126 = vpow2.f32 %v3151_v21  ;;  %v5650_v2 = vadd.f32 0.2857143, %v8724_v10 }
 0x3f2   : > { %v7115_v55 = vpop.eup %7114  ;;  %v3352_v51 = vsub.f32 0.0, %v3336_v24  ;;  %v3433_v18 = vmul.f32 1.75, %v5649_v26  ;;  %4807 = vmatmul.mubr.bf16.gmra.mrb[76].mxu1 %v3170_v36  ;;  %7128 = vpow2.f32 %v3153_v15  ;;  %v3225_v57 = vmul.f32 %v3209_v46, %v3209_v46 }
 0x3f3   : > { %v7117_v63 = vpop.eup %7116  ;;  %v3375_v11 = vmul.f32 1.442695, %v3351_v0  ;;  %v3226_v60 = vmul.f32 %v3210_v9, %v3210_v9  ;;  %v3434_v17 = vmul.f32 1.75, %v5650_v2  ;;  %v5601_v44 = vadd.f32 2.0, %v8720_v49 }
 0x3f4   : > { %v3394_v43 = vpack.c.bf16 %v7117_v63, %v7115_v55  ;;  %v3377_v42 = vmul.f32 1.442695, %v3352_v51  ;;  %v3449_v22 = vmul.f32 %v3433_v18, %v3433_v18  ;;  %v3241_v19 = vsub.f32 0.0, %v3225_v57 }
 0x3f5   : > { %v7119_v23 = vpop.eup %7118  ;;  %7130 = vpow2.f32 %v3375_v11  ;;  %v3242_v20 = vsub.f32 0.0, %v3226_v60  ;;  %v3450_v56 = vmul.f32 %v3434_v17, %v3434_v17  ;;  %v5602_v40 = vadd.f32 2.0, %v8724_v10 }
 0x3f6   : > { %v7121_v30 = vpop.eup %7120  ;;  %4904 = vmatmul.mubr.bf16.gmra.mrb[92].mxu0 %v3394_v43  ;;  %7132 = vpow2.f32 %v3377_v42  ;;  %v3465_v33 = vsub.f32 0.0, %v3449_v22  ;;  %v3267_v26 = vmul.f32 1.442695, %v3241_v19  ;;  %v3097_v21 = vmul.f32 1.75, %v5601_v44 }
 0x3f7   : > { %v3283_v62 = vpack.c.bf16 %v7121_v30, %v7119_v23  ;;  %v3269_v16 = vmul.f32 1.442695, %v3242_v20  ;;  %v3466_v15 = vsub.f32 0.0, %v3450_v56  ;;  %v3098_v36 = vmul.f32 1.75, %v5602_v40 }
 0x3f8   : > { %v3491_v24 = vmul.f32 1.442695, %v3465_v33  ;;  %v5633_v0 = vadd.f32 0.85714287, %v8720_v49  ;;  %v7123_v46 = vpop.eup %7122  ;;  %7134 = vpow2.f32 %v3267_v26  ;;  %v3113_v9 = vmul.f32 %v3097_v21, %v3097_v21 }
 0x3f9   : > { %4814 = vmatprep.mubr.bf16.mxu1 %v3283_v62  ;;  %v5634_v55 = vadd.f32 0.85714287, %v8724_v10  ;;  %v5619_v51 = vadd.f32 1.4285715, %v8736_v28  ;;  %v7125_v2 = vpop.eup %7124  ;;  %7136 = vpow2.f32 %v3269_v16  ;;  %v3493_v18 = vmul.f32 1.442695, %v3466_v15 }
 0x3fa   : > { %v3114_v63 = vmul.f32 %v3098_v36, %v3098_v36  ;;  %v3321_v11 = vmul.f32 1.75, %v5633_v0  ;;  %v3507_v57 = vpack.c.bf16 %v7125_v2, %v7123_v46  ;;  %7138 = vpow2.f32 %v3491_v24 }
 0x3fb   : > { %v3129_v60 = vsub.f32 0.0, %v3113_v9  ;;  %v3322_v43 = vmul.f32 1.75, %v5634_v55  ;;  %v7127_v42 = vpop.eup %7126  ;;  %7140 = vpow2.f32 %v3493_v18  ;;  %v5620_v23 = vadd.f32 1.4285715, %v8740_v3 }
 0x3fc   : > { %v3130_v17 = vsub.f32 0.0, %v3114_v63  ;;  %v3337_v22 = vmul.f32 %v3321_v11, %v3321_v11  ;;  %v7129_v19 = vpop.eup %7128  ;;  %4911 = vmatprep.mubr.bf16.mxu0 %v3507_v57  ;;  %v3211_v30 = vmul.f32 1.75, %v5619_v51  ;;  %v5651_v56 = vadd.f32 0.2857143, %v8736_v28 }
 0x3fd   : > { %v3155_v20 = vmul.f32 1.442695, %v3129_v60  ;;  %v3338_v44 = vmul.f32 %v3322_v43, %v3322_v43  ;;  %v3171_v33 = vpack.c.bf16 %v7129_v19, %v7127_v42  ;;  %v3212_v26 = vmul.f32 1.75, %v5620_v23 }
 0x3fe   : > { %v3157_v40 = vmul.f32 1.442695, %v3130_v17  ;;  %v3353_v62 = vsub.f32 0.0, %v3337_v22  ;;  %v3227_v15 = vmul.f32 %v3211_v30, %v3211_v30  ;;  %v5652_v24 = vadd.f32 0.2857143, %v8740_v3 }
 0x3ff   : > { %v7131_v16 = vpop.eup %7130  ;;  %7142 = vpow2.f32 %v3155_v20  ;;  %v3354_v21 = vsub.f32 0.0, %v3338_v44  ;;  %4815 = vmatmul.mubr.bf16.gmra.mrb[80].mxu1 %v3171_v33  ;;  %v3228_v46 = vmul.f32 %v3212_v26, %v3212_v26  ;;  %v3435_v9 = vmul.f32 1.75, %v5651_v56 }
 0x400   : > { %v7133_v36 = vpop.eup %7132  ;;  %7144 = vpow2.f32 %v3157_v40  ;;  %v3379_v0 = vmul.f32 1.442695, %v3353_v62  ;;  %v3243_v2 = vsub.f32 0.0, %v3227_v15  ;;  %v3436_v18 = vmul.f32 1.75, %v5652_v24 }
 0x401   : > { %v3395_v55 = vpack.c.bf16 %v7133_v36, %v7131_v16  ;;  %v3381_v51 = vmul.f32 1.442695, %v3354_v21  ;;  %v3244_v63 = vsub.f32 0.0, %v3228_v46  ;;  %v3451_v11 = vmul.f32 %v3435_v9, %v3435_v9 }
 0x402   : > { %7146 = vpow2.f32 %v3379_v0  ;;  %v5603_v57 = vadd.f32 2.0, %v8736_v28  ;;  %v7135_v60 = vpop.eup %7134  ;;  %v3271_v43 = vmul.f32 1.442695, %v3243_v2  ;;  %v3452_v42 = vmul.f32 %v3436_v18, %v3436_v18 }
 0x403   : > { %4912 = vmatmul.mubr.bf16.gmra.mrb[96].mxu0 %v3395_v55  ;;  %7148 = vpow2.f32 %v3381_v51  ;;  %v5604_v17 = vadd.f32 2.0, %v8740_v3  ;;  %v7137_v22 = vpop.eup %7136  ;;  %v3273_v23 = vmul.f32 1.442695, %v3244_v63  ;;  %v3467_v19 = vsub.f32 0.0, %v3451_v11 }
 0x404   : > { %v3099_v20 = vmul.f32 1.75, %v5603_v57  ;;  %v5635_v44 = vadd.f32 0.85714287, %v8736_v28  ;;  %v7139_v30 = vpop.eup %7138  ;;  %v3284_v56 = vpack.c.bf16 %v7137_v22, %v7135_v60  ;;  %7150 = vpow2.f32 %v3271_v43 }
 0x405   : > { %v3468_v33 = vsub.f32 0.0, %v3452_v42  ;;  %v3100_v40 = vmul.f32 1.75, %v5604_v17  ;;  %v7141_v62 = vpop.eup %7140  ;;  %7152 = vpow2.f32 %v3273_v23  ;;  %v3495_v26 = vmul.f32 1.442695, %v3467_v19 }
 0x406   : > { %v3115_v16 = vmul.f32 %v3099_v20, %v3099_v20  ;;  %v5636_v21 = vadd.f32 0.85714287, %v8740_v3  ;;  %4822 = vmatprep.mubr.bf16.mxu1 %v3284_v56  ;;  %v3508_v15 = vpack.c.bf16 %v7141_v62, %v7139_v30  ;;  %v3323_v0 = vmul.f32 1.75, %v5635_v44 }
 0x407   : > { %v3497_v24 = vmul.f32 1.442695, %v3468_v33  ;;  %v3116_v36 = vmul.f32 %v3100_v40, %v3100_v40  ;;  %7154 = vpow2.f32 %v3495_v26  ;;  %v5621_v55 = vadd.f32 1.4285715, %v8754_v58 }
 0x408   : > { %v3131_v46 = vsub.f32 0.0, %v3115_v16  ;;  %v3324_v9 = vmul.f32 1.75, %v5636_v21  ;;  %4919 = vmatprep.mubr.bf16.mxu0 %v3508_v15  ;;  %v3339_v18 = vmul.f32 %v3323_v0, %v3323_v0  ;;  %v5622_v63 = vadd.f32 1.4285715, %v8770_v48 }
 0x409   : > { %v7143_v51 = vpop.eup %7142  ;;  %7156 = vpow2.f32 %v3497_v24  ;;  %v3132_v2 = vsub.f32 0.0, %v3116_v36  ;;  %v3213_v43 = vmul.f32 1.75, %v5621_v55  ;;  %v5653_v42 = vadd.f32 0.2857143, %v8754_v58 }
 0x40a   : > { %v7145_v11 = vpop.eup %7144  ;;  %v3159_v57 = vmul.f32 1.442695, %v3131_v46  ;;  %v3340_v60 = vmul.f32 %v3324_v9, %v3324_v9  ;;  %v3355_v23 = vsub.f32 0.0, %v3339_v18  ;;  %v3214_v19 = vmul.f32 1.75, %v5622_v63 }
 0x40b   : > { %v3172_v17 = vpack.c.bf16 %v7145_v11, %v7143_v51  ;;  %v3161_v22 = vmul.f32 1.442695, %v3132_v2  ;;  %v3229_v30 = vmul.f32 %v3213_v43, %v3213_v43  ;;  %v5654_v56 = vadd.f32 0.2857143, %v8770_v48 }
 0x40c   : > { %v7147_v20 = vpop.eup %7146  ;;  %7158 = vpow2.f32 %v3159_v57  ;;  %v3356_v44 = vsub.f32 0.0, %v3340_v60  ;;  %v3383_v40 = vmul.f32 1.442695, %v3355_v23  ;;  %v3230_v62 = vmul.f32 %v3214_v19, %v3214_v19 }
 0x40d   : > { %v7149_v33 = vpop.eup %7148  ;;  %4823 = vmatmul.mubr.bf16.gmra.mrb[84].mxu1 %v3172_v17  ;;  %7160 = vpow2.f32 %v3161_v22  ;;  %v3437_v26 = vmul.f32 1.75, %v5653_v42  ;;  %v3245_v15 = vsub.f32 0.0, %v3229_v30  ;;  %v3438_v24 = vmul.f32 1.75, %v5654_v56 }
 0x40e   : > { %v3396_v16 = vpack.c.bf16 %v7149_v33, %v7147_v20  ;;  %v3385_v21 = vmul.f32 1.442695, %v3356_v44  ;;  %v7151_v36 = vpop.eup %7150  ;;  %7162 = vpow2.f32 %v3383_v40  ;;  %v3246_v0 = vsub.f32 0.0, %v3230_v62 }
 0x40f   : > { %v3453_v46 = vmul.f32 %v3437_v26, %v3437_v26  ;;  %v5605_v9 = vadd.f32 2.0, %v8754_v58  ;;  %v7153_v55 = vpop.eup %7152  ;;  %v3275_v51 = vmul.f32 1.442695, %v3245_v15  ;;  %v3454_v2 = vmul.f32 %v3438_v24, %v3438_v24 }
 0x410   : > { %4920 = vmatmul.mubr.bf16.gmra.mrb[100].mxu0 %v3396_v16  ;;  %7164 = vpow2.f32 %v3385_v21  ;;  %v5606_v18 = vadd.f32 2.0, %v8770_v48  ;;  %v3285_v63 = vpack.c.bf16 %v7153_v55, %v7151_v36  ;;  %v3277_v11 = vmul.f32 1.442695, %v3246_v0 }
 0x411   : > { %v3469_v57 = vsub.f32 0.0, %v3453_v46  ;;  %v3101_v60 = vmul.f32 1.75, %v5605_v9  ;;  %v7155_v43 = vpop.eup %7154  ;;  %7166 = vpow2.f32 %v3275_v51  ;;  %v3470_v42 = vsub.f32 0.0, %v3454_v2 }
 0x412   : > { %v3102_v17 = vmul.f32 1.75, %v5606_v18  ;;  %v5637_v22 = vadd.f32 0.85714287, %v8754_v58  ;;  %4830 = vmatprep.mubr.bf16.mxu1 %v3285_v63  ;;  %7168 = vpow2.f32 %v3277_v11  ;;  %v5638_v44 = vadd.f32 0.85714287, %v8770_v48 }
 0x413   : > { %v7157_v23 = vpop.eup %7156  ;;  %v3499_v19 = vmul.f32 1.442695, %v3469_v57  ;;  %v3117_v20 = vmul.f32 %v3101_v60, %v3101_v60  ;;  %v3501_v56 = vmul.f32 1.442695, %v3470_v42  ;;  %v5671_v16 = vadd.f32 -0.85714287, %v8565_v6 }
 0x414   : > { %v3509_v30 = vpack.c.bf16 %v7157_v23, %v7155_v43  ;;  %v3118_v33 = vmul.f32 %v3102_v17, %v3102_v17  ;;  %v3325_v40 = vmul.f32 1.75, %v5637_v22  ;;  %v3326_v26 = vmul.f32 1.75, %v5638_v44 }
 0x415   : > { %7170 = vpow2.f32 %v3499_v19  ;;  %v3133_v62 = vsub.f32 0.0, %v3117_v20  ;;  %v5672_v36 = vadd.f32 -0.85714287, %v8581_v32  ;;  %v3647_v55 = vmul.f32 1.75, %v5671_v16 }
 0x416   : > { %v7159_v21 = vpop.eup %7158  ;;  %4927 = vmatprep.mubr.bf16.mxu0 %v3509_v30  ;;  %7172 = vpow2.f32 %v3501_v56  ;;  %v3134_v15 = vsub.f32 0.0, %v3118_v33  ;;  %v3341_v24 = vmul.f32 %v3325_v40, %v3325_v40  ;;  %v3342_v9 = vmul.f32 %v3326_v26, %v3326_v26 }
 0x417   : > { %v7161_v0 = vpop.eup %7160  ;;  %v3163_v46 = vmul.f32 1.442695, %v3133_v62  ;;  %v5703_v51 = vadd.f32 -2.0, %v8565_v6  ;;  %v3648_v11 = vmul.f32 1.75, %v5672_v36  ;;  %v3663_v43 = vmul.f32 %v3647_v55, %v3647_v55 }
 0x418   : > { %v3173_v2 = vpack.c.bf16 %v7161_v0, %v7159_v21  ;;  %v3165_v18 = vmul.f32 1.442695, %v3134_v15  ;;  %v3357_v63 = vsub.f32 0.0, %v3341_v24  ;;  %v7163_v57 = vpop.eup %7162  ;;  %v3358_v60 = vsub.f32 0.0, %v3342_v9 }
 0x419   : > { %7174 = vpow2.f32 %v3163_v46  ;;  %v5704_v42 = vadd.f32 -2.0, %v8581_v32  ;;  %v3664_v23 = vmul.f32 %v3648_v11, %v3648_v11  ;;  %v3871_v19 = vmul.f32 1.75, %v5703_v51 }
 0x41a   : > { %v7165_v17 = vpop.eup %7164  ;;  %4831 = vmatmul.mubr.bf16.gmra.mrb[88].mxu1 %v3173_v2  ;;  %7176 = vpow2.f32 %v3165_v18  ;;  %v3387_v22 = vmul.f32 1.442695, %v3357_v63  ;;  %v3389_v44 = vmul.f32 1.442695, %v3358_v60  ;;  %v3679_v30 = vsub.f32 0.0, %v3663_v43 }
 0x41b   : > { %v3397_v20 = vpack.c.bf16 %v7165_v17, %v7163_v57  ;;  %v3872_v56 = vmul.f32 1.75, %v5704_v42  ;;  %v7167_v33 = vpop.eup %7166  ;;  %v3680_v40 = vsub.f32 0.0, %v3664_v23  ;;  %v3887_v62 = vmul.f32 %v3871_v19, %v3871_v19 }
 0x41c   : > { %7178 = vpow2.f32 %v3387_v22  ;;  %v5655_v26 = vadd.f32 -0.2857143, %v8565_v6  ;;  %v7169_v16 = vpop.eup %7168  ;;  %v3695_v21 = vmul.f32 1.442695, %v3679_v30  ;;  %v5656_v24 = vadd.f32 -0.2857143, %v8581_v32 }
 0x41d   : > { %4928 = vmatmul.mubr.bf16.gmra.mrb[104].mxu0 %v3397_v20  ;;  %7180 = vpow2.f32 %v3389_v44  ;;  %v3888_v15 = vmul.f32 %v3872_v56, %v3872_v56  ;;  %v3286_v36 = vpack.c.bf16 %v7169_v16, %v7167_v33  ;;  %v3697_v0 = vmul.f32 1.442695, %v3680_v40 }
 0x41e   : > { %v3903_v46 = vsub.f32 0.0, %v3887_v62  ;;  %v3535_v9 = vmul.f32 1.75, %v5655_v26  ;;  %7182 = vpow2.f32 %v3695_v21  ;;  %v3536_v2 = vmul.f32 1.75, %v5656_v24 }
 0x41f   : > { %v7171_v55 = vpop.eup %7170  ;;  %v3904_v51 = vsub.f32 0.0, %v3888_v15  ;;  %v5687_v18 = vadd.f32 -1.4285715, %v8565_v6  ;;  %4838 = vmatprep.mubr.bf16.mxu1 %v3286_v36  ;;  %7184 = vpow2.f32 %v3697_v0  ;;  %v5688_v60 = vadd.f32 -1.4285715, %v8581_v32 }
 0x420   : > { %v7173_v63 = vpop.eup %7172  ;;  %v3919_v11 = vmul.f32 1.442695, %v3903_v46  ;;  %v3551_v57 = vmul.f32 %v3535_v9, %v3535_v9  ;;  %v3552_v17 = vmul.f32 %v3536_v2, %v3536_v2  ;;  %v5673_v20 = vadd.f32 -0.85714287, %v8609_v31 }
 0x421   : > { %v3510_v43 = vpack.c.bf16 %v7173_v63, %v7171_v55  ;;  %v3921_v42 = vmul.f32 1.442695, %v3904_v51  ;;  %v3759_v22 = vmul.f32 1.75, %v5687_v18  ;;  %v3760_v19 = vmul.f32 1.75, %v5688_v60 }
 0x422   : > { %7186 = vpow2.f32 %v3919_v11  ;;  %v3567_v23 = vsub.f32 0.0, %v3551_v57  ;;  %v3568_v6 = vsub.f32 0.0, %v3552_v17  ;;  %v5674_v56 = vadd.f32 -0.85714287, %v8617_v27 }
 0x423   : > { %v7175_v44 = vpop.eup %7174  ;;  %4935 = vmatprep.mubr.bf16.mxu0 %v3510_v43  ;;  %7188 = vpow2.f32 %v3921_v42  ;;  %v3775_v30 = vmul.f32 %v3759_v22, %v3759_v22  ;;  %v3776_v62 = vmul.f32 %v3760_v19, %v3760_v19  ;;  %v3649_v32 = vmul.f32 1.75, %v5673_v20 }
 0x424   : > { %v7177_v33 = vpop.eup %7176  ;;  %v3583_v40 = vmul.f32 1.442695, %v3567_v23  ;;  %v5705_v26 = vadd.f32 -2.0, %v8609_v31  ;;  %v3585_v21 = vmul.f32 1.442695, %v3568_v6  ;;  %v3650_v24 = vmul.f32 1.75, %v5674_v56 }
 0x425   : > { %v3174_v16 = vpack.c.bf16 %v7177_v33, %v7175_v44  ;;  %v3791_v15 = vsub.f32 0.0, %v3775_v30  ;;  %v3792_v0 = vsub.f32 0.0, %v3776_v62  ;;  %v3665_v46 = vmul.f32 %v3649_v32, %v3649_v32 }
 0x426   : > { %v7179_v36 = vpop.eup %7178  ;;  %7190 = vpow2.f32 %v3583_v40  ;;  %v5706_v9 = vadd.f32 -2.0, %v8617_v27  ;;  %v3666_v2 = vmul.f32 %v3650_v24, %v3650_v24  ;;  %v3873_v18 = vmul.f32 1.75, %v5705_v26 }
 0x427   : > { %v7181_v55 = vpop.eup %7180  ;;  %4839 = vmatmul.mubr.bf16.gmra.mrb[92].mxu1 %v3174_v16  ;;  %7192 = vpow2.f32 %v3585_v21  ;;  %v3807_v51 = vmul.f32 1.442695, %v3791_v15  ;;  %v3809_v11 = vmul.f32 1.442695, %v3792_v0  ;;  %v3681_v57 = vsub.f32 0.0, %v3665_v46 }
 0x428   : > { %v3398_v63 = vpack.c.bf16 %v7181_v55, %v7179_v36  ;;  %v3874_v60 = vmul.f32 1.75, %v5706_v9  ;;  %v7183_v43 = vpop.eup %7182  ;;  %v3682_v42 = vsub.f32 0.0, %v3666_v2  ;;  %v3889_v17 = vmul.f32 %v3873_v18, %v3873_v18 }
 0x429   : > { %7194 = vpow2.f32 %v3807_v51  ;;  %v5657_v22 = vadd.f32 -0.2857143, %v8609_v31  ;;  %v7185_v23 = vpop.eup %7184  ;;  %v3699_v19 = vmul.f32 1.442695, %v3681_v57  ;;  %v5658_v44 = vadd.f32 -0.2857143, %v8617_v27 }
 0x42a   : > { %4936 = vmatmul.mubr.bf16.gmra.mrb[108].mxu0 %v3398_v63  ;;  %7196 = vpow2.f32 %v3809_v11  ;;  %v3890_v20 = vmul.f32 %v3874_v60, %v3874_v60  ;;  %v3727_v6 = vpack.c.bf16 %v7185_v23, %v7183_v43  ;;  %v3701_v30 = vmul.f32 1.442695, %v3682_v42 }
 0x42b   : > { %v3905_v56 = vsub.f32 0.0, %v3889_v17  ;;  %v3537_v33 = vmul.f32 1.75, %v5657_v22  ;;  %7198 = vpow2.f32 %v3699_v19  ;;  %v3538_v32 = vmul.f32 1.75, %v5658_v44  ;;  %v6633_v22 = vld [vmem:[#allocation8 + $0x208] sm:$0xff]  }
 0x42c   : > { %v7187_v40 = vpop.eup %7186  ;;  %v3906_v62 = vsub.f32 0.0, %v3890_v20  ;;  %v5689_v26 = vadd.f32 -1.4285715, %v8609_v31  ;;  %4976 = vmatprep.mubr.bf16.mxu1 %v3727_v6  ;;  %7200 = vpow2.f32 %v3701_v30  ;;  %v5690_v24 = vadd.f32 -1.4285715, %v8617_v27 }
 0x42d   : > { %v7189_v16 = vpop.eup %7188  ;;  %v3923_v21 = vmul.f32 1.442695, %v3905_v56  ;;  %v3553_v15 = vmul.f32 %v3537_v33, %v3537_v33  ;;  %v3554_v46 = vmul.f32 %v3538_v32, %v3538_v32  ;;  %v5675_v2 = vadd.f32 -0.85714287, %v8632_v7 }
 0x42e   : > { %v3951_v36 = vpack.c.bf16 %v7189_v16, %v7187_v40  ;;  %v3925_v0 = vmul.f32 1.442695, %v3906_v62  ;;  %v3761_v9 = vmul.f32 1.75, %v5689_v26  ;;  %v3762_v51 = vmul.f32 1.75, %v5690_v24 }
 0x42f   : > { %7202 = vpow2.f32 %v3923_v21  ;;  %v3569_v55 = vsub.f32 0.0, %v3553_v15  ;;  %v3570_v31 = vsub.f32 0.0, %v3554_v46  ;;  %v5676_v11 = vadd.f32 -0.85714287, %v8640_v13  ;;  %v6634_v46 = vld [vmem:[#allocation8 + $0x210] sm:$0xff]  }
 0x430   : > { %v7191_v18 = vpop.eup %7190  ;;  %5073 = vmatprep.mubr.bf16.mxu0 %v3951_v36  ;;  %7204 = vpow2.f32 %v3925_v0  ;;  %v3777_v63 = vmul.f32 %v3761_v9, %v3761_v9  ;;  %v3778_v43 = vmul.f32 %v3762_v51, %v3762_v51  ;;  %v3651_v27 = vmul.f32 1.75, %v5675_v2 }
 0x431   : > { %v7193_v57 = vpop.eup %7192  ;;  %v3587_v60 = vmul.f32 1.442695, %v3569_v55  ;;  %v5707_v42 = vadd.f32 -2.0, %v8632_v7  ;;  %v3589_v23 = vmul.f32 1.442695, %v3570_v31  ;;  %v3652_v20 = vmul.f32 1.75, %v5676_v11 }
 0x432   : > { %v3615_v17 = vpack.c.bf16 %v7193_v57, %v7191_v18  ;;  %v3793_v19 = vsub.f32 0.0, %v3777_v63  ;;  %v3794_v6 = vsub.f32 0.0, %v3778_v43  ;;  %v3667_v30 = vmul.f32 %v3651_v27, %v3651_v27 }
 0x433   : > { %v7195_v44 = vpop.eup %7194  ;;  %7206 = vpow2.f32 %v3587_v60  ;;  %v5708_v56 = vadd.f32 -2.0, %v8640_v13  ;;  %v3668_v62 = vmul.f32 %v3652_v20, %v3652_v20  ;;  %v3875_v32 = vmul.f32 1.75, %v5707_v42  ;;  %v6635_v20 = vld [vmem:[#allocation8 + $0x218] sm:$0xff]  }
 0x434   : > { %v7197_v33 = vpop.eup %7196  ;;  %4977 = vmatmul.mubr.bf16.vlgmr.msra.gmra.mrb[96].mxu1 %v3615_v17  ;;  %7208 = vpow2.f32 %v3589_v23  ;;  %v3811_v40 = vmul.f32 1.442695, %v3793_v19  ;;  %v3813_v16 = vmul.f32 1.442695, %v3794_v6  ;;  %v3683_v21 = vsub.f32 0.0, %v3667_v30 }
 0x435   : > { %v3839_v26 = vpack.c.bf16 %v7197_v33, %v7195_v44  ;;  %6392 = vmatpush3.bf16.msra.mxu1 %v8767_v47  ;;  %v3876_v15 = vmul.f32 1.75, %v5708_v56  ;;  %v7199_v24 = vpop.eup %7198  ;;  %v3684_v36 = vsub.f32 0.0, %v3668_v62  ;;  %v3891_v0 = vmul.f32 %v3875_v32, %v3875_v32 }
 0x436   : > { %6393 = vmatprep.subr.bf16.mxu1 %v6633_v22  ;;  %7210 = vpow2.f32 %v3811_v40  ;;  %v5659_v9 = vadd.f32 -0.2857143, %v8632_v7  ;;  %v7201_v55 = vpop.eup %7200  ;;  %v3703_v51 = vmul.f32 1.442695, %v3683_v21  ;;  %v5660_v18 = vadd.f32 -0.2857143, %v8640_v13 }
 0x437   : > { %5074 = vmatmul.mubr.bf16.vlgmr.msra.gmra.mrb[112].mxu0 %v3839_v26  ;;  %7212 = vpow2.f32 %v3813_v16  ;;  %v3892_v2 = vmul.f32 %v3876_v15, %v3876_v15  ;;  %v3728_v31 = vpack.c.bf16 %v7201_v55, %v7199_v24  ;;  %v3705_v47 = vmul.f32 1.442695, %v3684_v36 }
 0x438   : > { %v3907_v63 = vsub.f32 0.0, %v3891_v0  ;;  %v3539_v11 = vmul.f32 1.75, %v5659_v9  ;;  %7214 = vpow2.f32 %v3703_v51  ;;  %v3540_v43 = vmul.f32 1.75, %v5660_v18  ;;  %v6636_v51 = vld [vmem:[#allocation8 + $0x220] sm:$0xff]  }
 0x439   : > { %v7203_v57 = vpop.eup %7202  ;;  %6394 = vmatpush3.bf16.msra.mxu1 %v6633_v22  ;;  %v3908_v60 = vsub.f32 0.0, %v3892_v2  ;;  %v5691_v27 = vadd.f32 -1.4285715, %v8632_v7  ;;  %4984 = vmatprep.mubr.bf16.mxu1 %v3728_v31  ;;  %7216 = vpow2.f32 %v3705_v47  ;;  %v5692_v19 = vadd.f32 -1.4285715, %v8640_v13 }
 0x43a   : > { %v7205_v42 = vpop.eup %7204  ;;  %v3927_v17 = vmul.f32 1.442695, %v3907_v63  ;;  %6395 = vmatprep.subr.bf16.mxu1 %v6634_v46  ;;  %v3555_v23 = vmul.f32 %v3539_v11, %v3539_v11  ;;  %v3556_v30 = vmul.f32 %v3540_v43, %v3540_v43  ;;  %v5677_v40 = vadd.f32 -0.85714287, %v8662_v45 }
 0x43b   : > { %v3952_v44 = vpack.c.bf16 %v7205_v42, %v7203_v57  ;;  %v3929_v6 = vmul.f32 1.442695, %v3908_v60  ;;  %v3763_v56 = vmul.f32 1.75, %v5691_v27  ;;  %v3764_v33 = vmul.f32 1.75, %v5692_v19 }
 0x43c   : > { %7218 = vpow2.f32 %v3927_v17  ;;  %v3571_v22 = vsub.f32 0.0, %v3555_v23  ;;  %v3572_v7 = vsub.f32 0.0, %v3556_v30  ;;  %v5678_v26 = vadd.f32 -0.85714287, %v8670_v38 }
 0x43d   : > { %v7207_v62 = vpop.eup %7206  ;;  %5081 = vmatprep.mubr.bf16.mxu0 %v3952_v44  ;;  %7220 = vpow2.f32 %v3929_v6  ;;  %v3779_v32 = vmul.f32 %v3763_v56, %v3763_v56  ;;  %6396 = vmatpush3.bf16.msra.mxu1 %v6634_v46  ;;  %v3780_v21 = vmul.f32 %v3764_v33, %v3764_v33  ;;  %v3653_v15 = vmul.f32 1.75, %v5677_v40  ;;  %v6637_v6 = vld [vmem:[#allocation8 + $0x228] sm:$0xff]  }
 0x43e   : > { %v7209_v16 = vpop.eup %7208  ;;  %v3591_v13 = vmul.f32 1.442695, %v3571_v22  ;;  %v5709_v24 = vadd.f32 -2.0, %v8662_v45  ;;  %6397 = vmatprep.subr.bf16.mxu1 %v6635_v20  ;;  %v3593_v0 = vmul.f32 1.442695, %v3572_v7  ;;  %v3654_v55 = vmul.f32 1.75, %v5678_v26 }
 0x43f   : > { %v3616_v36 = vpack.c.bf16 %v7209_v16, %v7207_v62  ;;  %v3795_v9 = vsub.f32 0.0, %v3779_v32  ;;  %v3796_v18 = vsub.f32 0.0, %v3780_v21  ;;  %v3669_v31 = vmul.f32 %v3653_v15, %v3653_v15 }
 0x440   : > { %v7211_v2 = vpop.eup %7210  ;;  %7222 = vpow2.f32 %v3591_v13  ;;  %v5710_v46 = vadd.f32 -2.0, %v8670_v38  ;;  %v3670_v11 = vmul.f32 %v3654_v55, %v3654_v55  ;;  %v3877_v57 = vmul.f32 1.75, %v5709_v24 }
 0x441   : > { %v7213_v47 = vpop.eup %7212  ;;  %4985 = vmatmul.mubr.bf16.gmra.mrb[100].mxu1 %v3616_v36  ;;  %7224 = vpow2.f32 %v3593_v0  ;;  %v3815_v63 = vmul.f32 1.442695, %v3795_v9  ;;  %v3817_v43 = vmul.f32 1.442695, %v3796_v18  ;;  %v3685_v27 = vsub.f32 0.0, %v3669_v31  ;;  %v6638_v0 = vld [vmem:[#allocation8 + $0x230] sm:$0xff]  }
 0x442   : > { %v3840_v60 = vpack.c.bf16 %v7213_v47, %v7211_v2  ;;  %v3878_v42 = vmul.f32 1.75, %v5710_v46  ;;  %6398 = vmatpush3.bf16.msra.mxu1 %v6635_v20  ;;  %v7215_v17 = vpop.eup %7214  ;;  %v3686_v23 = vsub.f32 0.0, %v3670_v11  ;;  %v3893_v19 = vmul.f32 %v3877_v57, %v3877_v57 }
 0x443   : > { %7226 = vpow2.f32 %v3815_v63  ;;  %v5661_v44 = vadd.f32 -0.2857143, %v8662_v45  ;;  %6399 = vmatprep.subr.bf16.mxu1 %v6636_v51  ;;  %v7217_v30 = vpop.eup %7216  ;;  %v3707_v56 = vmul.f32 1.442695, %v3685_v27  ;;  %v5662_v33 = vadd.f32 -0.2857143, %v8670_v38 }
 0x444   : > { %5082 = vmatmul.mubr.bf16.gmra.mrb[116].mxu0 %v3840_v60  ;;  %7228 = vpow2.f32 %v3817_v43  ;;  %v3894_v22 = vmul.f32 %v3878_v42, %v3878_v42  ;;  %v3729_v40 = vpack.c.bf16 %v7217_v30, %v7215_v17  ;;  %v3709_v62 = vmul.f32 1.442695, %v3686_v23 }
 0x445   : > { %v3909_v7 = vsub.f32 0.0, %v3893_v19  ;;  %v3541_v32 = vmul.f32 1.75, %v5661_v44  ;;  %7230 = vpow2.f32 %v3707_v56  ;;  %v3542_v16 = vmul.f32 1.75, %v5662_v33  ;;  %v6639_v44 = vld [vmem:[#allocation8 + $0x238] sm:$0xff]  }
 0x446   : > { %v7219_v20 = vpop.eup %7218  ;;  %v3910_v26 = vsub.f32 0.0, %v3894_v22  ;;  %v5693_v13 = vadd.f32 -1.4285715, %v8662_v45  ;;  %6400 = vmatpush3.bf16.msra.mxu1 %v6636_v51  ;;  %4992 = vmatprep.mubr.bf16.mxu1 %v3729_v40  ;;  %7232 = vpow2.f32 %v3709_v62  ;;  %v5694_v36 = vadd.f32 -1.4285715, %v8670_v38 }
 0x447   : > { %v7221_v21 = vpop.eup %7220  ;;  %v3931_v15 = vmul.f32 1.442695, %v3909_v7  ;;  %v3557_v24 = vmul.f32 %v3541_v32, %v3541_v32  ;;  %6401 = vmatprep.subr.bf16.mxu1 %v6637_v6  ;;  %v3558_v2 = vmul.f32 %v3542_v16, %v3542_v16  ;;  %v5679_v47 = vadd.f32 -0.85714287, %v8686_v61 }
 0x448   : > { %v3953_v9 = vpack.c.bf16 %v7221_v21, %v7219_v20  ;;  %v3933_v55 = vmul.f32 1.442695, %v3910_v26  ;;  %v3765_v18 = vmul.f32 1.75, %v5693_v13  ;;  %v3766_v46 = vmul.f32 1.75, %v5694_v36 }
 0x449   : > { %7234 = vpow2.f32 %v3931_v15  ;;  %v3573_v31 = vsub.f32 0.0, %v3557_v24  ;;  %v3574_v51 = vsub.f32 0.0, %v3558_v2  ;;  %v5680_v11 = vadd.f32 -0.85714287, %v8695_v1 }
 0x44a   : > { %v7223_v45 = vpop.eup %7222  ;;  %5089 = vmatprep.mubr.bf16.mxu0 %v3953_v9  ;;  %7236 = vpow2.f32 %v3933_v55  ;;  %v3781_v63 = vmul.f32 %v3765_v18, %v3765_v18  ;;  %6402 = vmatpush3.bf16.msra.mxu1 %v6637_v6  ;;  %v3782_v60 = vmul.f32 %v3766_v46, %v3766_v46  ;;  %v3655_v43 = vmul.f32 1.75, %v5679_v47 }
 0x44b   : > { %v7225_v38 = vpop.eup %7224  ;;  %v3595_v57 = vmul.f32 1.442695, %v3573_v31  ;;  %v5711_v27 = vadd.f32 -2.0, %v8686_v61  ;;  %6403 = vmatprep.subr.bf16.mxu1 %v6638_v0  ;;  %v3597_v17 = vmul.f32 1.442695, %v3574_v51  ;;  %v3656_v19 = vmul.f32 1.75, %v5680_v11 }
 0x44c   : > { %v3617_v42 = vpack.c.bf16 %v7225_v38, %v7223_v45  ;;  %v3797_v23 = vsub.f32 0.0, %v3781_v63  ;;  %v3798_v56 = vsub.f32 0.0, %v3782_v60  ;;  %v3671_v22 = vmul.f32 %v3655_v43, %v3655_v43 }
 0x44d   : > { %v7227_v30 = vpop.eup %7226  ;;  %7238 = vpow2.f32 %v3595_v57  ;;  %v5712_v33 = vadd.f32 -2.0, %v8695_v1  ;;  %v3672_v62 = vmul.f32 %v3656_v19, %v3656_v19  ;;  %v3879_v7 = vmul.f32 1.75, %v5711_v27 }
 0x44e   : > { %v7229_v40 = vpop.eup %7228  ;;  %4993 = vmatmul.mubr.bf16.gmra.mrb[104].mxu1 %v3617_v42  ;;  %7240 = vpow2.f32 %v3597_v17  ;;  %v3819_v6 = vmul.f32 1.442695, %v3797_v23  ;;  %v3821_v20 = vmul.f32 1.442695, %v3798_v56  ;;  %v3687_v26 = vsub.f32 0.0, %v3671_v22 }
 0x44f   : > { %v3841_v32 = vpack.c.bf16 %v7229_v40, %v7227_v30  ;;  %v3880_v16 = vmul.f32 1.75, %v5712_v33  ;;  %6404 = vmatpush3.bf16.msra.mxu1 %v6638_v0  ;;  %v7231_v13 = vpop.eup %7230  ;;  %v3688_v21 = vsub.f32 0.0, %v3672_v62  ;;  %v3895_v15 = vmul.f32 %v3879_v7, %v3879_v7 }
 0x450   : > { %7242 = vpow2.f32 %v3819_v6  ;;  %v5663_v24 = vadd.f32 -0.2857143, %v8686_v61  ;;  %6405 = vmatprep.subr.bf16.mxu1 %v6639_v44  ;;  %v7233_v36 = vpop.eup %7232  ;;  %v3711_v9 = vmul.f32 1.442695, %v3687_v26  ;;  %v5664_v2 = vadd.f32 -0.2857143, %v8695_v1 }
 0x451   : > { %5090 = vmatmul.mubr.bf16.gmra.mrb[120].mxu0 %v3841_v32  ;;  %7244 = vpow2.f32 %v3821_v20  ;;  %v3896_v55 = vmul.f32 %v3880_v16, %v3880_v16  ;;  %v3730_v18 = vpack.c.bf16 %v7233_v36, %v7231_v13  ;;  %v3713_v31 = vmul.f32 1.442695, %v3688_v21 }
 0x452   : > { %v3911_v46 = vsub.f32 0.0, %v3895_v15  ;;  %v3543_v47 = vmul.f32 1.75, %v5663_v24  ;;  %7246 = vpow2.f32 %v3711_v9  ;;  %v3544_v51 = vmul.f32 1.75, %v5664_v2 }
 0x453   : > { %v7235_v45 = vpop.eup %7234  ;;  %v3912_v0 = vsub.f32 0.0, %v3896_v55  ;;  %v5695_v63 = vadd.f32 -1.4285715, %v8686_v61  ;;  %6406 = vmatpush3.bf16.msra.mxu1 %v6639_v44  ;;  %5000 = vmatprep.mubr.bf16.mxu1 %v3730_v18  ;;  %7248 = vpow2.f32 %v3713_v31  ;;  %v5696_v60 = vadd.f32 -1.4285715, %v8695_v1 }
 0x454   : > { %v7237_v11 = vpop.eup %7236  ;;  %v3935_v38 = vmul.f32 1.442695, %v3911_v46  ;;  %v3559_v57 = vmul.f32 %v3543_v47, %v3543_v47  ;;  %v3560_v42 = vmul.f32 %v3544_v51, %v3544_v51  ;;  %v5681_v30 = vadd.f32 -0.85714287, %v8720_v49 }
 0x455   : > { %v3954_v43 = vpack.c.bf16 %v7237_v11, %v7235_v45  ;;  %v3937_v27 = vmul.f32 1.442695, %v3912_v0  ;;  %v3767_v17 = vmul.f32 1.75, %v5695_v63  ;;  %v3768_v19 = vmul.f32 1.75, %v5696_v60 }
 0x456   : > { %7250 = vpow2.f32 %v3935_v38  ;;  %v3575_v23 = vsub.f32 0.0, %v3559_v57  ;;  %v3576_v61 = vsub.f32 0.0, %v3560_v42  ;;  %v5682_v22 = vadd.f32 -0.85714287, %v8724_v10 }
 0x457   : > { %v7239_v56 = vpop.eup %7238  ;;  %5097 = vmatprep.mubr.bf16.mxu0 %v3954_v43  ;;  %7252 = vpow2.f32 %v3937_v27  ;;  %v3783_v44 = vmul.f32 %v3767_v17, %v3767_v17  ;;  %v3784_v6 = vmul.f32 %v3768_v19, %v3768_v19  ;;  %v3657_v1 = vmul.f32 1.75, %v5681_v30 }
 0x458   : > { %v7241_v33 = vpop.eup %7240  ;;  %v3599_v40 = vmul.f32 1.442695, %v3575_v23  ;;  %v5713_v62 = vadd.f32 -2.0, %v8720_v49  ;;  %v3601_v32 = vmul.f32 1.442695, %v3576_v61  ;;  %v3658_v26 = vmul.f32 1.75, %v5682_v22 }
 0x459   : > { %v3618_v7 = vpack.c.bf16 %v7241_v33, %v7239_v56  ;;  %v3799_v20 = vsub.f32 0.0, %v3783_v44  ;;  %v3800_v13 = vsub.f32 0.0, %v3784_v6  ;;  %v3673_v21 = vmul.f32 %v3657_v1, %v3657_v1 }
 0x45a   : > { %v7243_v16 = vpop.eup %7242  ;;  %7254 = vpow2.f32 %v3599_v40  ;;  %v5714_v15 = vadd.f32 -2.0, %v8724_v10  ;;  %v3674_v9 = vmul.f32 %v3658_v26, %v3658_v26  ;;  %v3881_v55 = vmul.f32 1.75, %v5713_v62 }
 0x45b   : > { %v7245_v24 = vpop.eup %7244  ;;  %5001 = vmatmul.mubr.bf16.gmra.mrb[108].mxu1 %v3618_v7  ;;  %7256 = vpow2.f32 %v3601_v32  ;;  %v3823_v36 = vmul.f32 1.442695, %v3799_v20  ;;  %v3825_v18 = vmul.f32 1.442695, %v3800_v13  ;;  %v3689_v31 = vsub.f32 0.0, %v3673_v21 }
 0x45c   : > { %v3842_v2 = vpack.c.bf16 %v7245_v24, %v7243_v16  ;;  %v3882_v46 = vmul.f32 1.75, %v5714_v15  ;;  %v7247_v47 = vpop.eup %7246  ;;  %v3690_v45 = vsub.f32 0.0, %v3674_v9  ;;  %v3897_v0 = vmul.f32 %v3881_v55, %v3881_v55 }
 0x45d   : > { %7258 = vpow2.f32 %v3823_v36  ;;  %v5665_v51 = vadd.f32 -0.2857143, %v8720_v49  ;;  %v7249_v63 = vpop.eup %7248  ;;  %v3715_v11 = vmul.f32 1.442695, %v3689_v31  ;;  %v5666_v57 = vadd.f32 -0.2857143, %v8724_v10 }
 0x45e   : > { %5098 = vmatmul.mubr.bf16.gmra.mrb[124].mxu0 %v3842_v2  ;;  %7260 = vpow2.f32 %v3825_v18  ;;  %v3898_v38 = vmul.f32 %v3882_v46, %v3882_v46  ;;  %v3731_v60 = vpack.c.bf16 %v7249_v63, %v7247_v47  ;;  %v3717_v43 = vmul.f32 1.442695, %v3690_v45 }
 0x45f   : > { %v3913_v27 = vsub.f32 0.0, %v3897_v0  ;;  %v3545_v42 = vmul.f32 1.75, %v5665_v51  ;;  %7262 = vpow2.f32 %v3715_v11  ;;  %v3546_v19 = vmul.f32 1.75, %v5666_v57 }
 0x460   : > { %v7251_v17 = vpop.eup %7250  ;;  %v3914_v23 = vsub.f32 0.0, %v3898_v38  ;;  %v5697_v30 = vadd.f32 -1.4285715, %v8720_v49  ;;  %5008 = vmatprep.mubr.bf16.mxu1 %v3731_v60  ;;  %7264 = vpow2.f32 %v3717_v43  ;;  %v5698_v22 = vadd.f32 -1.4285715, %v8724_v10 }
 0x461   : > { %v7253_v56 = vpop.eup %7252  ;;  %v3939_v61 = vmul.f32 1.442695, %v3913_v27  ;;  %v3561_v44 = vmul.f32 %v3545_v42, %v3545_v42  ;;  %v3562_v6 = vmul.f32 %v3546_v19, %v3546_v19  ;;  %v5683_v32 = vadd.f32 -0.85714287, %v8736_v28 }
 0x462   : > { %v3955_v33 = vpack.c.bf16 %v7253_v56, %v7251_v17  ;;  %v3941_v40 = vmul.f32 1.442695, %v3914_v23  ;;  %v3769_v1 = vmul.f32 1.75, %v5697_v30  ;;  %v3770_v7 = vmul.f32 1.75, %v5698_v22 }
 0x463   : > { %7266 = vpow2.f32 %v3939_v61  ;;  %v3577_v62 = vsub.f32 0.0, %v3561_v44  ;;  %v3578_v49 = vsub.f32 0.0, %v3562_v6  ;;  %v5684_v16 = vadd.f32 -0.85714287, %v8740_v3 }
 0x464   : > { %v7255_v20 = vpop.eup %7254  ;;  %5105 = vmatprep.mubr.bf16.mxu0 %v3955_v33  ;;  %7268 = vpow2.f32 %v3941_v40  ;;  %v3785_v26 = vmul.f32 %v3769_v1, %v3769_v1  ;;  %v3786_v15 = vmul.f32 %v3770_v7, %v3770_v7  ;;  %v3659_v10 = vmul.f32 1.75, %v5683_v32 }
 0x465   : > { %v7257_v13 = vpop.eup %7256  ;;  %v3603_v21 = vmul.f32 1.442695, %v3577_v62  ;;  %v5715_v24 = vadd.f32 -2.0, %v8736_v28  ;;  %v3605_v9 = vmul.f32 1.442695, %v3578_v49  ;;  %v3660_v2 = vmul.f32 1.75, %v5684_v16 }
 0x466   : > { %v3619_v36 = vpack.c.bf16 %v7257_v13, %v7255_v20  ;;  %v3801_v55 = vsub.f32 0.0, %v3785_v26  ;;  %v3802_v31 = vsub.f32 0.0, %v3786_v15  ;;  %v3675_v46 = vmul.f32 %v3659_v10, %v3659_v10 }
 0x467   : > { %v7259_v18 = vpop.eup %7258  ;;  %7270 = vpow2.f32 %v3603_v21  ;;  %v5716_v47 = vadd.f32 -2.0, %v8740_v3  ;;  %v3676_v51 = vmul.f32 %v3660_v2, %v3660_v2  ;;  %v3883_v63 = vmul.f32 1.75, %v5715_v24 }
 0x468   : > { %v7261_v45 = vpop.eup %7260  ;;  %5009 = vmatmul.mubr.bf16.gmra.mrb[112].mxu1 %v3619_v36  ;;  %7272 = vpow2.f32 %v3605_v9  ;;  %v3827_v0 = vmul.f32 1.442695, %v3801_v55  ;;  %v3829_v38 = vmul.f32 1.442695, %v3802_v31  ;;  %v3691_v57 = vsub.f32 0.0, %v3675_v46 }
 0x469   : > { %v3843_v11 = vpack.c.bf16 %v7261_v45, %v7259_v18  ;;  %v3884_v60 = vmul.f32 1.75, %v5716_v47  ;;  %v7263_v43 = vpop.eup %7262  ;;  %v3692_v27 = vsub.f32 0.0, %v3676_v51  ;;  %v3899_v42 = vmul.f32 %v3883_v63, %v3883_v63 }
 0x46a   : > { %7274 = vpow2.f32 %v3827_v0  ;;  %v5667_v17 = vadd.f32 -0.2857143, %v8736_v28  ;;  %v7265_v23 = vpop.eup %7264  ;;  %v3719_v19 = vmul.f32 1.442695, %v3691_v57  ;;  %v5668_v56 = vadd.f32 -0.2857143, %v8740_v3 }
 0x46b   : > { %5106 = vmatmul.mubr.bf16.gmra.mrb[128].mxu0 %v3843_v11  ;;  %7276 = vpow2.f32 %v3829_v38  ;;  %v3900_v30 = vmul.f32 %v3884_v60, %v3884_v60  ;;  %v3732_v61 = vpack.c.bf16 %v7265_v23, %v7263_v43  ;;  %v3721_v44 = vmul.f32 1.442695, %v3692_v27 }
 0x46c   : > { %v3915_v22 = vsub.f32 0.0, %v3899_v42  ;;  %v3547_v33 = vmul.f32 1.75, %v5667_v17  ;;  %7278 = vpow2.f32 %v3719_v19  ;;  %v3548_v1 = vmul.f32 1.75, %v5668_v56 }
 0x46d   : > { %v7267_v40 = vpop.eup %7266  ;;  %v3916_v6 = vsub.f32 0.0, %v3900_v30  ;;  %v5699_v62 = vadd.f32 -1.4285715, %v8736_v28  ;;  %5016 = vmatprep.mubr.bf16.mxu1 %v3732_v61  ;;  %7280 = vpow2.f32 %v3721_v44  ;;  %v5700_v49 = vadd.f32 -1.4285715, %v8740_v3 }
 0x46e   : > { %v7269_v7 = vpop.eup %7268  ;;  %v3943_v32 = vmul.f32 1.442695, %v3915_v22  ;;  %v3563_v20 = vmul.f32 %v3547_v33, %v3547_v33  ;;  %v3564_v13 = vmul.f32 %v3548_v1, %v3548_v1  ;;  %v5685_v24 = vadd.f32 -0.85714287, %v8754_v58 }
 0x46f   : > { %v3956_v26 = vpack.c.bf16 %v7269_v7, %v7267_v40  ;;  %v3945_v16 = vmul.f32 1.442695, %v3916_v6  ;;  %v3771_v21 = vmul.f32 1.75, %v5699_v62  ;;  %v3772_v10 = vmul.f32 1.75, %v5700_v49 }
 0x470   : > { %7282 = vpow2.f32 %v3943_v32  ;;  %v3579_v15 = vsub.f32 0.0, %v3563_v20  ;;  %v3580_v28 = vsub.f32 0.0, %v3564_v13  ;;  %v5686_v55 = vadd.f32 -0.85714287, %v8770_v48 }
 0x471   : > { %v7271_v36 = vpop.eup %7270  ;;  %5113 = vmatprep.mubr.bf16.mxu0 %v3956_v26  ;;  %7284 = vpow2.f32 %v3945_v16  ;;  %v3787_v9 = vmul.f32 %v3771_v21, %v3771_v21  ;;  %v3788_v31 = vmul.f32 %v3772_v10, %v3772_v10  ;;  %v3661_v3 = vmul.f32 1.75, %v5685_v24 }
 0x472   : > { %v7273_v2 = vpop.eup %7272  ;;  %v3607_v18 = vmul.f32 1.442695, %v3579_v15  ;;  %v5717_v46 = vadd.f32 -2.0, %v8754_v58  ;;  %v3609_v45 = vmul.f32 1.442695, %v3580_v28  ;;  %v3662_v51 = vmul.f32 1.75, %v5686_v55 }
 0x473   : > { %v3620_v47 = vpack.c.bf16 %v7273_v2, %v7271_v36  ;;  %v3803_v0 = vsub.f32 0.0, %v3787_v9  ;;  %v3804_v11 = vsub.f32 0.0, %v3788_v31  ;;  %v3677_v38 = vmul.f32 %v3661_v3, %v3661_v3 }
 0x474   : > { %v7275_v63 = vpop.eup %7274  ;;  %7286 = vpow2.f32 %v3607_v18  ;;  %v5718_v57 = vadd.f32 -2.0, %v8770_v48  ;;  %v3678_v27 = vmul.f32 %v3662_v51, %v3662_v51  ;;  %v3885_v42 = vmul.f32 1.75, %v5717_v46 }
 0x475   : > { %v7277_v60 = vpop.eup %7276  ;;  %5017 = vmatmul.mubr.bf16.gmra.mrb[116].mxu1 %v3620_v47  ;;  %7288 = vpow2.f32 %v3609_v45  ;;  %v3831_v43 = vmul.f32 1.442695, %v3803_v0  ;;  %v3833_v23 = vmul.f32 1.442695, %v3804_v11  ;;  %v3693_v19 = vsub.f32 0.0, %v3677_v38 }
 0x476   : > { %v3844_v17 = vpack.c.bf16 %v7277_v60, %v7275_v63  ;;  %v3886_v30 = vmul.f32 1.75, %v5718_v57  ;;  %v7279_v56 = vpop.eup %7278  ;;  %v3694_v61 = vsub.f32 0.0, %v3678_v27  ;;  %v3901_v44 = vmul.f32 %v3885_v42, %v3885_v42 }
 0x477   : > { %7290 = vpow2.f32 %v3831_v43  ;;  %v5669_v22 = vadd.f32 -0.2857143, %v8754_v58  ;;  %v7281_v33 = vpop.eup %7280  ;;  %v3723_v40 = vmul.f32 1.442695, %v3693_v19  ;;  %v5670_v1 = vadd.f32 -0.2857143, %v8770_v48 }
 0x478   : > { %5114 = vmatmul.mubr.bf16.gmra.mrb[132].mxu0 %v3844_v17  ;;  %7292 = vpow2.f32 %v3833_v23  ;;  %v3902_v6 = vmul.f32 %v3886_v30, %v3886_v30  ;;  %v3733_v62 = vpack.c.bf16 %v7281_v33, %v7279_v56  ;;  %v3725_v7 = vmul.f32 1.442695, %v3694_v61 }
 0x479   : > { %v3917_v32 = vsub.f32 0.0, %v3901_v44  ;;  %v3549_v20 = vmul.f32 1.75, %v5669_v22  ;;  %7294 = vpow2.f32 %v3723_v40  ;;  %v3550_v16 = vmul.f32 1.75, %v5670_v1 }
 0x47a   : > { %v7283_v49 = vpop.eup %7282  ;;  %v3918_v26 = vsub.f32 0.0, %v3902_v6  ;;  %v5701_v13 = vadd.f32 -1.4285715, %v8754_v58  ;;  %5024 = vmatprep.mubr.bf16.mxu1 %v3733_v62  ;;  %7296 = vpow2.f32 %v3725_v7  ;;  %v5702_v24 = vadd.f32 -1.4285715, %v8770_v48 }
 0x47b   : > { %v7285_v21 = vpop.eup %7284  ;;  %v3947_v15 = vmul.f32 1.442695, %v3917_v32  ;;  %v3565_v10 = vmul.f32 %v3549_v20, %v3549_v20  ;;  %v3566_v9 = vmul.f32 %v3550_v16, %v3550_v16  ;;  %v5732_v47 = vmul.f32 -1.442695, %v8461_v39 }
 0x47c   : > { %v3957_v36 = vpack.c.bf16 %v7285_v21, %v7283_v49  ;;  %v3949_v28 = vmul.f32 1.442695, %v3918_v26  ;;  %v3773_v55 = vmul.f32 1.75, %v5701_v13  ;;  %v3774_v18 = vmul.f32 1.75, %v5702_v24  ;;  %v9141_v24 = vld [vmem:[#allocation14_spill] sm:$0xff] }
 0x47d   : > { %7298 = vpow2.f32 %v3947_v15  ;;  %v3581_v2 = vsub.f32 0.0, %v3565_v10  ;;  %v3582_v3 = vsub.f32 0.0, %v3566_v9  ;;  %v5731_v60 = vmul.f32 -1.442695, %v8456_v54  ;;  %v9139_v15 = vld [vmem:[#allocation24_spill] sm:$0xff] }
 0x47e   : > { %v7287_v31 = vpop.eup %7286  ;;  %5121 = vmatprep.mubr.bf16.mxu0 %v3957_v36  ;;  %7300 = vpow2.f32 %v3949_v28  ;;  %v3789_v46 = vmul.f32 %v3773_v55, %v3773_v55  ;;  %v3790_v0 = vmul.f32 %v3774_v18, %v3774_v18  ;;  %v4022_v23 = vadd.f32 1.0, %v8549_v52  ;;  %v9142_v36 = vld [vmem:[#allocation23_spill] sm:$0xff]  ;;  %v9143_v18 = vld [vmem:[#allocation16_spill] sm:$0xff] }
 0x47f   : > { %v7289_v58 = vpop.eup %7288  ;;  %7302 = vpow2.f32 %v8538_v59  ;;  %v3611_v45 = vmul.f32 1.442695, %v3581_v2  ;;  %v3613_v51 = vmul.f32 1.442695, %v3582_v3  ;;  %v4019_v59 = vadd.f32 1.0, %v8535_v35 }
 0x480   : > { %7304 = vrcp.f32 %v8551_v4  ;;  %v3621_v48 = vpack.c.bf16 %v7289_v58, %v7287_v31  ;;  %v3805_v63 = vsub.f32 0.0, %v3789_v46  ;;  %v3806_v38 = vsub.f32 0.0, %v3790_v0  ;;  %v8898_v0 = vld [vmem:[%s9089_s8] ss:$0 sm:$0xff] }
 0x481   : > { %v7291_v11 = vpop.eup %7290  ;;  %7306 = vpow2.f32 %v3611_v45  ;;  %v5734_v56 = vmul.f32 -1.442695, %v8458_v34  ;;  %v5733_v44 = vmul.f32 -1.442695, %v8454_v50  ;;  %v4024_v22 = vadd.f32 1.0, %v8604_v14 }
 0x482   : > { %v7293_v57 = vpop.eup %7292  ;;  %5025 = vmatmul.mubr.bf16.gmra.mrb[120].mxu1 %v3621_v48  ;;  %7308 = vpow2.f32 %v3613_v51  ;;  %v3835_v43 = vmul.f32 1.442695, %v3805_v63  ;;  %v3837_v42 = vmul.f32 1.442695, %v3806_v38  ;;  %v4021_v6 = vadd.f32 1.0, %v8521_v12 }
 0x483   : > { %7310 = vpow2.f32 %v5732_v47  ;;  %v3845_v27 = vpack.c.bf16 %v7293_v57, %v7291_v11  ;;  %v7295_v17 = vpop.eup %7294  ;;  %v4064_v52 = vmul.f32 %v8578_v53, %v8411_v8  ;;  %v4023_v62 = vadd.f32 1.0, %v8601_v29 }
 0x484   : > { %7312 = vpow2.f32 %v3835_v43  ;;  %v7297_v4 = vpop.eup %7296  ;;  %v4063_v32 = vmul.f32 %v8562_v5, %v8405_v37  ;;  %v4066_v13 = vmul.f32 %v8572_v41, %v8408_v25  ;;  %v4025_v37 = vadd.f32 1.0, %v9139_v15  ;;  %v9140_v5 = vld [vmem:[#allocation18_spill] sm:$0xff] }
 0x485   : > { %5122 = vmatmul.mubr.bf16.gmra.mrb[136].mxu0 %v3845_v27  ;;  %7314 = vpow2.f32 %v3837_v42  ;;  %v3734_v19 = vpack.c.bf16 %v7297_v4, %v7295_v17  ;;  %v4065_v28 = vmul.f32 %v9142_v36, %v9141_v24  ;;  %v9145_v17 = vld [vmem:[#allocation22_spill] sm:$0xff] }
 0x486   : > { %7316 = vpow2.f32 %v5731_v60  ;;  %v4079_v12 = vpack.c.bf16 %v4064_v52, %v4063_v32  ;;  %v9144_v60 = vld [vmem:[#allocation17_spill] sm:$0xff] }
 0x487   : > { %v7299_v30 = vpop.eup %7298  ;;  %7318 = vrcp.f32 %v4019_v59  ;;  %5032 = vmatprep.mubr.bf16.mxu1 %v3734_v19  ;;  %v4080_v58 = vpack.c.bf16 %v4066_v13, %v4065_v28  ;;  %v9146_v19 = vld [vmem:[#allocation15_spill] sm:$0xff] }
 0x488   : > { %v7301_v61 = vpop.eup %7300  ;;  %7320 = vrcp.f32 %v4022_v23 }
 0x489   : > { %v7303_v35 = vpop.eup %7302  ;;  %v3958_v33 = vpack.c.bf16 %v7301_v61, %v7299_v30  ;;  %7322 = vpow2.f32 %v5734_v56 }
 0x48a   : > { %v7305_v40 = vpop.eup %7304  ;;  %7324 = vpow2.f32 %v5733_v44  ;;  %v4026_v53 = vadd.f32 1.0, %v7303_v35  ;;  %v9147_v35 = vld [vmem:[#allocation20_spill] sm:$0xff] }
 0x48b   : > { %v7307_v1 = vpop.eup %7306  ;;  %5129 = vmatprep.mubr.bf16.mxu0 %v3958_v33  ;;  %7326 = vrcp.f32 %v4024_v22  ;;  %v4068_v10 = vmul.f32 %v7305_v40, %v9140_v5 }
 0x48c   : > { %v7309_v7 = vpop.eup %7308  ;;  %7328 = vrcp.f32 %v4021_v6 }
 0x48d   : > { %v7311_v20 = vpop.eup %7310  ;;  %v3622_v14 = vpack.c.bf16 %v7309_v7, %v7307_v1  ;;  %7330 = vrcp.f32 %v4023_v62 }
 0x48e   : > { %v7313_v49 = vpop.eup %7312  ;;  %v4028_v21 = vadd.f32 1.0, %v7311_v20  ;;  %7332 = vrcp.f32 %v4026_v53 }
 0x48f   : > { %v7315_v26 = vpop.eup %7314  ;;  %5033 = vmatmul.mubr.bf16.gmra.mrb[124].mxu1 %v3622_v14 }
 0x490   : > { %v7317_v8 = vpop.eup %7316  ;;  %v3846_v16 = vpack.c.bf16 %v7315_v26, %v7313_v49  ;;  %6407 = vmatprep.mubr.bf16.mxu1 %v4079_v12  ;;  %7334 = vrcp.f32 %v4028_v21  ;;  %v9148_v49 = vld [vmem:[#allocation21_spill] sm:$0xff] }
 0x491   : > { %v7319_v29 = vpop.eup %7318  ;;  %v4027_v9 = vadd.f32 1.0, %v7317_v8  ;;  %v6103_v55 = vpop.f32.mrb[64].mxu1  ;;  %7336 = vrcp.f32 %v4025_v37  ;;  %v9149_v8 = vld [vmem:[#allocation19_spill] sm:$0xff] }
 0x492   : > { %5130 = vmatmul.mubr.bf16.gmra.mrb[140].mxu0 %v3846_v16  ;;  %v7321_v2 = vpop.eup %7320  ;;  %v4067_v31 = vmul.f32 %v7319_v29, %v9143_v18  ;;  %v6104_v3 = vpop.f32.mrb[65].mxu1 }
 0x493   : > { %v7323_v46 = vpop.eup %7322  ;;  %v6105_v25 = vadd.f32 %v6104_v3, %v6103_v55  ;;  %v6106_v41 = vpop.f32.mrb[66].mxu1  ;;  %7338 = vrcp.f32 %v4027_v9  ;;  %v4070_v43 = vmul.f32 %v7321_v2, %v9144_v60 }
 0x494   : > { %v7325_v47 = vpop.eup %7324  ;;  %v4081_v45 = vpack.c.bf16 %v4068_v10, %v4067_v31  ;;  %v6107_v48 = vpop.f32.mrb[67].mxu1  ;;  %v4030_v38 = vadd.f32 1.0, %v7323_v46 }
 0x495   : > { %v7327_v51 = vpop.eup %7326  ;;  %v6108_v63 = vadd.f32 %v6107_v48, %v6106_v41  ;;  %v4785_v27 = vadd.f32 %v6105_v25, %v8898_v0  ;;  %v4029_v42 = vadd.f32 1.0, %v7325_v47 }
 0x496   : > { %v7329_v11 = vpop.eup %7328  ;;  %v4072_v4 = vmul.f32 %v7327_v51, %v9145_v17  ;;  %7340 = vrcp.f32 %v4030_v38 }
 0x497   : > { %6408 = vmatmul.mubr.bf16.vlgmr.msra.gmra.mrb[128].mxu1 %v4080_v58  ;;  %v7331_v57 = vpop.eup %7330  ;;  %v4069_v30 = vmul.f32 %v7329_v11, %v9146_v19  ;;  %v4788_v44 = vadd.f32 %v6108_v63, %v8898_v0  ;;  %7342 = vrcp.f32 %v4029_v42 }
 0x498   : > { %6411 = vmatprep.mubr.bf16.mxu1 %v4081_v45  ;;  %v6167_v59 = vpop.f32.mrb[80].mxu0  ;;  %v4071_v22 = vmul.f32 %v7331_v57, %v9147_v35  ;;  %v7333_v1 = vpop.eup %7332 }
 0x499   : > { %v6168_v23 = vpop.f32.mrb[81].mxu0  ;;  %v4082_v40 = vpack.c.bf16 %v4070_v43, %v4069_v30  ;;  %v4074_v12 = vmul.f32 %v7333_v1, %v9148_v49 }
 0x49a   : > { %v6169_v56 = vadd.f32 %v6168_v23, %v6167_v59  ;;  %v6170_v61 = vpop.f32.mrb[82].mxu0  ;;  %v4083_v62 = vpack.c.bf16 %v4072_v4, %v4071_v22  ;;  %v7335_v7 = vpop.eup %7334 }
 0x49b   : > { %v6171_v33 = vpop.f32.mrb[83].mxu0  ;;  %v7337_v20 = vpop.eup %7336  ;;  %v4076_v26 = vmul.f32 %v7335_v7, %v8461_v39 }
 0x49c   : > { %v8906_v6 = vadd.f32 %v6169_v56, %v4785_v27  ;;  %v6172_v52 = vadd.f32 %v6171_v33, %v6170_v61  ;;  %v4073_v53 = vmul.f32 %v7337_v20, %v9149_v8 }
 0x49d   : > { %v7339_v14 = vpop.eup %7338 }
 0x49e   : > { %v8908_v32 = vadd.f32 %v6172_v52, %v4788_v44  ;;  %v4075_v16 = vmul.f32 %v7339_v14, %v8456_v54  ;;  %v4084_v29 = vpack.c.bf16 %v4074_v12, %v4073_v53 }
 0x49f   : > { %6412 = vmatmul.mubr.bf16.gmra.mrb[132].mxu1 %v4082_v40 }
 0x4a0   : > { %6415 = vmatprep.mubr.bf16.mxu1 %v4083_v62  ;;  %v7341_v13 = vpop.eup %7340  ;;  %v4085_v21 = vpack.c.bf16 %v4076_v26, %v4075_v16 }
 0x4a1   : > { %v7343_v15 = vpop.eup %7342  ;;  %v4078_v5 = vmul.f32 %v7341_v13, %v8458_v34 }
 0x4a2   : > { %v4077_v28 = vmul.f32 %v7343_v15, %v8454_v50 }
 0x4a4   : > { %v4086_v55 = vpack.c.bf16 %v4078_v5, %v4077_v28 }
 0x4a7   : > { %6416 = vmatmul.mubr.bf16.gmra.mrb[136].mxu1 %v4084_v29 }
 0x4a8   : > { %6419 = vmatprep.mubr.bf16.mxu1 %v4085_v21  ;;  %v6109_v37 = vpop.f32.mrb[68].mxu1 }
 0x4a9   : > { %v6110_v10 = vpop.f32.mrb[69].mxu1 }
 0x4aa   : > { %v6111_v24 = vadd.f32 %v6110_v10, %v6109_v37  ;;  %v6112_v36 = vpop.f32.mrb[70].mxu1 }
 0x4ab   : > { %v6113_v9 = vpop.f32.mrb[71].mxu1 }
 0x4ac   : > { %v6114_v39 = vadd.f32 %v6113_v9, %v6112_v36  ;;  %v4793_v54 = vadd.f32 %v6111_v24, %v8898_v0 }
 0x4ad   : > { %v6173_v2 = vpop.f32.mrb[84].mxu0 }
 0x4ae   : > { %v6174_v18 = vpop.f32.mrb[85].mxu0  ;;  %v4796_v46 = vadd.f32 %v6114_v39, %v8898_v0 }
 0x4af   : > { %6420 = vmatmul.mubr.bf16.gmra.mrb[140].mxu1 %v4086_v55  ;;  %v6175_v31 = vadd.f32 %v6174_v18, %v6173_v2  ;;  %v6176_v3 = vpop.f32.mrb[86].mxu0 }
 0x4b0   : > { %v6177_v58 = vpop.f32.mrb[87].mxu0 }
 0x4b1   : > { %v8918_v25 = vadd.f32 %v6175_v31, %v4793_v54  ;;  %v6178_v34 = vadd.f32 %v6177_v58, %v6176_v3 }
 0x4b3   : > { %v8920_v41 = vadd.f32 %v6178_v34, %v4796_v46 }
 0x4b7   : > { %v6115_v47 = vpop.f32.mrb[72].mxu1 }
 0x4b8   : > { %v6116_v50 = vpop.f32.mrb[73].mxu1 }
 0x4b9   : > { %v6117_v45 = vadd.f32 %v6116_v50, %v6115_v47  ;;  %v6118_v48 = vpop.f32.mrb[74].mxu1 }
 0x4ba   : > { %v6179_v51 = vpop.f32.mrb[88].mxu0  ;;  %v6119_v63 = vpop.f32.mrb[75].mxu1 }
 0x4bb   : > { %v4801_v11 = vadd.f32 %v6117_v45, %v8898_v0  ;;  %v6180_v38 = vpop.f32.mrb[89].mxu0  ;;  %v6120_v57 = vadd.f32 %v6119_v63, %v6118_v48 }
 0x4bc   : > { %v6181_v60 = vadd.f32 %v6180_v38, %v6179_v51  ;;  %v6182_v43 = vpop.f32.mrb[90].mxu0 }
 0x4bd   : > { %v4804_v59 = vadd.f32 %v6120_v57, %v8898_v0  ;;  %v6183_v27 = vpop.f32.mrb[91].mxu0 }
 0x4be   : > { %v8924_v42 = vadd.f32 %v6181_v60, %v4801_v11  ;;  %v6184_v17 = vadd.f32 %v6183_v27, %v6182_v43 }
 0x4c0   : > { %v8926_v4 = vadd.f32 %v6184_v17, %v4804_v59 }
 0x4c5   : > { %v6121_v23 = vpop.f32.mrb[76].mxu1 }
 0x4c6   : > { %v6122_v19 = vpop.f32.mrb[77].mxu1 }
 0x4c7   : > { %v6123_v30 = vadd.f32 %v6122_v19, %v6121_v23  ;;  %v6124_v56 = vpop.f32.mrb[78].mxu1 }
 0x4c8   : > { %v6125_v44 = vpop.f32.mrb[79].mxu1 }
 0x4c9   : > { %v6185_v61 = vpop.f32.mrb[92].mxu0  ;;  %v4809_v35 = vadd.f32 %v6123_v30, %v8898_v0  ;;  %v6126_v33 = vadd.f32 %v6125_v44, %v6124_v56 }
 0x4ca   : > { %v6186_v22 = vpop.f32.mrb[93].mxu0 }
 0x4cb   : > { %v6187_v40 = vadd.f32 %v6186_v22, %v6185_v61  ;;  %v6188_v52 = vpop.f32.mrb[94].mxu0  ;;  %v4812_v1 = vadd.f32 %v6126_v33, %v8898_v0 }
 0x4cc   : > { %v6189_v62 = vpop.f32.mrb[95].mxu0 }
 0x4cd   : > { %v8930_v7 = vadd.f32 %v6187_v40, %v4809_v35  ;;  %v6190_v20 = vadd.f32 %v6189_v62, %v6188_v52 }
 0x4cf   : > { %v8932_v14 = vadd.f32 %v6190_v20, %v4812_v1 }
 0x4d2   : > { %v6127_v49 = vpop.f32.mrb[80].mxu1 }
 0x4d3   : > { %v6128_v12 = vpop.f32.mrb[81].mxu1 }
 0x4d4   : > { %v6129_v26 = vadd.f32 %v6128_v12, %v6127_v49  ;;  %v6130_v8 = vpop.f32.mrb[82].mxu1 }
 0x4d5   : > { %v6131_v16 = vpop.f32.mrb[83].mxu1 }
 0x4d6   : > { %v6191_v53 = vpop.f32.mrb[96].mxu0  ;;  %v4817_v29 = vadd.f32 %v6129_v26, %v8898_v0  ;;  %v6132_v21 = vadd.f32 %v6131_v16, %v6130_v8 }
 0x4d7   : > { %v6192_v13 = vpop.f32.mrb[97].mxu0 }
 0x4d8   : > { %v6193_v15 = vadd.f32 %v6192_v13, %v6191_v53  ;;  %v6194_v37 = vpop.f32.mrb[98].mxu0  ;;  %v4820_v5 = vadd.f32 %v6132_v21, %v8898_v0 }
 0x4d9   : > { %v6195_v10 = vpop.f32.mrb[99].mxu0 }
 0x4da   : > { %v8936_v24 = vadd.f32 %v6193_v15, %v4817_v29  ;;  %v6196_v36 = vadd.f32 %v6195_v10, %v6194_v37 }
 0x4dc   : > { %v8938_v28 = vadd.f32 %v6196_v36, %v4820_v5 }
 0x4e0   : > { %v6133_v9 = vpop.f32.mrb[84].mxu1 }
 0x4e1   : > { %v6134_v39 = vpop.f32.mrb[85].mxu1 }
 0x4e2   : > { %v6135_v55 = vadd.f32 %v6134_v39, %v6133_v9  ;;  %v6136_v2 = vpop.f32.mrb[86].mxu1 }
 0x4e3   : > { %v6197_v54 = vpop.f32.mrb[100].mxu0  ;;  %v6137_v18 = vpop.f32.mrb[87].mxu1 }
 0x4e4   : > { %v4825_v31 = vadd.f32 %v6135_v55, %v8898_v0  ;;  %v6198_v3 = vpop.f32.mrb[101].mxu0  ;;  %v6138_v46 = vadd.f32 %v6137_v18, %v6136_v2 }
 0x4e5   : > { %v6199_v58 = vadd.f32 %v6198_v3, %v6197_v54  ;;  %v6200_v34 = vpop.f32.mrb[102].mxu0 }
 0x4e6   : > { %v4828_v47 = vadd.f32 %v6138_v46, %v8898_v0  ;;  %v6201_v50 = vpop.f32.mrb[103].mxu0 }
 0x4e7   : > { %v8942_v45 = vadd.f32 %v6199_v58, %v4825_v31  ;;  %v6202_v48 = vadd.f32 %v6201_v50, %v6200_v34 }
 0x4e9   : > { %v8944_v51 = vadd.f32 %v6202_v48, %v4828_v47 }
 0x4ed   : > { %v6139_v63 = vpop.f32.mrb[88].mxu1 }
 0x4ee   : > { %v6140_v11 = vpop.f32.mrb[89].mxu1 }
 0x4ef   : > { %v6141_v38 = vadd.f32 %v6140_v11, %v6139_v63  ;;  %v6142_v57 = vpop.f32.mrb[90].mxu1 }
 0x4f0   : > { %v6203_v60 = vpop.f32.mrb[104].mxu0  ;;  %v6143_v43 = vpop.f32.mrb[91].mxu1 }
 0x4f1   : > { %v4833_v59 = vadd.f32 %v6141_v38, %v8898_v0  ;;  %v6204_v27 = vpop.f32.mrb[105].mxu0  ;;  %v6144_v17 = vadd.f32 %v6143_v43, %v6142_v57 }
 0x4f2   : > { %v6205_v23 = vadd.f32 %v6204_v27, %v6203_v60  ;;  %v6206_v19 = vpop.f32.mrb[106].mxu0 }
 0x4f3   : > { %v4836_v30 = vadd.f32 %v6144_v17, %v8898_v0  ;;  %v6207_v56 = vpop.f32.mrb[107].mxu0 }
 0x4f4   : > { %v8948_v61 = vadd.f32 %v6205_v23, %v4833_v59  ;;  %v6208_v44 = vadd.f32 %v6207_v56, %v6206_v19 }
 0x4f6   : > { %v8950_v35 = vadd.f32 %v6208_v44, %v4836_v30 }
 0x4fa   : > { %v6145_v22 = vpop.f32.mrb[92].mxu1 }
 0x4fb   : > { %v6146_v33 = vpop.f32.mrb[93].mxu1 }
 0x4fc   : > { %v6147_v40 = vadd.f32 %v6146_v33, %v6145_v22  ;;  %v6148_v52 = vpop.f32.mrb[94].mxu1 }
 0x4fd   : > { %v6209_v1 = vpop.f32.mrb[108].mxu0  ;;  %v6149_v62 = vpop.f32.mrb[95].mxu1 }
 0x4fe   : > { %v4841_v20 = vadd.f32 %v6147_v40, %v8898_v0  ;;  %v6210_v49 = vpop.f32.mrb[109].mxu0  ;;  %v6150_v12 = vadd.f32 %v6149_v62, %v6148_v52 }
 0x4ff   : > { %v6211_v26 = vadd.f32 %v6210_v49, %v6209_v1  ;;  %v6212_v8 = vpop.f32.mrb[110].mxu0 }
 0x500   : > { %v4844_v53 = vadd.f32 %v6150_v12, %v8898_v0  ;;  %v6213_v16 = vpop.f32.mrb[111].mxu0 }
 0x501   : > { %v8954_v29 = vadd.f32 %v6211_v26, %v4841_v20  ;;  %v6214_v13 = vadd.f32 %v6213_v16, %v6212_v8 }
 0x503   : > { %v8956_v21 = vadd.f32 %v6214_v13, %v4844_v53 }
 0x507   : > { %v6231_v15 = vpop.f32.mrb[96].mxu1 }
 0x508   : > { %v6232_v37 = vpop.f32.mrb[97].mxu1 }
 0x509   : > { %v6233_v5 = vadd.f32 %v6232_v37, %v6231_v15  ;;  %v6234_v10 = vpop.f32.mrb[98].mxu1 }
 0x50a   : > { %v6295_v36 = vpop.f32.mrb[112].mxu0  ;;  %v6235_v9 = vpop.f32.mrb[99].mxu1 }
 0x50b   : > { %v4979_v39 = vadd.f32 %v6233_v5, %v8906_v6  ;;  %v6296_v55 = vpop.f32.mrb[113].mxu0  ;;  %v6236_v2 = vadd.f32 %v6235_v9, %v6234_v10 }
 0x50c   : > { %v6297_v54 = vadd.f32 %v6296_v55, %v6295_v36  ;;  %v6298_v18 = vpop.f32.mrb[114].mxu0 }
 0x50d   : > { %v4982_v0 = vadd.f32 %v6236_v2, %v8908_v32  ;;  %v6299_v31 = vpop.f32.mrb[115].mxu0 }
 0x50e   : > { %v6300_v3 = vadd.f32 %v6299_v31, %v6298_v18  ;;  %v8960_v46 = vadd.f32 %v6297_v54, %v4979_v39 }
 0x510   : > { %v8962_v58 = vadd.f32 %v6300_v3, %v4982_v0 }
 0x514   : > { %v6237_v34 = vpop.f32.mrb[100].mxu1 }
 0x515   : > { %v6238_v47 = vpop.f32.mrb[101].mxu1 }
 0x516   : > { %v6239_v50 = vadd.f32 %v6238_v47, %v6237_v34  ;;  %v6240_v48 = vpop.f32.mrb[102].mxu1 }
 0x517   : > { %v6301_v63 = vpop.f32.mrb[116].mxu0  ;;  %v6241_v11 = vpop.f32.mrb[103].mxu1 }
 0x518   : > { %v4987_v6 = vadd.f32 %v6239_v50, %v8918_v25  ;;  %v6302_v38 = vpop.f32.mrb[117].mxu0  ;;  %v6242_v57 = vadd.f32 %v6241_v11, %v6240_v48 }
 0x519   : > { %v6303_v60 = vadd.f32 %v6302_v38, %v6301_v63  ;;  %v6304_v43 = vpop.f32.mrb[118].mxu0 }
 0x51a   : > { %v4990_v32 = vadd.f32 %v6242_v57, %v8920_v41  ;;  %v6305_v59 = vpop.f32.mrb[119].mxu0 }
 0x51b   : > { %v6306_v27 = vadd.f32 %v6305_v59, %v6304_v43  ;;  %v8966_v17 = vadd.f32 %v6303_v60, %v4987_v6 }
 0x51d   : > { %v8968_v23 = vadd.f32 %v6306_v27, %v4990_v32 }
 0x521   : > { %v6243_v19 = vpop.f32.mrb[104].mxu1 }
 0x522   : > { %v6244_v30 = vpop.f32.mrb[105].mxu1 }
 0x523   : > { %v6245_v56 = vadd.f32 %v6244_v30, %v6243_v19  ;;  %v6246_v44 = vpop.f32.mrb[106].mxu1 }
 0x524   : > { %v6307_v22 = vpop.f32.mrb[120].mxu0  ;;  %v6247_v33 = vpop.f32.mrb[107].mxu1 }
 0x525   : > { %v4995_v25 = vadd.f32 %v6245_v56, %v8924_v42  ;;  %v6308_v40 = vpop.f32.mrb[121].mxu0  ;;  %v6248_v52 = vadd.f32 %v6247_v33, %v6246_v44 }
 0x526   : > { %v6309_v1 = vadd.f32 %v6308_v40, %v6307_v22  ;;  %v6310_v62 = vpop.f32.mrb[122].mxu0 }
 0x527   : > { %v4998_v41 = vadd.f32 %v6248_v52, %v8926_v4  ;;  %v6311_v20 = vpop.f32.mrb[123].mxu0 }
 0x528   : > { %v6312_v49 = vadd.f32 %v6311_v20, %v6310_v62  ;;  %v8972_v12 = vadd.f32 %v6309_v1, %v4995_v25 }
 0x52a   : > { %v8974_v26 = vadd.f32 %v6312_v49, %v4998_v41 }
 0x52e   : > { %v6249_v8 = vpop.f32.mrb[108].mxu1 }
 0x52f   : > { %v6250_v53 = vpop.f32.mrb[109].mxu1 }
 0x530   : > { %v6251_v16 = vadd.f32 %v6250_v53, %v6249_v8  ;;  %v6252_v13 = vpop.f32.mrb[110].mxu1 }
 0x531   : > { %v6313_v15 = vpop.f32.mrb[124].mxu0  ;;  %v6253_v37 = vpop.f32.mrb[111].mxu1 }
 0x532   : > { %v5003_v42 = vadd.f32 %v6251_v16, %v8930_v7  ;;  %v6314_v5 = vpop.f32.mrb[125].mxu0  ;;  %v6254_v10 = vadd.f32 %v6253_v37, %v6252_v13 }
 0x533   : > { %v6315_v36 = vadd.f32 %v6314_v5, %v6313_v15  ;;  %v6316_v9 = vpop.f32.mrb[126].mxu0 }
 0x534   : > { %v5006_v4 = vadd.f32 %v6254_v10, %v8932_v14  ;;  %v6317_v39 = vpop.f32.mrb[127].mxu0 }
 0x535   : > { %v6318_v55 = vadd.f32 %v6317_v39, %v6316_v9  ;;  %v8978_v2 = vadd.f32 %v6315_v36, %v5003_v42 }
 0x537   : > { %v8980_v54 = vadd.f32 %v6318_v55, %v5006_v4 }
 0x53b   : > { %v6255_v18 = vpop.f32.mrb[112].mxu1 }
 0x53c   : > { %v6256_v0 = vpop.f32.mrb[113].mxu1 }
 0x53d   : > { %v6257_v31 = vadd.f32 %v6256_v0, %v6255_v18  ;;  %v6258_v3 = vpop.f32.mrb[114].mxu1 }
 0x53e   : > { %v6319_v34 = vpop.f32.mrb[128].mxu0  ;;  %v6259_v47 = vpop.f32.mrb[115].mxu1 }
 0x53f   : > { %v5011_v7 = vadd.f32 %v6257_v31, %v8936_v24  ;;  %v6320_v50 = vpop.f32.mrb[129].mxu0  ;;  %v6260_v48 = vadd.f32 %v6259_v47, %v6258_v3 }
 0x540   : > { %v6321_v63 = vadd.f32 %v6320_v50, %v6319_v34  ;;  %v6322_v11 = vpop.f32.mrb[130].mxu0 }
 0x541   : > { %v5014_v14 = vadd.f32 %v6260_v48, %v8938_v28  ;;  %v6323_v6 = vpop.f32.mrb[131].mxu0 }
 0x542   : > { %v6324_v38 = vadd.f32 %v6323_v6, %v6322_v11  ;;  %v8984_v57 = vadd.f32 %v6321_v63, %v5011_v7 }
 0x544   : > { %v8986_v60 = vadd.f32 %v6324_v38, %v5014_v14 }
 0x548   : > { %v6261_v43 = vpop.f32.mrb[116].mxu1 }
 0x549   : > { %v6262_v32 = vpop.f32.mrb[117].mxu1 }
 0x54a   : > { %v6263_v59 = vadd.f32 %v6262_v32, %v6261_v43  ;;  %v6264_v27 = vpop.f32.mrb[118].mxu1 }
 0x54b   : > { %v6325_v19 = vpop.f32.mrb[132].mxu0  ;;  %v6265_v30 = vpop.f32.mrb[119].mxu1 }
 0x54c   : > { %v5019_v24 = vadd.f32 %v6263_v59, %v8942_v45  ;;  %v6326_v56 = vpop.f32.mrb[133].mxu0  ;;  %v6266_v44 = vadd.f32 %v6265_v30, %v6264_v27 }
 0x54d   : > { %v6327_v22 = vadd.f32 %v6326_v56, %v6325_v19  ;;  %v6328_v33 = vpop.f32.mrb[134].mxu0 }
 0x54e   : > { %v5022_v28 = vadd.f32 %v6266_v44, %v8944_v51  ;;  %v6329_v25 = vpop.f32.mrb[135].mxu0 }
 0x54f   : > { %v6330_v40 = vadd.f32 %v6329_v25, %v6328_v33  ;;  %v5116_v52 = vadd.f32 %v6327_v22, %v5019_v24 }
 0x551   : > { %v8990_v1 = vadd.f32 %v6330_v40, %v5022_v28 }
 0x555   : > { %v6267_v62 = vpop.f32.mrb[120].mxu1 }
 0x556   : > { %v6268_v41 = vpop.f32.mrb[121].mxu1 }
 0x557   : > { %v6269_v20 = vadd.f32 %v6268_v41, %v6267_v62  ;;  %v6270_v49 = vpop.f32.mrb[122].mxu1 }
 0x558   : > { %v6331_v8 = vpop.f32.mrb[136].mxu0  ;;  %v6271_v53 = vpop.f32.mrb[123].mxu1 }
 0x559   : > { %v5027_v16 = vadd.f32 %v6269_v20, %v8948_v61  ;;  %v6332_v45 = vpop.f32.mrb[137].mxu0  ;;  %v6272_v13 = vadd.f32 %v6271_v53, %v6270_v49 }
 0x55a   : > { %v6333_v15 = vadd.f32 %v6332_v45, %v6331_v8  ;;  %v6334_v37 = vpop.f32.mrb[138].mxu0 }
 0x55b   : > { %v5030_v42 = vadd.f32 %v6272_v13, %v8950_v35  ;;  %v6335_v51 = vpop.f32.mrb[139].mxu0 }
 0x55c   : > { %v6336_v5 = vadd.f32 %v6335_v51, %v6334_v37  ;;  %v5124_v10 = vadd.f32 %v6333_v15, %v5027_v16 }
 0x55e   : > { %v8994_v36 = vadd.f32 %v6336_v5, %v5030_v42 }
 0x562   : > { %v6273_v9 = vpop.f32.mrb[124].mxu1 }
 0x563   : > { %v6274_v4 = vpop.f32.mrb[125].mxu1 }
 0x564   : > { %v6275_v39 = vadd.f32 %v6274_v4, %v6273_v9  ;;  %v6276_v55 = vpop.f32.mrb[126].mxu1 }
 0x565   : > { %v6337_v18 = vpop.f32.mrb[140].mxu0  ;;  %v6277_v0 = vpop.f32.mrb[127].mxu1 }
 0x566   : > { %v5035_v61 = vadd.f32 %v6275_v39, %v8954_v29  ;;  %v6338_v31 = vpop.f32.mrb[141].mxu0  ;;  %v6278_v3 = vadd.f32 %v6277_v0, %v6276_v55 }
 0x567   : > { %v6339_v34 = vadd.f32 %v6338_v31, %v6337_v18  ;;  %v6340_v47 = vpop.f32.mrb[142].mxu0 }
 0x568   : > { %v5038_v35 = vadd.f32 %v6278_v3, %v8956_v21  ;;  %v6341_v7 = vpop.f32.mrb[143].mxu0 }
 0x569   : > { %v6342_v50 = vadd.f32 %v6341_v7, %v6340_v47  ;;  %v5132_v48 = vadd.f32 %v6339_v34, %v5035_v61 }
 0x56a   : > { %v6409_v63 = vpop.f32.mrb[128].mxu1 }
 0x56b   : > { %v5181_v11 = vadd.f32 %v6409_v63, %v8966_v17  ;;  %v5172_v14 = vpop.f32.mrb[129].mxu1  ;;  %v5135_v6 = vadd.f32 %v6342_v50, %v5038_v35 }
 0x56c   : > { %v5173_v38 = vadd.f32 %v5172_v14, %v8960_v46  ;;  %v6410_v43 = vpop.f32.mrb[130].mxu1 }
 0x56d   : > { %5237 = vst [vmem:[%s9002_s17 + $0x10] sm:$0xff] %v5181_v11  ;;  %v5184_v29 = vadd.f32 %v6410_v43, %v8968_v23  ;;  %v5175_v21 = vpop.f32.mrb[131].mxu1 }
 0x56e   : > { %5235 = vst [vmem:[%s9002_s17] sm:$0xff] %v5173_v38  ;;  %v5176_v17 = vadd.f32 %v5175_v21, %v8962_v58 }
 0x56f   : > { %5238 = vst [vmem:[%s9002_s17 + $0x18] sm:$0xff] %v5184_v29 }
 0x570   : > { %5236 = vst [vmem:[%s9002_s17 + $0x8] sm:$0xff] %v5176_v17 }
 0x572   : > { %v6413_v46 = vpop.f32.mrb[132].mxu1 }
 0x573   : > { %v5197_v32 = vadd.f32 %v6413_v46, %v8978_v2  ;;  %v5188_v59 = vpop.f32.mrb[133].mxu1 }
 0x574   : > { %v5189_v27 = vadd.f32 %v5188_v59, %v8972_v12  ;;  %v6414_v19 = vpop.f32.mrb[134].mxu1 }
 0x575   : > { %5241 = vst [vmem:[%s9002_s17 + $0x30] sm:$0xff] %v5197_v32  ;;  %v5200_v23 = vadd.f32 %v6414_v19, %v8980_v54  ;;  %v5191_v30 = vpop.f32.mrb[135].mxu1 }
 0x576   : > { %5239 = vst [vmem:[%s9002_s17 + $0x20] sm:$0xff] %v5189_v27  ;;  %v5192_v58 = vadd.f32 %v5191_v30, %v8974_v26 }
 0x577   : > { %5242 = vst [vmem:[%s9002_s17 + $0x38] sm:$0xff] %v5200_v23 }
 0x578   : > { %5240 = vst [vmem:[%s9002_s17 + $0x28] sm:$0xff] %v5192_v58 }
 0x57a   : > { %v6417_v2 = vpop.f32.mrb[136].mxu1 }
 0x57b   : > { %v5213_v24 = vadd.f32 %v6417_v2, %v5116_v52  ;;  %v5204_v56 = vpop.f32.mrb[137].mxu1 }
 0x57c   : > { %v5205_v12 = vadd.f32 %v5204_v56, %v8984_v57  ;;  %v6418_v44 = vpop.f32.mrb[138].mxu1 }
 0x57d   : > { %5245 = vst [vmem:[%s9002_s17 + $0x50] sm:$0xff] %v5213_v24  ;;  %v5216_v54 = vadd.f32 %v6418_v44, %v8990_v1  ;;  %v5207_v22 = vpop.f32.mrb[139].mxu1 }
 0x57e   : > { %5243 = vst [vmem:[%s9002_s17 + $0x40] sm:$0xff] %v5205_v12  ;;  %v5208_v33 = vadd.f32 %v5207_v22, %v8986_v60 }
 0x57f   : > { %5246 = vst [vmem:[%s9002_s17 + $0x58] sm:$0xff] %v5216_v54 }
 0x580   : > { %5244 = vst [vmem:[%s9002_s17 + $0x48] sm:$0xff] %v5208_v33 }
 0x582   : > { %v6421_v26 = vpop.f32.mrb[140].mxu1 }
 0x583   : > { %v5229_v28 = vadd.f32 %v6421_v26, %v5132_v48  ;;  %v5220_v57 = vpop.f32.mrb[141].mxu1 }
 0x584   : > { %v5221_v25 = vadd.f32 %v5220_v57, %v5124_v10  ;;  %v6422_v40 = vpop.f32.mrb[142].mxu1 }
 0x585   : > { %5249 = vst [vmem:[%s9002_s17 + $0x70] sm:$0xff] %v5229_v28  ;;  %v5232_v52 = vadd.f32 %v6422_v40, %v5135_v6  ;;  %v5223_v1 = vpop.f32.mrb[143].mxu1 }
 0x586   : > { %5247 = vst [vmem:[%s9002_s17 + $0x60] sm:$0xff] %v5221_v25  ;;  %v5224_v60 = vadd.f32 %v5223_v1, %v8994_v36 }
 0x587   : > { %5250 = vst [vmem:[%s9002_s17 + $0x78] sm:$0xff] %v5232_v52 }
 0x588   : > { %5248 = vst [vmem:[%s9002_s17 + $0x68] sm:$0xff] %v5224_v60 }
 0x589   : > { %7466 = shalt.err (!%p7463_p2)
}
 0x58a   : > { %s7467_s22 = scalar_lea.hbm %s9031_s20, 2048  ;;  %s7471_s28 = scalar_lea.hbm %s9090_s9, 4096 }
 0x58b   : > { %p7468_p13 = scmp.ne.s32.totalorder %s9031_s20, %s7467_s22  ;;  %p7472_p4 = scmp.lt.u32.totalorder %s9031_s20, %s9090_s9 }
 0x58c   : > { %p7473_p5 = scmp.lt.u32.totalorder %s7471_s28, %s7467_s22  ;;  %p7475_p11 = scmp.lt.u32.totalorder %s7467_s22, %s9031_s20 }
 0x58d   : > { %p7469_p6 = pnand %p7468_p13, %p9150_p0 }
 0x58e   : > { %p7474_p8 = por %p7473_p5, %p7472_p4 }
 0x58f   : > { %p7470_p10 = pneg %p7469_p6 }
 0x590   : > { %p7476_p1 = por %p7475_p11, %p7474_p8 }
 0x592   : > { %p7477_p3 = pnand %p7476_p1, %p7470_p10 }
 0x594   : > { %7480 = shalt.err (!%p7477_p3)
}
 0x595   : > { %s7533_s21 = smov 128   ;;  %s7534_s25 = smov 8  }
 0x596   : > { %6433 = dma.vmem_to_hbm [thread:$0]  (%p9150_p0), %s9033_s14, 2048, %s9031_s20, %s5252_s13, %s7533_s21, %s7533_s21, %s7534_s25  }
 0x597 PF: > { %s9151_s18 = sld [smem:[#allocation13_spill]]  ;;  %s5280_s29 = sand.u32 1, %s7511_s30  }
 0x598   : > { %p9153_p9 = scmp.ge.s32.totalorder %s7523_s12, 2  ;;  %s5281_s22 = scalar_lea.sflag [#allocation5], %s5280_s29 }
 0x59d   : > { %p9152_p7 = scmp.ne.s32.totalorder %s9151_s18, 0 }
 0x59f   : > { %p6447_p12 = pnand %p9153_p9, %p9152_p7 }
 0x5a1   : > { %7506 = dma.done.wait (!%p6447_p12), %s5281_s22, 2048  }
 0x5a2   : > { %7508 = vsyncadd (!%p6447_p12), %s5281_s22, 4294965248  ;;  %p23_p2 = scmp.ge.s32.totalorder %s7695_s24, 4   ;;  %s9154_s30 = smov %s7515_s10 }
 0x5a3   : > { %s9155_s10 = smov %s7519_s11  ;;  %s9156_s11 = smov %s7711_s27 }
 0x5a4   : > { %s9157_s12 = smov %s7695_s24  ;;  %25 = sbr.rel (!%p23_p2) target bundleno = 6 (0x6), region = 109 }
 0x5ab   :  { %5286 = vsyncpa [#allocation4], 1 }
 0x5ac   :  { %5288 = vsyncpa [#allocation4 + $0x1], 1 }
 0x5ad   :  { %5289 = vsyncpa [#allocation7], 1 }
 0x5ae   :  { %5290 = vsyncpa [#allocation5], 1 }
 0x5af   :  { %5292 = vsyncpa [#allocation5 + $0x1], 1 }

</bundles_post_ra>
